<compile_context>
chip_gen: v5e
topology: v5e:2x2
jax: 0.10.0
libtpu: 0.0.40
codegen_flags: <defaults>
</compile_context>

<pallas_src>
import functools

import jax
import jax.numpy as jnp
from jax.experimental import pallas as pl
from jax.experimental.pallas import tpu as pltpu


# VGG11-style feature config (channel widths scaled down for the small example).
CFG = [8, 'M', 16, 'M', 32, 32, 'M']
LANE = 128


# ----------------------------- fused Pallas kernel -----------------------------

def _make_vgg_kernel(cfg, height, width, in_channels, out_width):
    """Fused per-image kernel: conv stack -> flatten (NHWC) -> bias-free linear."""
    n_conv = sum(1 for v in cfg if v != 'M')

    def kernel(*refs):
        x_ref = refs[0]
        conv_refs = refs[1:1 + 2 * n_conv]
        lw_ref = refs[1 + 2 * n_conv]
        o_ref = refs[2 + 2 * n_conv]

        h, w, cin = height, width, in_channels
        a = x_ref[0]                                    # (h, w, cin) f32, VMEM resident
        li = 0
        for v in cfg:
            if v == 'M':
                # fused 2x2 / stride-2 max pool on the resident activation
                a4 = a.reshape(h, w // 2, 2, cin)
                a = jnp.maximum(a4[:, :, 0, :], a4[:, :, 1, :])      # pool along W
                a5 = a.reshape(h // 2, 2, w // 2, cin)
                a = jnp.maximum(a5[:, 0, :, :], a5[:, 1, :, :])      # pool along H
                h //= 2
                w //= 2
            else:
                w_ref = conv_refs[2 * li]
                b_ref = conv_refs[2 * li + 1]
                li += 1
                # in-VMEM zero halo (no HBM jnp.pad round trip)
                zr = jnp.zeros((1, w, cin), jnp.float32)
                ap = jnp.concatenate([zr, a, zr], axis=0)            # (h+2, w, cin)
                zc = jnp.zeros((h + 2, 1, cin), jnp.float32)
                ap = jnp.concatenate([zc, ap, zc], axis=1)           # (h+2, w+2, cin)
                # im2col: one (h*w, 9*cin) patch matrix -> a single MXU dot
                cols = [ap[dy:dy + h, dx:dx + w, :].reshape(h * w, cin)
                        for dy in range(3) for dx in range(3)]
                patches = jnp.concatenate(cols, axis=1).astype(jnp.bfloat16)
                acc = jnp.dot(patches, w_ref[...],                   # bf16 x bf16 -> f32
                              preferred_element_type=jnp.float32)
                acc = jnp.maximum(acc + b_ref[...], 0.0)             # bias + ReLU (f32)
                a = acc.reshape(h, w, v)
                cin = v

        # flatten in NHWC order; linear weight rows were pre-permuted to match,
        # so no NHWC->NCHW transpose is ever materialized.
        rows = a.reshape(h * w, cin)
        feat = jnp.concatenate([rows[i:i + 1, :] for i in range(h * w)], axis=1)
        out = jnp.dot(feat.astype(jnp.bfloat16), lw_ref[...],        # (1, out_width)
                      preferred_element_type=jnp.float32)
        o_ref[...] = out.reshape(1, 1, out_width)                    # lane-dense store

    return kernel


@functools.partial(jax.jit, static_argnames=("nr_classes",))
def vgg_forward(x_nchw, conv_params, lin_w_pad, *, nr_classes):
    """x_nchw: (N, C, H, W) float32 -> (N, nr_classes) float32 logits."""
    N, C, H, W = x_nchw.shape
    c_pad = lin_w_pad.shape[-1]                                      # lane-padded classes
    x = jnp.transpose(x_nchw.astype(jnp.float32), (0, 2, 3, 1))      # NCHW -> NHWC (input only)

    # advisory cost estimate for XLA's scheduler
    flops = 0
    h_, w_, cin_ = H, W, C
    for v in CFG:
        if v == 'M':
            h_ //= 2
            w_ //= 2
        else:
            flops += 2 * h_ * w_ * 9 * cin_ * v
            cin_ = v
    flops = (flops + 2 * h_ * w_ * cin_ * c_pad) * N

    inputs = [x]
    in_specs = [pl.BlockSpec((1, H, W, C), lambda n: (n, 0, 0, 0))]
    bytes_accessed = x.size * 4
    for wt, bt in conv_params:
        inputs += [wt, bt]
        in_specs += [pl.BlockSpec(wt.shape, lambda n: (0, 0)),
                     pl.BlockSpec(bt.shape, lambda n: (0, 0))]
        bytes_accessed += wt.size * 2 + bt.size * 4
    inputs.append(lin_w_pad)
    in_specs.append(pl.BlockSpec(lin_w_pad.shape, lambda n: (0, 0)))
    bytes_accessed += lin_w_pad.size * 2 + N * c_pad * 4

    kernel = _make_vgg_kernel(CFG, H, W, C, c_pad)
    out = pl.pallas_call(
        kernel,
        out_shape=jax.ShapeDtypeStruct((N, 1, c_pad), jnp.float32),
        grid=(N,),
        in_specs=in_specs,
        out_specs=pl.BlockSpec((1, 1, c_pad), lambda n: (n, 0, 0)),
        compiler_params=pltpu.CompilerParams(
            dimension_semantics=("parallel",)),        # v7x: shard batch over 2 TCs
        cost_estimate=pl.CostEstimate(flops=flops, transcendentals=0,
                                      bytes_accessed=bytes_accessed),
    )(*inputs)
    return out.reshape(N, c_pad)[:, :nr_classes]


# ----------------------------- parameters -----------------------------

def init_params(key, channels, height, width, nr_classes, cfg=CFG):
    """Deterministic params mirroring nn.Conv2d / nn.Linear defaults (natural layout)."""
    conv_params = []
    cin, h, w = channels, height, width
    for v in cfg:
        if v == 'M':
            h //= 2
            w //= 2
            continue
        key, kw, kb = jax.random.split(key, 3)
        bound = 1.0 / jnp.sqrt(jnp.float32(cin * 9))
        wt = jax.random.uniform(kw, (3, 3, cin, v), jnp.float32, -bound, bound)
        bt = jax.random.uniform(kb, (v,), jnp.float32, -bound, bound)
        conv_params.append((wt, bt))
        cin = v
    in_features = cin * h * w                 # matches the module's dummy-pass probe
    key, kl = jax.random.split(key)
    bound = 1.0 / jnp.sqrt(jnp.float32(in_features))
    # torch Linear weight maps (nr_classes, in_features); rows here follow the
    # NCHW flatten order (as torch.reshape(features, (N, -1)) would index them).
    lin_w = jax.random.uniform(kl, (in_features, nr_classes), jnp.float32, -bound, bound)
    return conv_params, lin_w, (cin, h, w)


def pack_params(conv_params, lin_w, final_chw, lane=LANE):
    """One-time repack into kernel layouts: bf16 matmul operands, tap-major
    (9*Cin, Cout) im2col conv weights, NHWC-flatten-ordered linear weight with
    the class dim zero-padded to a lane multiple (lane-dense output store)."""
    kconv = []
    for wt, bt in conv_params:
        cin, cout = wt.shape[2], wt.shape[3]
        kconv.append((wt.reshape(9 * cin, cout).astype(jnp.bfloat16),
                      bt.reshape(1, cout).astype(jnp.float32)))
    cf, hf, wf = final_chw
    lw_nhwc = (lin_w.reshape(cf, hf, wf, -1)
                    .transpose(1, 2, 0, 3)
                    .reshape(hf * wf * cf, -1))
    nr_classes = lw_nhwc.shape[-1]
    c_pad = ((nr_classes + lane - 1) // lane) * lane
    lw_pad = jnp.zeros((lw_nhwc.shape[0], c_pad), jnp.float32)
    lw_pad = lw_pad.at[:, :nr_classes].set(lw_nhwc)
    return kconv, lw_pad.astype(jnp.bfloat16)


# ----------------------------- pure-JAX reference -----------------------------

def vgg_forward_ref(x_nchw, conv_params, lin_w):
    """lax.conv / reduce_window reference at matching (bf16 operand) precision."""
    x = x_nchw.astype(jnp.float32)
    pi = 0
    for v in CFG:
        if v == 'M':
            x = jax.lax.reduce_window(x, -jnp.inf, jax.lax.max,
                                      (1, 1, 2, 2), (1, 1, 2, 2), 'VALID')
        else:
            wt, bt = conv_params[pi]
            pi += 1
            w_oihw = jnp.transpose(wt, (3, 2, 0, 1)).astype(jnp.bfloat16)
            y = jax.lax.conv_general_dilated(
                x.astype(jnp.bfloat16), w_oihw, (1, 1), ((1, 1), (1, 1)),
                dimension_numbers=('NCHW', 'OIHW', 'NCHW'),
                preferred_element_type=jnp.float32)
            x = jnp.maximum(y + bt.reshape(1, v, 1, 1), 0.0)
    feat = x.reshape(x.shape[0], -1)                   # torch flatten order (NCHW)
    return jnp.dot(feat.astype(jnp.bfloat16), lin_w.astype(jnp.bfloat16),
                   preferred_element_type=jnp.float32)


# ----------------------------- main -----------------------------

if __name__ == "__main__":
    batch, channels, height, width, nr_classes = 2, 3, 16, 16, 10

    key = jax.random.PRNGKey(0)
    key, kx = jax.random.split(key)
    x = jax.random.normal(kx, (batch, channels, height, width), jnp.float32)

    conv_params, lin_w, final_chw = init_params(key, channels, height, width, nr_classes)
    kconv, klw = pack_params(conv_params, lin_w, final_chw)

    out = jax.block_until_ready(vgg_forward(x, kconv, klw, nr_classes=nr_classes))
    assert out.shape == (batch, nr_classes), out.shape

    ref = vgg_forward_ref(x, conv_params, lin_w)
    # bf16 MXU operands (f32 accumulation) -> tolerance relaxed vs. pure-f32.
    assert jnp.allclose(out, ref, atol=5e-3, rtol=5e-2), (
        float(jnp.max(jnp.abs(out - ref))))

    print("KERNEL_OK")
</pallas_src>

<mosaic_0001>
module attributes {stable_mosaic.version = 11 : i64} {
  func.func @kernel(%arg0: i32, %arg1: memref<1x16x16x3xf32, #tpu.memory_space<vmem>>, %arg2: memref<27x8xbf16, #tpu.memory_space<vmem>>, %arg3: memref<1x8xf32, #tpu.memory_space<vmem>>, %arg4: memref<72x16xbf16, #tpu.memory_space<vmem>>, %arg5: memref<1x16xf32, #tpu.memory_space<vmem>>, %arg6: memref<144x32xbf16, #tpu.memory_space<vmem>>, %arg7: memref<1x32xf32, #tpu.memory_space<vmem>>, %arg8: memref<288x32xbf16, #tpu.memory_space<vmem>>, %arg9: memref<1x32xf32, #tpu.memory_space<vmem>>, %arg10: memref<128x128xbf16, #tpu.memory_space<vmem>>, %arg11: memref<1x1x128xf32, #tpu.memory_space<vmem>>) attributes {dimension_semantics = [#tpu.dimension_semantics<parallel>], iteration_bounds = array<i64: 2>, scalar_prefetch = 0 : i64, scratch_operands = 0 : i64, tpu.core_type = #tpu.core_type<tc>, window_params = [{transform_indices = @transform_0, window_bounds = array<i64: 1, 16, 16, 3>}, {pipeline_mode = #tpu.pipeline_mode<synchronous>, transform_indices = @transform_1, window_bounds = array<i64: 27, 8>}, {pipeline_mode = #tpu.pipeline_mode<synchronous>, transform_indices = @transform_2, window_bounds = array<i64: 1, 8>}, {pipeline_mode = #tpu.pipeline_mode<synchronous>, transform_indices = @transform_3, window_bounds = array<i64: 72, 16>}, {pipeline_mode = #tpu.pipeline_mode<synchronous>, transform_indices = @transform_4, window_bounds = array<i64: 1, 16>}, {pipeline_mode = #tpu.pipeline_mode<synchronous>, transform_indices = @transform_5, window_bounds = array<i64: 144, 32>}, {pipeline_mode = #tpu.pipeline_mode<synchronous>, transform_indices = @transform_6, window_bounds = array<i64: 1, 32>}, {pipeline_mode = #tpu.pipeline_mode<synchronous>, transform_indices = @transform_7, window_bounds = array<i64: 288, 32>}, {pipeline_mode = #tpu.pipeline_mode<synchronous>, transform_indices = @transform_8, window_bounds = array<i64: 1, 32>}, {pipeline_mode = #tpu.pipeline_mode<synchronous>, transform_indices = @transform_9, window_bounds = array<i64: 128, 128>}, {transform_indices = @transform_10, window_bounds = array<i64: 1, 1, 128>}]} {
    %c0 = arith.constant 0 : index
    %c0_0 = arith.constant 0 : index
    %c0_1 = arith.constant 0 : index
    %c0_2 = arith.constant 0 : index
    %0 = vector.load %arg1[%c0, %c0_0, %c0_1, %c0_2] : memref<1x16x16x3xf32, #tpu.memory_space<vmem>>, vector<1x16x16x3xf32>
    %1 = vector.shape_cast %0 : vector<1x16x16x3xf32> to vector<16x16x3xf32>
    %cst = arith.constant 0.000000e+00 : f32
    %2 = vector.broadcast %cst : f32 to vector<1x16x3xf32>
    %3 = tpu.concatenate %2, %1, %2 in 0 : vector<1x16x3xf32>, vector<16x16x3xf32>, vector<1x16x3xf32> -> vector<18x16x3xf32>
    %cst_3 = arith.constant 0.000000e+00 : f32
    %4 = vector.broadcast %cst_3 : f32 to vector<18x1x3xf32>
    %5 = tpu.concatenate %4, %3, %4 in 1 : vector<18x1x3xf32>, vector<18x16x3xf32>, vector<18x1x3xf32> -> vector<18x18x3xf32>
    %6 = vector.extract_strided_slice %5 {offsets = [0, 0, 0], sizes = [16, 16, 3], strides = [1, 1, 1]} : vector<18x18x3xf32> to vector<16x16x3xf32>
    %7 = vector.shape_cast %6 : vector<16x16x3xf32> to vector<256x3xf32>
    %8 = vector.extract_strided_slice %5 {offsets = [0, 1, 0], sizes = [16, 16, 3], strides = [1, 1, 1]} : vector<18x18x3xf32> to vector<16x16x3xf32>
    %9 = vector.shape_cast %8 : vector<16x16x3xf32> to vector<256x3xf32>
    %10 = vector.extract_strided_slice %5 {offsets = [0, 2, 0], sizes = [16, 16, 3], strides = [1, 1, 1]} : vector<18x18x3xf32> to vector<16x16x3xf32>
    %11 = vector.shape_cast %10 : vector<16x16x3xf32> to vector<256x3xf32>
    %12 = vector.extract_strided_slice %5 {offsets = [1, 0, 0], sizes = [16, 16, 3], strides = [1, 1, 1]} : vector<18x18x3xf32> to vector<16x16x3xf32>
    %13 = vector.shape_cast %12 : vector<16x16x3xf32> to vector<256x3xf32>
    %14 = vector.extract_strided_slice %5 {offsets = [1, 1, 0], sizes = [16, 16, 3], strides = [1, 1, 1]} : vector<18x18x3xf32> to vector<16x16x3xf32>
    %15 = vector.shape_cast %14 : vector<16x16x3xf32> to vector<256x3xf32>
    %16 = vector.extract_strided_slice %5 {offsets = [1, 2, 0], sizes = [16, 16, 3], strides = [1, 1, 1]} : vector<18x18x3xf32> to vector<16x16x3xf32>
    %17 = vector.shape_cast %16 : vector<16x16x3xf32> to vector<256x3xf32>
    %18 = vector.extract_strided_slice %5 {offsets = [2, 0, 0], sizes = [16, 16, 3], strides = [1, 1, 1]} : vector<18x18x3xf32> to vector<16x16x3xf32>
    %19 = vector.shape_cast %18 : vector<16x16x3xf32> to vector<256x3xf32>
    %20 = vector.extract_strided_slice %5 {offsets = [2, 1, 0], sizes = [16, 16, 3], strides = [1, 1, 1]} : vector<18x18x3xf32> to vector<16x16x3xf32>
    %21 = vector.shape_cast %20 : vector<16x16x3xf32> to vector<256x3xf32>
    %22 = vector.extract_strided_slice %5 {offsets = [2, 2, 0], sizes = [16, 16, 3], strides = [1, 1, 1]} : vector<18x18x3xf32> to vector<16x16x3xf32>
    %23 = vector.shape_cast %22 : vector<16x16x3xf32> to vector<256x3xf32>
    %24 = tpu.concatenate %7, %9, %11, %13, %15, %17, %19, %21, %23 in 1 : vector<256x3xf32>, vector<256x3xf32>, vector<256x3xf32>, vector<256x3xf32>, vector<256x3xf32>, vector<256x3xf32>, vector<256x3xf32>, vector<256x3xf32>, vector<256x3xf32> -> vector<256x27xf32>
    %25 = arith.truncf %24 : vector<256x27xf32> to vector<256x27xbf16>
    %c0_4 = arith.constant 0 : index
    %c0_5 = arith.constant 0 : index
    %26 = vector.load %arg2[%c0_4, %c0_5] : memref<27x8xbf16, #tpu.memory_space<vmem>>, vector<27x8xbf16>
    %cst_6 = arith.constant dense<0.000000e+00> : vector<256x8xf32>
    %27 = tpu.matmul %25, %26, %cst_6 {dimension_numbers = #tpu.dot_dimension_numbers<[1], [0], [0], [1], [0, 0, 1, 1], [], []>} : vector<256x27xbf16>, vector<27x8xbf16>, vector<256x8xf32> -> vector<256x8xf32>
    %c0_7 = arith.constant 0 : index
    %c0_8 = arith.constant 0 : index
    %28 = vector.load %arg3[%c0_7, %c0_8] : memref<1x8xf32, #tpu.memory_space<vmem>>, vector<1x8xf32>
    %29 = vector.broadcast %28 : vector<1x8xf32> to vector<256x8xf32>
    %30 = arith.addf %27, %29 : vector<256x8xf32>
    %cst_9 = arith.constant 0.000000e+00 : f32
    %31 = vector.broadcast %cst_9 : f32 to vector<256x8xf32>
    %32 = arith.maximumf %30, %31 : vector<256x8xf32>
    %33 = vector.shape_cast %32 : vector<256x8xf32> to vector<16x16x8xf32>
    %34 = vector.shape_cast %33 : vector<16x16x8xf32> to vector<16x8x2x8xf32>
    %35 = vector.extract_strided_slice %34 {offsets = [0, 0, 0, 0], sizes = [16, 8, 1, 8], strides = [1, 1, 1, 1]} : vector<16x8x2x8xf32> to vector<16x8x1x8xf32>
    %36 = vector.shape_cast %35 : vector<16x8x1x8xf32> to vector<16x8x8xf32>
    %37 = vector.extract_strided_slice %34 {offsets = [0, 0, 1, 0], sizes = [16, 8, 1, 8], strides = [1, 1, 1, 1]} : vector<16x8x2x8xf32> to vector<16x8x1x8xf32>
    %38 = vector.shape_cast %37 : vector<16x8x1x8xf32> to vector<16x8x8xf32>
    %39 = arith.maximumf %36, %38 : vector<16x8x8xf32>
    %40 = vector.shape_cast %39 : vector<16x8x8xf32> to vector<8x2x8x8xf32>
    %41 = vector.extract_strided_slice %40 {offsets = [0, 0, 0, 0], sizes = [8, 1, 8, 8], strides = [1, 1, 1, 1]} : vector<8x2x8x8xf32> to vector<8x1x8x8xf32>
    %42 = vector.shape_cast %41 : vector<8x1x8x8xf32> to vector<8x8x8xf32>
    %43 = vector.extract_strided_slice %40 {offsets = [0, 1, 0, 0], sizes = [8, 1, 8, 8], strides = [1, 1, 1, 1]} : vector<8x2x8x8xf32> to vector<8x1x8x8xf32>
    %44 = vector.shape_cast %43 : vector<8x1x8x8xf32> to vector<8x8x8xf32>
    %45 = arith.maximumf %42, %44 : vector<8x8x8xf32>
    %cst_10 = arith.constant 0.000000e+00 : f32
    %46 = vector.broadcast %cst_10 : f32 to vector<1x8x8xf32>
    %47 = tpu.concatenate %46, %45, %46 in 0 : vector<1x8x8xf32>, vector<8x8x8xf32>, vector<1x8x8xf32> -> vector<10x8x8xf32>
    %cst_11 = arith.constant 0.000000e+00 : f32
    %48 = vector.broadcast %cst_11 : f32 to vector<10x1x8xf32>
    %49 = tpu.concatenate %48, %47, %48 in 1 : vector<10x1x8xf32>, vector<10x8x8xf32>, vector<10x1x8xf32> -> vector<10x10x8xf32>
    %50 = vector.extract_strided_slice %49 {offsets = [0, 0, 0], sizes = [8, 8, 8], strides = [1, 1, 1]} : vector<10x10x8xf32> to vector<8x8x8xf32>
    %51 = vector.shape_cast %50 : vector<8x8x8xf32> to vector<64x8xf32>
    %52 = vector.extract_strided_slice %49 {offsets = [0, 1, 0], sizes = [8, 8, 8], strides = [1, 1, 1]} : vector<10x10x8xf32> to vector<8x8x8xf32>
    %53 = vector.shape_cast %52 : vector<8x8x8xf32> to vector<64x8xf32>
    %54 = vector.extract_strided_slice %49 {offsets = [0, 2, 0], sizes = [8, 8, 8], strides = [1, 1, 1]} : vector<10x10x8xf32> to vector<8x8x8xf32>
    %55 = vector.shape_cast %54 : vector<8x8x8xf32> to vector<64x8xf32>
    %56 = vector.extract_strided_slice %49 {offsets = [1, 0, 0], sizes = [8, 8, 8], strides = [1, 1, 1]} : vector<10x10x8xf32> to vector<8x8x8xf32>
    %57 = vector.shape_cast %56 : vector<8x8x8xf32> to vector<64x8xf32>
    %58 = vector.extract_strided_slice %49 {offsets = [1, 1, 0], sizes = [8, 8, 8], strides = [1, 1, 1]} : vector<10x10x8xf32> to vector<8x8x8xf32>
    %59 = vector.shape_cast %58 : vector<8x8x8xf32> to vector<64x8xf32>
    %60 = vector.extract_strided_slice %49 {offsets = [1, 2, 0], sizes = [8, 8, 8], strides = [1, 1, 1]} : vector<10x10x8xf32> to vector<8x8x8xf32>
    %61 = vector.shape_cast %60 : vector<8x8x8xf32> to vector<64x8xf32>
    %62 = vector.extract_strided_slice %49 {offsets = [2, 0, 0], sizes = [8, 8, 8], strides = [1, 1, 1]} : vector<10x10x8xf32> to vector<8x8x8xf32>
    %63 = vector.shape_cast %62 : vector<8x8x8xf32> to vector<64x8xf32>
    %64 = vector.extract_strided_slice %49 {offsets = [2, 1, 0], sizes = [8, 8, 8], strides = [1, 1, 1]} : vector<10x10x8xf32> to vector<8x8x8xf32>
    %65 = vector.shape_cast %64 : vector<8x8x8xf32> to vector<64x8xf32>
    %66 = vector.extract_strided_slice %49 {offsets = [2, 2, 0], sizes = [8, 8, 8], strides = [1, 1, 1]} : vector<10x10x8xf32> to vector<8x8x8xf32>
    %67 = vector.shape_cast %66 : vector<8x8x8xf32> to vector<64x8xf32>
    %68 = tpu.concatenate %51, %53, %55, %57, %59, %61, %63, %65, %67 in 1 : vector<64x8xf32>, vector<64x8xf32>, vector<64x8xf32>, vector<64x8xf32>, vector<64x8xf32>, vector<64x8xf32>, vector<64x8xf32>, vector<64x8xf32>, vector<64x8xf32> -> vector<64x72xf32>
    %69 = arith.truncf %68 : vector<64x72xf32> to vector<64x72xbf16>
    %c0_12 = arith.constant 0 : index
    %c0_13 = arith.constant 0 : index
    %70 = vector.load %arg4[%c0_12, %c0_13] : memref<72x16xbf16, #tpu.memory_space<vmem>>, vector<72x16xbf16>
    %cst_14 = arith.constant dense<0.000000e+00> : vector<64x16xf32>
    %71 = tpu.matmul %69, %70, %cst_14 {dimension_numbers = #tpu.dot_dimension_numbers<[1], [0], [0], [1], [0, 0, 1, 1], [], []>} : vector<64x72xbf16>, vector<72x16xbf16>, vector<64x16xf32> -> vector<64x16xf32>
    %c0_15 = arith.constant 0 : index
    %c0_16 = arith.constant 0 : index
    %72 = vector.load %arg5[%c0_15, %c0_16] : memref<1x16xf32, #tpu.memory_space<vmem>>, vector<1x16xf32>
    %73 = vector.broadcast %72 : vector<1x16xf32> to vector<64x16xf32>
    %74 = arith.addf %71, %73 : vector<64x16xf32>
    %cst_17 = arith.constant 0.000000e+00 : f32
    %75 = vector.broadcast %cst_17 : f32 to vector<64x16xf32>
    %76 = arith.maximumf %74, %75 : vector<64x16xf32>
    %77 = vector.shape_cast %76 : vector<64x16xf32> to vector<8x8x16xf32>
    %78 = vector.shape_cast %77 : vector<8x8x16xf32> to vector<8x4x2x16xf32>
    %79 = vector.extract_strided_slice %78 {offsets = [0, 0, 0, 0], sizes = [8, 4, 1, 16], strides = [1, 1, 1, 1]} : vector<8x4x2x16xf32> to vector<8x4x1x16xf32>
    %80 = vector.shape_cast %79 : vector<8x4x1x16xf32> to vector<8x4x16xf32>
    %81 = vector.extract_strided_slice %78 {offsets = [0, 0, 1, 0], sizes = [8, 4, 1, 16], strides = [1, 1, 1, 1]} : vector<8x4x2x16xf32> to vector<8x4x1x16xf32>
    %82 = vector.shape_cast %81 : vector<8x4x1x16xf32> to vector<8x4x16xf32>
    %83 = arith.maximumf %80, %82 : vector<8x4x16xf32>
    %84 = vector.shape_cast %83 : vector<8x4x16xf32> to vector<4x2x4x16xf32>
    %85 = vector.extract_strided_slice %84 {offsets = [0, 0, 0, 0], sizes = [4, 1, 4, 16], strides = [1, 1, 1, 1]} : vector<4x2x4x16xf32> to vector<4x1x4x16xf32>
    %86 = vector.shape_cast %85 : vector<4x1x4x16xf32> to vector<4x4x16xf32>
    %87 = vector.extract_strided_slice %84 {offsets = [0, 1, 0, 0], sizes = [4, 1, 4, 16], strides = [1, 1, 1, 1]} : vector<4x2x4x16xf32> to vector<4x1x4x16xf32>
    %88 = vector.shape_cast %87 : vector<4x1x4x16xf32> to vector<4x4x16xf32>
    %89 = arith.maximumf %86, %88 : vector<4x4x16xf32>
    %cst_18 = arith.constant 0.000000e+00 : f32
    %90 = vector.broadcast %cst_18 : f32 to vector<1x4x16xf32>
    %91 = tpu.concatenate %90, %89, %90 in 0 : vector<1x4x16xf32>, vector<4x4x16xf32>, vector<1x4x16xf32> -> vector<6x4x16xf32>
    %cst_19 = arith.constant 0.000000e+00 : f32
    %92 = vector.broadcast %cst_19 : f32 to vector<6x1x16xf32>
    %93 = tpu.concatenate %92, %91, %92 in 1 : vector<6x1x16xf32>, vector<6x4x16xf32>, vector<6x1x16xf32> -> vector<6x6x16xf32>
    %94 = vector.extract_strided_slice %93 {offsets = [0, 0, 0], sizes = [4, 4, 16], strides = [1, 1, 1]} : vector<6x6x16xf32> to vector<4x4x16xf32>
    %95 = vector.shape_cast %94 : vector<4x4x16xf32> to vector<16x16xf32>
    %96 = vector.extract_strided_slice %93 {offsets = [0, 1, 0], sizes = [4, 4, 16], strides = [1, 1, 1]} : vector<6x6x16xf32> to vector<4x4x16xf32>
    %97 = vector.shape_cast %96 : vector<4x4x16xf32> to vector<16x16xf32>
    %98 = vector.extract_strided_slice %93 {offsets = [0, 2, 0], sizes = [4, 4, 16], strides = [1, 1, 1]} : vector<6x6x16xf32> to vector<4x4x16xf32>
    %99 = vector.shape_cast %98 : vector<4x4x16xf32> to vector<16x16xf32>
    %100 = vector.extract_strided_slice %93 {offsets = [1, 0, 0], sizes = [4, 4, 16], strides = [1, 1, 1]} : vector<6x6x16xf32> to vector<4x4x16xf32>
    %101 = vector.shape_cast %100 : vector<4x4x16xf32> to vector<16x16xf32>
    %102 = vector.extract_strided_slice %93 {offsets = [1, 1, 0], sizes = [4, 4, 16], strides = [1, 1, 1]} : vector<6x6x16xf32> to vector<4x4x16xf32>
    %103 = vector.shape_cast %102 : vector<4x4x16xf32> to vector<16x16xf32>
    %104 = vector.extract_strided_slice %93 {offsets = [1, 2, 0], sizes = [4, 4, 16], strides = [1, 1, 1]} : vector<6x6x16xf32> to vector<4x4x16xf32>
    %105 = vector.shape_cast %104 : vector<4x4x16xf32> to vector<16x16xf32>
    %106 = vector.extract_strided_slice %93 {offsets = [2, 0, 0], sizes = [4, 4, 16], strides = [1, 1, 1]} : vector<6x6x16xf32> to vector<4x4x16xf32>
    %107 = vector.shape_cast %106 : vector<4x4x16xf32> to vector<16x16xf32>
    %108 = vector.extract_strided_slice %93 {offsets = [2, 1, 0], sizes = [4, 4, 16], strides = [1, 1, 1]} : vector<6x6x16xf32> to vector<4x4x16xf32>
    %109 = vector.shape_cast %108 : vector<4x4x16xf32> to vector<16x16xf32>
    %110 = vector.extract_strided_slice %93 {offsets = [2, 2, 0], sizes = [4, 4, 16], strides = [1, 1, 1]} : vector<6x6x16xf32> to vector<4x4x16xf32>
    %111 = vector.shape_cast %110 : vector<4x4x16xf32> to vector<16x16xf32>
    %112 = tpu.concatenate %95, %97, %99, %101, %103, %105, %107, %109, %111 in 1 : vector<16x16xf32>, vector<16x16xf32>, vector<16x16xf32>, vector<16x16xf32>, vector<16x16xf32>, vector<16x16xf32>, vector<16x16xf32>, vector<16x16xf32>, vector<16x16xf32> -> vector<16x144xf32>
    %113 = arith.truncf %112 : vector<16x144xf32> to vector<16x144xbf16>
    %c0_20 = arith.constant 0 : index
    %c0_21 = arith.constant 0 : index
    %114 = vector.load %arg6[%c0_20, %c0_21] : memref<144x32xbf16, #tpu.memory_space<vmem>>, vector<144x32xbf16>
    %cst_22 = arith.constant dense<0.000000e+00> : vector<16x32xf32>
    %115 = tpu.matmul %113, %114, %cst_22 {dimension_numbers = #tpu.dot_dimension_numbers<[1], [0], [0], [1], [0, 0, 1, 1], [], []>} : vector<16x144xbf16>, vector<144x32xbf16>, vector<16x32xf32> -> vector<16x32xf32>
    %c0_23 = arith.constant 0 : index
    %c0_24 = arith.constant 0 : index
    %116 = vector.load %arg7[%c0_23, %c0_24] : memref<1x32xf32, #tpu.memory_space<vmem>>, vector<1x32xf32>
    %117 = vector.broadcast %116 : vector<1x32xf32> to vector<16x32xf32>
    %118 = arith.addf %115, %117 : vector<16x32xf32>
    %cst_25 = arith.constant 0.000000e+00 : f32
    %119 = vector.broadcast %cst_25 : f32 to vector<16x32xf32>
    %120 = arith.maximumf %118, %119 : vector<16x32xf32>
    %121 = vector.shape_cast %120 : vector<16x32xf32> to vector<4x4x32xf32>
    %cst_26 = arith.constant 0.000000e+00 : f32
    %122 = vector.broadcast %cst_26 : f32 to vector<1x4x32xf32>
    %123 = tpu.concatenate %122, %121, %122 in 0 : vector<1x4x32xf32>, vector<4x4x32xf32>, vector<1x4x32xf32> -> vector<6x4x32xf32>
    %cst_27 = arith.constant 0.000000e+00 : f32
    %124 = vector.broadcast %cst_27 : f32 to vector<6x1x32xf32>
    %125 = tpu.concatenate %124, %123, %124 in 1 : vector<6x1x32xf32>, vector<6x4x32xf32>, vector<6x1x32xf32> -> vector<6x6x32xf32>
    %126 = vector.extract_strided_slice %125 {offsets = [0, 0, 0], sizes = [4, 4, 32], strides = [1, 1, 1]} : vector<6x6x32xf32> to vector<4x4x32xf32>
    %127 = vector.shape_cast %126 : vector<4x4x32xf32> to vector<16x32xf32>
    %128 = vector.extract_strided_slice %125 {offsets = [0, 1, 0], sizes = [4, 4, 32], strides = [1, 1, 1]} : vector<6x6x32xf32> to vector<4x4x32xf32>
    %129 = vector.shape_cast %128 : vector<4x4x32xf32> to vector<16x32xf32>
    %130 = vector.extract_strided_slice %125 {offsets = [0, 2, 0], sizes = [4, 4, 32], strides = [1, 1, 1]} : vector<6x6x32xf32> to vector<4x4x32xf32>
    %131 = vector.shape_cast %130 : vector<4x4x32xf32> to vector<16x32xf32>
    %132 = vector.extract_strided_slice %125 {offsets = [1, 0, 0], sizes = [4, 4, 32], strides = [1, 1, 1]} : vector<6x6x32xf32> to vector<4x4x32xf32>
    %133 = vector.shape_cast %132 : vector<4x4x32xf32> to vector<16x32xf32>
    %134 = vector.extract_strided_slice %125 {offsets = [1, 1, 0], sizes = [4, 4, 32], strides = [1, 1, 1]} : vector<6x6x32xf32> to vector<4x4x32xf32>
    %135 = vector.shape_cast %134 : vector<4x4x32xf32> to vector<16x32xf32>
    %136 = vector.extract_strided_slice %125 {offsets = [1, 2, 0], sizes = [4, 4, 32], strides = [1, 1, 1]} : vector<6x6x32xf32> to vector<4x4x32xf32>
    %137 = vector.shape_cast %136 : vector<4x4x32xf32> to vector<16x32xf32>
    %138 = vector.extract_strided_slice %125 {offsets = [2, 0, 0], sizes = [4, 4, 32], strides = [1, 1, 1]} : vector<6x6x32xf32> to vector<4x4x32xf32>
    %139 = vector.shape_cast %138 : vector<4x4x32xf32> to vector<16x32xf32>
    %140 = vector.extract_strided_slice %125 {offsets = [2, 1, 0], sizes = [4, 4, 32], strides = [1, 1, 1]} : vector<6x6x32xf32> to vector<4x4x32xf32>
    %141 = vector.shape_cast %140 : vector<4x4x32xf32> to vector<16x32xf32>
    %142 = vector.extract_strided_slice %125 {offsets = [2, 2, 0], sizes = [4, 4, 32], strides = [1, 1, 1]} : vector<6x6x32xf32> to vector<4x4x32xf32>
    %143 = vector.shape_cast %142 : vector<4x4x32xf32> to vector<16x32xf32>
    %144 = tpu.concatenate %127, %129, %131, %133, %135, %137, %139, %141, %143 in 1 : vector<16x32xf32>, vector<16x32xf32>, vector<16x32xf32>, vector<16x32xf32>, vector<16x32xf32>, vector<16x32xf32>, vector<16x32xf32>, vector<16x32xf32>, vector<16x32xf32> -> vector<16x288xf32>
    %145 = arith.truncf %144 : vector<16x288xf32> to vector<16x288xbf16>
    %c0_28 = arith.constant 0 : index
    %c0_29 = arith.constant 0 : index
    %146 = vector.load %arg8[%c0_28, %c0_29] : memref<288x32xbf16, #tpu.memory_space<vmem>>, vector<288x32xbf16>
    %cst_30 = arith.constant dense<0.000000e+00> : vector<16x32xf32>
    %147 = tpu.matmul %145, %146, %cst_30 {dimension_numbers = #tpu.dot_dimension_numbers<[1], [0], [0], [1], [0, 0, 1, 1], [], []>} : vector<16x288xbf16>, vector<288x32xbf16>, vector<16x32xf32> -> vector<16x32xf32>
    %c0_31 = arith.constant 0 : index
    %c0_32 = arith.constant 0 : index
    %148 = vector.load %arg9[%c0_31, %c0_32] : memref<1x32xf32, #tpu.memory_space<vmem>>, vector<1x32xf32>
    %149 = vector.broadcast %148 : vector<1x32xf32> to vector<16x32xf32>
    %150 = arith.addf %147, %149 : vector<16x32xf32>
    %cst_33 = arith.constant 0.000000e+00 : f32
    %151 = vector.broadcast %cst_33 : f32 to vector<16x32xf32>
    %152 = arith.maximumf %150, %151 : vector<16x32xf32>
    %153 = vector.shape_cast %152 : vector<16x32xf32> to vector<4x4x32xf32>
    %154 = vector.shape_cast %153 : vector<4x4x32xf32> to vector<4x2x2x32xf32>
    %155 = vector.extract_strided_slice %154 {offsets = [0, 0, 0, 0], sizes = [4, 2, 1, 32], strides = [1, 1, 1, 1]} : vector<4x2x2x32xf32> to vector<4x2x1x32xf32>
    %156 = vector.shape_cast %155 : vector<4x2x1x32xf32> to vector<4x2x32xf32>
    %157 = vector.extract_strided_slice %154 {offsets = [0, 0, 1, 0], sizes = [4, 2, 1, 32], strides = [1, 1, 1, 1]} : vector<4x2x2x32xf32> to vector<4x2x1x32xf32>
    %158 = vector.shape_cast %157 : vector<4x2x1x32xf32> to vector<4x2x32xf32>
    %159 = arith.maximumf %156, %158 : vector<4x2x32xf32>
    %160 = vector.shape_cast %159 : vector<4x2x32xf32> to vector<2x2x2x32xf32>
    %161 = vector.extract_strided_slice %160 {offsets = [0, 0, 0, 0], sizes = [2, 1, 2, 32], strides = [1, 1, 1, 1]} : vector<2x2x2x32xf32> to vector<2x1x2x32xf32>
    %162 = vector.shape_cast %161 : vector<2x1x2x32xf32> to vector<2x2x32xf32>
    %163 = vector.extract_strided_slice %160 {offsets = [0, 1, 0, 0], sizes = [2, 1, 2, 32], strides = [1, 1, 1, 1]} : vector<2x2x2x32xf32> to vector<2x1x2x32xf32>
    %164 = vector.shape_cast %163 : vector<2x1x2x32xf32> to vector<2x2x32xf32>
    %165 = arith.maximumf %162, %164 : vector<2x2x32xf32>
    %166 = vector.shape_cast %165 : vector<2x2x32xf32> to vector<4x32xf32>
    %167 = vector.extract_strided_slice %166 {offsets = [0, 0], sizes = [1, 32], strides = [1, 1]} : vector<4x32xf32> to vector<1x32xf32>
    %168 = vector.extract_strided_slice %166 {offsets = [1, 0], sizes = [1, 32], strides = [1, 1]} : vector<4x32xf32> to vector<1x32xf32>
    %169 = vector.extract_strided_slice %166 {offsets = [2, 0], sizes = [1, 32], strides = [1, 1]} : vector<4x32xf32> to vector<1x32xf32>
    %170 = vector.extract_strided_slice %166 {offsets = [3, 0], sizes = [1, 32], strides = [1, 1]} : vector<4x32xf32> to vector<1x32xf32>
    %171 = tpu.concatenate %167, %168, %169, %170 in 1 : vector<1x32xf32>, vector<1x32xf32>, vector<1x32xf32>, vector<1x32xf32> -> vector<1x128xf32>
    %172 = arith.truncf %171 : vector<1x128xf32> to vector<1x128xbf16>
    %c0_34 = arith.constant 0 : index
    %c0_35 = arith.constant 0 : index
    %173 = vector.load %arg10[%c0_34, %c0_35] : memref<128x128xbf16, #tpu.memory_space<vmem>>, vector<128x128xbf16>
    %cst_36 = arith.constant dense<0.000000e+00> : vector<1x128xf32>
    %174 = tpu.matmul %172, %173, %cst_36 {dimension_numbers = #tpu.dot_dimension_numbers<[1], [0], [0], [1], [0, 0, 1, 1], [], []>} : vector<1x128xbf16>, vector<128x128xbf16>, vector<1x128xf32> -> vector<1x128xf32>
    %175 = vector.shape_cast %174 : vector<1x128xf32> to vector<1x1x128xf32>
    %c0_37 = arith.constant 0 : index
    %c0_38 = arith.constant 0 : index
    %c0_39 = arith.constant 0 : index
    %176 = vector.load %arg11[%c0_37, %c0_38, %c0_39] : memref<1x1x128xf32, #tpu.memory_space<vmem>>, vector<1x1x128xf32>
    tpu.vector_store %arg11[%c0_37, %c0_38, %c0_39], %175 {strides = array<i32>} : memref<1x1x128xf32, #tpu.memory_space<vmem>>, vector<1x1x128xf32>,
    return
  }
  func.func @transform_0(%arg0: i32) -> (i32, i32, i32, i32) {
    %c0_i32 = arith.constant 0 : i32
    %c0_i32_0 = arith.constant 0 : i32
    %c0_i32_1 = arith.constant 0 : i32
    %c0_i32_2 = arith.constant 0 : i32
    return %arg0, %c0_i32, %c0_i32_0, %c0_i32_1 : i32, i32, i32, i32
  }
  func.func @transform_1(%arg0: i32) -> (i32, i32) {
    %c0_i32 = arith.constant 0 : i32
    %c0_i32_0 = arith.constant 0 : i32
    %c0_i32_1 = arith.constant 0 : i32
    return %c0_i32, %c0_i32_0 : i32, i32
  }
  func.func @transform_2(%arg0: i32) -> (i32, i32) {
    %c0_i32 = arith.constant 0 : i32
    %c0_i32_0 = arith.constant 0 : i32
    %c0_i32_1 = arith.constant 0 : i32
    return %c0_i32, %c0_i32_0 : i32, i32
  }
  func.func @transform_3(%arg0: i32) -> (i32, i32) {
    %c0_i32 = arith.constant 0 : i32
    %c0_i32_0 = arith.constant 0 : i32
    %c0_i32_1 = arith.constant 0 : i32
    return %c0_i32, %c0_i32_0 : i32, i32
  }
  func.func @transform_4(%arg0: i32) -> (i32, i32) {
    %c0_i32 = arith.constant 0 : i32
    %c0_i32_0 = arith.constant 0 : i32
    %c0_i32_1 = arith.constant 0 : i32
    return %c0_i32, %c0_i32_0 : i32, i32
  }
  func.func @transform_5(%arg0: i32) -> (i32, i32) {
    %c0_i32 = arith.constant 0 : i32
    %c0_i32_0 = arith.constant 0 : i32
    %c0_i32_1 = arith.constant 0 : i32
    return %c0_i32, %c0_i32_0 : i32, i32
  }
  func.func @transform_6(%arg0: i32) -> (i32, i32) {
    %c0_i32 = arith.constant 0 : i32
    %c0_i32_0 = arith.constant 0 : i32
    %c0_i32_1 = arith.constant 0 : i32
    return %c0_i32, %c0_i32_0 : i32, i32
  }
  func.func @transform_7(%arg0: i32) -> (i32, i32) {
    %c0_i32 = arith.constant 0 : i32
    %c0_i32_0 = arith.constant 0 : i32
    %c0_i32_1 = arith.constant 0 : i32
    return %c0_i32, %c0_i32_0 : i32, i32
  }
  func.func @transform_8(%arg0: i32) -> (i32, i32) {
    %c0_i32 = arith.constant 0 : i32
    %c0_i32_0 = arith.constant 0 : i32
    %c0_i32_1 = arith.constant 0 : i32
    return %c0_i32, %c0_i32_0 : i32, i32
  }
  func.func @transform_9(%arg0: i32) -> (i32, i32) {
    %c0_i32 = arith.constant 0 : i32
    %c0_i32_0 = arith.constant 0 : i32
    %c0_i32_1 = arith.constant 0 : i32
    return %c0_i32, %c0_i32_0 : i32, i32
  }
  func.func @transform_10(%arg0: i32) -> (i32, i32, i32) {
    %c0_i32 = arith.constant 0 : i32
    %c0_i32_0 = arith.constant 0 : i32
    %c0_i32_1 = arith.constant 0 : i32
    return %arg0, %c0_i32, %c0_i32_0 : i32, i32, i32
  }
}

</mosaic_0001>

<bundles_post_ra>
// kernel: vgg_forward.1
= control target key start
LH: loop header
LB: loop body
LE: loop exit
PB: predicated region body
PF: predicated region fallthrough
CT: control target
= control target key end

     0   :  { %s8313_s0 = inlined_call_operand.vmem [shape: f32[2,16,16,3], index: 0, kind: input, shape index: {}]   ;;  %s8314_s1 = inlined_call_operand.vmem [shape: bf16[27,8], index: 1, kind: input, shape index: {}]   ;;  %s8315_s2 = inlined_call_operand.vmem [shape: f32[1,8], index: 2, kind: input, shape index: {}]   ;;  %s8316_s3 = inlined_call_operand.vmem [shape: bf16[72,16], index: 3, kind: input, shape index: {}]   ;;  %s8317_s4 = inlined_call_operand.vmem [shape: f32[1,16], index: 4, kind: input, shape index: {}]   ;;  %s8318_s5 = inlined_call_operand.vmem [shape: bf16[144,32], index: 5, kind: input, shape index: {}]   ;;  %s8319_s6 = inlined_call_operand.vmem [shape: f32[1,32], index: 6, kind: input, shape index: {}]   ;;  %s8320_s7 = inlined_call_operand.vmem [shape: bf16[288,32], index: 7, kind: input, shape index: {}]   ;;  %s8321_s8 = inlined_call_operand.vmem [shape: f32[1,32], index: 8, kind: input, shape index: {}]   ;;  %s8322_s9 = inlined_call_operand.vmem [shape: bf16[128,128], index: 9, kind: input, shape index: {}]   ;;  %s8323_s10 = inlined_call_operand.hbm [shape: f32[2,1,128], index: 10, kind: output, shape index: {}]  }
   0x1   :  { %8355 = sst [smem:[#allocation13_spill]] %s8313_s0 }
   0x2   :  { %15 = vsyncpa [#allocation3], 0 }
   0x3   :  { %17 = vsyncpa [#allocation3 + $0x1], 0  ;;  %s6133_s13 = smov 0   ;;  %s6135_s14 = smov 0  }
   0x4   :  { %s6137_s15 = smov 0   ;;  %s6139_s16 = smov 0  }
   0x5 LB: > { %s6154_s17 = sadd.s32 4294967295, %s6056_s16   ;;  %s4636_s18 = sadd.s32 4294967294, %s6056_s16   ;;  %s6056_s16 = sphi %s6139_s16, %s8461_s16   ;;  %s6052_s15 = sphi %s6137_s15, %s8460_s15   ;;  %s6048_s14 = sphi %s6135_s14, %s8459_s14   ;;  %s6044_s13 = sphi %s6133_s13, %s8458_s13  }
   0x6   : > { %s6158_s19 = sadd.s32 1, %s6056_s16   ;;  %s245_s20 = sadd.s32 1, %s6052_s15 }
   0x7   : > { %s242_s21 = ssub.s32 %s6056_s16, %s6158_s19  ;;  %p255_p0 = scmp.ne.s32.totalorder %s6052_s15, %s6048_s14 }
   0x8   : > { %p243_p1 = scmp.eq.s32.totalorder %s242_s21, 0  ;;  %p256_p2 = scmp.eq.s32.totalorder %s6154_s17, 1 }
   0x9   : > { %p261_p3 = scmp.ne.s32.totalorder %s6048_s14, %s6044_s13  ;;  %p262_p4 = scmp.eq.s32.totalorder %s4636_s18, 1 }
   0xa   : > { %s6169_s22 = scalar_select %p243_p1, %s6052_s15, %s245_s20  }
   0xb   : > { %p6171_p5 = por %p256_p2, %p255_p0  ;;  %p6175_p6 = por %p262_p4, %p261_p3 }
   0xc   : > { %p4639_p7 = scmp.ge.s32.totalorder %s6056_s16, 1  ;;  %p315_p8 = scmp.lt.s32.totalorder %s6056_s16, 3 }
   0xe   : > { %p316_p9 = pnand %p4639_p7, %p315_p8 }
  0x10   : > { %319 = sbr.rel (%p316_p9) target bundleno = 1860 (0x744), region = 60 }
  0x15   : > { %vm423_vm0 = vcmask 1040384   ;;  %p352_p10 = scmp.lt.s32.totalorder %s6154_s17, 1  ;;  %v6058_v0 = vmov 0.0   ;;  %vm589_vm1 = vcmask 1046528   ;;  %s8358_s0 = sld [smem:[#allocation13_spill]]  ;;  %vm670_vm2 = vcmask 1045504  }
  0x16   : > { %v6182_v1 = vrot.slane %v6058_v0, 7  ;;  %s6059_s30 = smov 3   ;;  %s6060_s11 = smov 18   ;;  %vm8341_vm3 = vcmask 1044480   ;;  %vm8342_vm4 = vcmask 23552   ;;  %vm1564_vm5 = vcmask 48128  }
  0x17   : > { %s353_s25 = scalar_select %p352_p10, %s6154_s17, 1  ;;  %vm1597_vm6 = vcmask 72704   ;;  %vm1630_vm7 = vcmask 97280   ;;  %vm1663_vm8 = vcmask 121856   ;;  %vm1696_vm9 = vcmask 146432  }
  0x18   : > { %v6187_v2 = vsel %vm423_vm0, 0.0, %v6182_v1  ;;  %v6191_v3 = vsel %vm423_vm0, %v6182_v1, 0.0  ;;  %v591_v4 = vrot.slane %v6182_v1, 1  ;;  %v672_v8 = vrot.slane %v6182_v1, 2  ;;  %s8326_s12 = smov 9   ;;  %s6062_s18 = smov 6  }
  0x19   : > { %v8330_v5 = vrot.slane %v6187_v2, 1  ;;  %v8331_v6 = vrot.slane %v6191_v3, 1  ;;  %s5018_s26 = sshll.u32 %s353_s25, 8  ;;  %v8328_v7 = vrot.slane %v6187_v2, 2  ;;  %v8329_v9 = vrot.slane %v6191_v3, 2  ;;  %s6063_s20 = smov 15  }
  0x1a   : > { %s8324_s21 = smov 12   ;;  %s6065_s25 = smov 21   ;;  %vm1729_vm10 = vcmask 171008   ;;  %vm1762_vm11 = vcmask 195584   ;;  %vm1830_vm12 = vcmask 220160   ;;  %vm8346_vm13 = vcmask 1041409  }
  0x1b   : > { %s6202_s29 = scalar_lea.vmem %s8358_s0, %s5018_s26  ;;  %v592_v10 = vsel %vm589_vm1, %v8330_v5, %v591_v4  ;;  %v594_v11 = vsel %vm589_vm1, %v591_v4, %v8331_v6  ;;  %v673_v21 = vsel %vm670_vm2, %v8328_v7, %v672_v8  ;;  %v675_v24 = vsel %vm670_vm2, %v672_v8, %v8329_v9  ;;  %s6066_s26 = smov 24  }
  0x1c   : > { %v360_v12 = vld [vmem:[%s6202_s29 + $0x10] sm:$0xff]  ;;  %v361_v13 = vld [vmem:[%s6202_s29 + $0x18] sm:$0xff]  ;;  %v358_v14 = vld [vmem:[%s6202_s29] sm:$0xff]  ;;  %v6213_v15 = vpack.i.bf16 %v594_v11, %v592_v10  ;;  %v6248_v37 = vpack.i.bf16 %v675_v24, %v673_v21  ;;  %s8361_s27 = smov 9   ;;  %s8362_s28 = smov 12   ;;  %vm8345_vm14 = vcmask 1042434  }
  0x1d   : > { %v429_v16 = vrot.slane %v360_v12, 7  ;;  %v430_v17 = vrot.slane %v361_v13, 7  ;;  %v359_v18 = vld [vmem:[%s6202_s29 + $0x8] sm:$0xff]  ;;  %v426_v19 = vrot.slane %v358_v14, 7  ;;  %v362_v55 = vld [vmem:[%s6202_s29 + $0x20] sm:$0xff]  ;;  %v365_v21 = vld [vmem:[%s6202_s29 + $0x38] sm:$0xff] }
  0x1e   : > { %v427_v20 = vrot.slane %v359_v18, 7  ;;  %5124 = vrot.lane.b32.xlu0 %v6213_v15, %s6059_s30  ;;  %8359 = vst [vmem:[#allocation5_spill] sm:$0xff] %v6248_v37  ;;  %v363_v56 = vld [vmem:[%s6202_s29 + $0x28] sm:$0xff]  ;;  %v432_v58 = vrot.slane %v362_v55, 7  ;;  %vm8343_vm15 = vcmask 1043459  }
  0x1f   : > { %v6222_v22 = vsel %vm423_vm0, %v429_v16, %v430_v17  ;;  %v6225_v23 = vsel %vm423_vm0, 0.0, %v429_v16  ;;  %v542_v25 = vsel %vm423_vm0, %v430_v17, 0.0  ;;  %v6237_v28 = vsel %vm423_vm0, 0.0, %v426_v19 }
  0x20   : > { %v5138_v26 = vpack.i.bf16 %v6222_v22, %v6225_v23  ;;  %v6234_v27 = vsel %vm423_vm0, %v426_v19, %v427_v20  ;;  %v541_v29 = vsel %vm423_vm0, %v427_v20, 0.0  ;;  %v676_v31 = vrot.slane %v6237_v28, 2  ;;  %v364_v20 = vld [vmem:[%s6202_s29 + $0x30] sm:$0xff] }
  0x21   : > { %v5133_v30 = vpack.i.bf16 %v6234_v27, %v6237_v28  ;;  %v677_v32 = vrot.slane %v6234_v27, 2  ;;  %v679_v33 = vrot.slane %v541_v29, 2  ;;  %v595_v34 = vrot.slane %v6237_v28, 1 }
  0x22   : > { %5139 = vrot.lane.b32.xlu2 %v5138_v26, %s6060_s11  ;;  %v596_v35 = vrot.slane %v6234_v27, 1  ;;  %v598_v36 = vrot.slane %v541_v29, 1  ;;  %v600_v40 = vrot.slane %v6225_v23, 1  ;;  %v601_v43 = vrot.slane %v6222_v22, 1 }
  0x23   : > { %5134 = vrot.lane.b32.xlu1 %v5133_v30, %s8326_s12  ;;  %v678_v38 = vsel %vm670_vm2, %v676_v31, %v677_v32  ;;  %v680_v39 = vsel %vm670_vm2, %v677_v32, %v679_v33  ;;  %v603_v44 = vrot.slane %v542_v25, 1  ;;  %v681_v47 = vrot.slane %v6225_v23, 2 }
  0x24   : > { %v597_v41 = vsel %vm589_vm1, %v595_v34, %v596_v35  ;;  %v599_v42 = vsel %vm589_vm1, %v596_v35, %v598_v36  ;;  %v5148_v45 = vpack.i.bf16 %v680_v39, %v678_v38  ;;  %v602_v48 = vsel %vm589_vm1, %v600_v40, %v601_v43 }
  0x25   : > { %v5143_v46 = vpack.i.bf16 %v599_v42, %v597_v41  ;;  %v604_v49 = vsel %vm589_vm1, %v601_v43, %v603_v44  ;;  %v682_v50 = vrot.slane %v6222_v22, 2  ;;  %v684_v51 = vrot.slane %v542_v25, 2 }
  0x26   : > { %5129 = vrot.lane.b32.xlu0 %v6248_v37, %s6062_s18  ;;  %v5153_v52 = vpack.i.bf16 %v604_v49, %v602_v48  ;;  %v433_v59 = vrot.slane %v363_v56, 7  ;;  %v6275_v61 = vsel %vm423_vm0, 0.0, %v432_v58  ;;  %v435_v24 = vrot.slane %v364_v20, 7 }
  0x27   : > { %v683_v53 = vsel %vm670_vm2, %v681_v47, %v682_v50  ;;  %v685_v54 = vsel %vm670_vm2, %v682_v50, %v684_v51  ;;  %v605_v63 = vrot.slane %v6275_v61, 1  ;;  %v686_v11 = vrot.slane %v6275_v61, 2 }
  0x28   : > { %v5158_v57 = vpack.i.bf16 %v685_v54, %v683_v53  ;;  %v6272_v60 = vsel %vm423_vm0, %v432_v58, %v433_v59  ;;  %v543_v62 = vsel %vm423_vm0, %v433_v59, 0.0  ;;  %v436_v25 = vrot.slane %v365_v21, 7 }
  0x29   : > { %v606_v0 = vrot.slane %v6272_v60, 1  ;;  %v608_v4 = vrot.slane %v543_v62, 1  ;;  %v687_v12 = vrot.slane %v6272_v60, 2  ;;  %v689_v13 = vrot.slane %v543_v62, 2 }
  0x2a   : > { %5149 = vrot.lane.b32.xlu2 %v5148_v45, %s6063_s20  ;;  %v5188_v16 = vpack.i.bf16 %v6272_v60, %v6275_v61  ;;  %v6303_v29 = vsel %vm423_vm0, 0.0, %v435_v24  ;;  %v544_v30 = vsel %vm423_vm0, %v436_v25, 0.0 }
  0x2b   : > { %5144 = vrot.lane.b32.xlu1 %v5143_v46, %s8324_s21  ;;  %v607_v8 = vsel %vm589_vm1, %v605_v63, %v606_v0  ;;  %v609_v10 = vsel %vm589_vm1, %v606_v0, %v608_v4  ;;  %v688_v17 = vsel %vm670_vm2, %v686_v11, %v687_v12  ;;  %v690_v18 = vsel %vm670_vm2, %v687_v12, %v689_v13  ;;  %v368_v63 = vld [vmem:[%s6202_s29 + $0x50] sm:$0xff]  ;;  %v369_v0 = vld [vmem:[%s6202_s29 + $0x58] sm:$0xff] }
  0x2c   : > { %v5193_v14 = vpack.i.bf16 %v609_v10, %v607_v8  ;;  %v5198_v19 = vpack.i.bf16 %v690_v18, %v688_v17  ;;  %v691_v31 = vrot.slane %v6303_v29, 2  ;;  %v694_v33 = vrot.slane %v544_v30, 2  ;;  %v372_v18 = vld [vmem:[%s6202_s29 + $0x70] sm:$0xff] }
  0x2d   : > { %v610_v34 = vrot.slane %v6303_v29, 1  ;;  %v613_v36 = vrot.slane %v544_v30, 1  ;;  %v441_v11 = vrot.slane %v368_v63, 7  ;;  %v442_v12 = vrot.slane %v369_v0, 7 }
  0x2e   : > { %5154 = vrot.lane.b32.xlu0 %v5153_v52, %s6065_s25  ;;  %v6067_v63 = vmov 65535  }
  0x2f   : > { %v546_v17 = vsel %vm423_vm0, %v442_v12, 0.0  ;;  %v1880_v0 = vsel %vm8341_vm3, 4294967295, %v6067_v63 }
  0x32   : > { %5164 = vrot.lane.b32.xlu2 %v5143_v46, %s6059_s30  ;;  %v367_v46 = vld [vmem:[%s6202_s29 + $0x48] sm:$0xff] }
  0x33   : > { %5159 = vrot.lane.b32.xlu1 %v5158_v57, %s6066_s26  ;;  %v439_v48 = vrot.slane %v367_v46, 7 }
  0x35   : > { %v545_v49 = vsel %vm423_vm0, %v439_v48, 0.0 }
  0x36   : > { %5169 = vrot.lane.b32.xlu0 %v5148_v45, %s6062_s18  ;;  %v366_v45 = vld [vmem:[%s6202_s29 + $0x40] sm:$0xff]  ;;  %v618_v54 = vrot.slane %v545_v49, 1  ;;  %v699_v62 = vrot.slane %v545_v49, 2 }
  0x37   : > { %v438_v47 = vrot.slane %v366_v45, 7 }
  0x39   : > { %v6328_v50 = vsel %vm423_vm0, %v438_v47, %v439_v48  ;;  %v6331_v51 = vsel %vm423_vm0, 0.0, %v438_v47  ;;  %v375_v47 = vld [vmem:[%s6202_s29 + $0x88] sm:$0xff] }
  0x3a   : > { %5179 = vrot.lane.b32.xlu2 %v5153_v52, %s8324_s21  ;;  %v616_v53 = vrot.slane %v6328_v50, 1  ;;  %v5268_v55 = vpack.i.bf16 %v6328_v50, %v6331_v51  ;;  %v696_v58 = vrot.slane %v6331_v51, 2  ;;  %v697_v59 = vrot.slane %v6328_v50, 2 }
  0x3b   : > { %5174 = vrot.lane.b32.xlu1 %v5138_v26, %s8326_s12  ;;  %v6300_v26 = vsel %vm423_vm0, %v435_v24, %v436_v25  ;;  %v623_v24 = vrot.slane %v546_v17, 1  ;;  %v447_v25 = vrot.slane %v372_v18, 7 }
  0x3c   : > { %v692_v32 = vrot.slane %v6300_v26, 2  ;;  %v611_v35 = vrot.slane %v6300_v26, 1  ;;  %v5228_v38 = vpack.i.bf16 %v6300_v26, %v6303_v29  ;;  %v698_v8 = vsel %vm670_vm2, %v696_v58, %v697_v59 }
  0x3d   : > { %v700_v10 = vsel %vm670_vm2, %v697_v59, %v699_v62  ;;  %v451_v58 = vrot.slane %v375_v47, 7 }
  0x3e   : > { %5184 = vrot.lane.b32.xlu0 %v5158_v57, %s6063_s20  ;;  %v693_v39 = vsel %vm670_vm2, %v691_v31, %v692_v32  ;;  %v695_v40 = vsel %vm670_vm2, %v692_v32, %v694_v33  ;;  %v612_v41 = vsel %vm589_vm1, %v610_v34, %v611_v35  ;;  %v614_v42 = vsel %vm589_vm1, %v611_v35, %v613_v36 }
  0x3f   : > { %v5238_v43 = vpack.i.bf16 %v695_v40, %v693_v39  ;;  %v5233_v44 = vpack.i.bf16 %v614_v42, %v612_v41  ;;  %v6353_v13 = vpack.i.bf16 %v700_v10, %v698_v8  ;;  %v704_v35 = vrot.slane %v546_v17, 2  ;;  %v374_v42 = vld [vmem:[%s6202_s29 + $0x80] sm:$0xff] }
  0x42   : > { %5194 = vrot.lane.b32.xlu2 %v5193_v14, %s6065_s25 }
  0x43   : > { %5189 = vrot.lane.b32.xlu1 %v5188_v16, %s6060_s11 }
  0x46   : > { %5199 = vrot.lane.b32.xlu0 %v5198_v19, %s6066_s26 }
  0x4a   : > { %5209 = vrot.lane.b32.xlu2 %v5158_v57, %s6062_s18  ;;  %v619_v57 = vsel %vm589_vm1, %v616_v53, %v618_v54 }
  0x4b   : > { %5204 = vrot.lane.b32.xlu1 %v5153_v52, %s6059_s30  ;;  %v615_v52 = vrot.slane %v6331_v51, 1 }
  0x4d   : > { %v617_v56 = vsel %vm589_vm1, %v615_v52, %v616_v53 }
  0x4e   : > { %5214 = vrot.lane.b32.xlu0 %v5188_v16, %s8326_s12  ;;  %v6347_v4 = vpack.i.bf16 %v619_v57, %v617_v56  ;;  %v6359_v16 = vsel %vm423_vm0, 0.0, %v441_v11  ;;  %v4648_v56 = vld [vmem:[%s8314_s1 + $0x8] sm:$0xf]  ;;  %v5020_v57 = vld [vmem:[%s8314_s1 + $0x8] sm:$0x30] }
  0x4f   : > { %v620_v20 = vrot.slane %v6359_v16, 1  ;;  %v701_v33 = vrot.slane %v6359_v16, 2  ;;  %v4649_v59 = vor.u32 %v5020_v57, %v4648_v56 }
  0x52   : > { %5224 = vrot.lane.b32.xlu2 %v5198_v19, %s6063_s20 }
  0x53   : > { %5219 = vrot.lane.b32.xlu1 %v5193_v14, %s8324_s21 }
  0x56   : > { %5229 = vrot.lane.b32.xlu0 %v5228_v38, %s6060_s11 }
  0x5a   : > { %5239 = vrot.lane.b32.xlu2 %v5238_v43, %s6066_s26 }
  0x5b   : > { %5234 = vrot.lane.b32.xlu1 %v5233_v44, %s6065_s25 }
  0x5e   : > { %5244 = vrot.lane.b32.xlu0 %v5193_v14, %s6059_s30  ;;  %v6356_v14 = vsel %vm423_vm0, %v441_v11, %v442_v12  ;;  %v1881_v12 = vsel %vm670_vm2, %v1880_v0, 0 }
  0x5f   : > { %v621_v21 = vrot.slane %v6356_v14, 1  ;;  %v702_v34 = vrot.slane %v6356_v14, 2  ;;  %v6400_v54 = vpack.i.bf16 %v6356_v14, %v6359_v16 }
  0x61   : > { %v622_v31 = vsel %vm589_vm1, %v620_v20, %v621_v21  ;;  %v624_v32 = vsel %vm589_vm1, %v621_v21, %v623_v24  ;;  %v6425_v20 = vsel %vm8341_vm3, %v6187_v2, 0.0  ;;  %vm8344_vm3 = vcmask 1044484  }
  0x62   : > { %5254 = vrot.lane.b32.xlu2 %v5228_v38, %s8326_s12  ;;  %v6380_v38 = vsel %vm423_vm0, 0.0, %v447_v25  ;;  %v6386_v41 = vpack.i.bf16 %v624_v32, %v622_v31  ;;  %8360 = vst [vmem:[#allocation6_spill] sm:$0xff] %v6425_v20  ;;  %v377_v31 = vld [vmem:[%s6202_s29 + $0x98] sm:$0xff] }
  0x63   : > { %5249 = vrot.lane.b32.xlu1 %v5198_v19, %s6062_s18  ;;  %v373_v19 = vld [vmem:[%s6202_s29 + $0x78] sm:$0xff]  ;;  %v711_v45 = vrot.slane %v6380_v38, 2  ;;  %v630_v49 = vrot.slane %v6380_v38, 1  ;;  %3773 = vst [vmem:[#allocation1] ss:$2 sm:$0xff] %v6425_v20  ;;  %v454_v47 = vrot.slane %v377_v31, 7 }
  0x64   : > { %v448_v30 = vrot.slane %v373_v19, 7  ;;  %v1883_v19 = vand.u32 %v4649_v59, %v1881_v12 }
  0x65   : > { %v550_v59 = vsel %vm423_vm0, %v454_v47, 0.0 }
  0x66   : > { %5259 = vrot.lane.b32.xlu0 %v5233_v44, %s8324_s21  ;;  %v6377_v36 = vsel %vm423_vm0, %v447_v25, %v448_v30  ;;  %v548_v39 = vsel %vm423_vm0, %v448_v30, 0.0  ;;  %v549_v25 = vsel %vm423_vm0, %v451_v58, 0.0  ;;  %v376_v30 = vld [vmem:[%s6202_s29 + $0x90] sm:$0xff]  ;;  %1891 = vmatpush.bf16.msra.mxu0 %v1883_v19 }
  0x67   : > { %v712_v46 = vrot.slane %v6377_v36, 2  ;;  %v714_v48 = vrot.slane %v548_v39, 2  ;;  %v631_v52 = vrot.slane %v6377_v36, 1  ;;  %v633_v53 = vrot.slane %v548_v39, 1  ;;  %5060 = vmatpush.bf16.msra.mxu2 %v1883_v19  ;;  %5061 = vmatpush.bf16.msra.mxu3 %v1883_v19 }
  0x69   : > { %v713_v8 = vsel %vm670_vm2, %v711_v45, %v712_v46  ;;  %v715_v10 = vsel %vm670_vm2, %v712_v46, %v714_v48  ;;  %v632_v11 = vsel %vm589_vm1, %v630_v49, %v631_v52  ;;  %v634_v17 = vsel %vm589_vm1, %v631_v52, %v633_v53 }
  0x6a   : > { %5269 = vrot.lane.b32.xlu2 %v5268_v55, %s6060_s11  ;;  %v6436_v32 = vpack.i.bf16 %v715_v10, %v713_v8  ;;  %v638_v45 = vrot.slane %v549_v25, 1  ;;  %v453_v46 = vrot.slane %v376_v30, 7 }
  0x6b   : > { %5264 = vrot.lane.b32.xlu1 %v5238_v43, %s6063_s20 }
  0x6c   : > { %v6464_v57 = vsel %vm423_vm0, %v453_v46, %v454_v47  ;;  %v371_v47 = vld [vmem:[%s6202_s29 + $0x68] sm:$0xff] }
  0x6d   : > { %v641_v10 = vrot.slane %v6464_v57, 1 }
  0x6e   : > { %5274 = vrot.lane.b32.xlu0 %v6347_v4, %s6065_s25 }
  0x72   : > { %5284 = vrot.lane.b32.xlu2 %v5233_v44, %s6059_s30  ;;  %v705_v44 = vsel %vm670_vm2, %v702_v34, %v704_v35  ;;  %v5019_v35 = vld [vmem:[%s8314_s1] sm:$0xff] }
  0x73   : > { %5279 = vrot.lane.b32.xlu1 %v6353_v13, %s6066_s26  ;;  %1892 = vmatpush.bf16.msra.mxu0 %v5019_v35 }
  0x74   : > { %5062 = vmatpush.bf16.msra.mxu2 %v5019_v35  ;;  %5063 = vmatpush.bf16.msra.mxu3 %v5019_v35 }
  0x76   : > { %5289 = vrot.lane.b32.xlu0 %v5238_v43, %s6062_s18  ;;  %v703_v43 = vsel %vm670_vm2, %v701_v33, %v702_v34  ;;  %v6438_v33 = vpack.i.bf16 %v634_v17, %v632_v11  ;;  %v643_v11 = vrot.slane %v550_v59, 1 }
  0x77   : > { %v6408_v62 = vpack.i.bf16 %v705_v44, %v703_v43 }
  0x7a   : > { %5299 = vrot.lane.b32.xlu2 %v6347_v4, %s8324_s21  ;;  %s6077_s21 = smov 112  }
  0x7b   : > { %5294 = vrot.lane.b32.xlu1 %v5268_v55, %s8326_s12  ;;  %v450_v55 = vrot.slane %v374_v42, 7  ;;  %v719_v42 = vrot.slane %v549_v25, 2  ;;  %v644_v25 = vsel %vm589_vm1, %v641_v10, %v643_v11  ;;  %s6074_s12 = smov 56  }
  0x7c   : > { %v6384_v40 = vpop.permute.xlu2 %5139 }
  0x7d   : > { %v6421_v18 = vsel %vm423_vm0, 0.0, %v450_v55  ;;  %v6430_v24 = vsel %vm423_vm0, %v450_v55, %v451_v58  ;;  %v6467_v58 = vsel %vm423_vm0, 0.0, %v453_v46  ;;  %v370_v46 = vld [vmem:[%s6202_s29 + $0x60] sm:$0xff] }
  0x7e   : > { %5304 = vrot.lane.b32.xlu0 %v6353_v13, %s6063_s20  ;;  %v716_v34 = vrot.slane %v6421_v18, 2  ;;  %v717_v39 = vrot.slane %v6430_v24, 2  ;;  %v635_v43 = vrot.slane %v6421_v18, 1  ;;  %v636_v44 = vrot.slane %v6430_v24, 1 }
  0x7f   : > { %v6455_v48 = vpack.i.bf16 %v6430_v24, %v6421_v18  ;;  %v640_v8 = vrot.slane %v6467_v58, 1  ;;  %v6484_v17 = vpack.i.bf16 %v6464_v57, %v6467_v58  ;;  %v721_v35 = vrot.slane %v6467_v58, 2 }
  0x80   : > { %v718_v49 = vsel %vm670_vm2, %v716_v34, %v717_v39  ;;  %v720_v52 = vsel %vm670_vm2, %v717_v39, %v719_v42  ;;  %v637_v53 = vsel %vm589_vm1, %v635_v43, %v636_v44  ;;  %v639_v56 = vsel %vm589_vm1, %v636_v44, %v638_v45 }
  0x81   : > { %v6470_v63 = vpack.i.bf16 %v720_v52, %v718_v49  ;;  %v6474_v0 = vpack.i.bf16 %v639_v56, %v637_v53  ;;  %v642_v19 = vsel %vm589_vm1, %v640_v8, %v641_v10  ;;  %v722_v39 = vrot.slane %v6464_v57, 2 }
  0x82   : > { %5314 = vrot.lane.b32.xlu2 %v6386_v41, %s6065_s25  ;;  %v6490_v34 = vpack.i.bf16 %v644_v25, %v642_v19  ;;  %v724_v42 = vrot.slane %v550_v59, 2 }
  0x83   : > { %5309 = vrot.lane.b32.xlu1 %v6400_v54, %s6060_s11  ;;  %v723_v53 = vsel %vm670_vm2, %v721_v35, %v722_v39  ;;  %v444_v35 = vrot.slane %v370_v46, 7 }
  0x84   : > { %v6427_v21 = vpop.permute.xlu2 %5149  ;;  %v725_v56 = vsel %vm670_vm2, %v722_v39, %v724_v42 }
  0x85   : > { %v5152_v7 = vunpack.i.h.bf16 %v6427_v21 }
  0x86   : > { %5319 = vrot.lane.b32.xlu0 %v6408_v62, %s6066_s26 }
  0x8a   : > { %5329 = vrot.lane.b32.xlu2 %v6436_v32, %s6062_s18 }
  0x8b   : > { %5324 = vrot.lane.b32.xlu1 %v6438_v33, %s6059_s30 }
  0x8c   : > { %v6460_v55 = vpop.permute.xlu2 %5164 }
  0x8e   : > { %5334 = vrot.lane.b32.xlu0 %v6455_v48, %s8361_s27 }
  0x90   : > { %v5125_v12 = vpop.permute.xlu0 %5124 }
  0x91   : > { %v5127_v43 = vunpack.i.h.bf16 %v5125_v12  ;;  %v5126_v44 = vunpack.i.l.bf16 %v5125_v12 }
  0x92   : > { %5344 = vrot.lane.b32.xlu2 %v6470_v63, %s6063_s20 }
  0x93   : > { %5339 = vrot.lane.b32.xlu1 %v6474_v0, %s8362_s28  ;;  %v1533_v59 = vsel %vm8342_vm4, %v6182_v1, %v5127_v43  ;;  %v1532_v8 = vsel %vm8342_vm4, %v6187_v2, %v5126_v44 }
  0x94   : > { %v6488_v30 = vpop.permute.xlu2 %5179 }
  0x95   : > { %v5135_v31 = vpop.permute.xlu1 %5134 }
  0x96   : > { %5349 = vrot.lane.b32.xlu0 %v6484_v17, %s6060_s11  ;;  %v5137_v10 = vunpack.i.h.bf16 %v5135_v31  ;;  %v5136_v11 = vunpack.i.l.bf16 %v5135_v31 }
  0x98   : > { %v5130_v45 = vpop.permute.xlu0 %5129 }
  0x99   : > { %v5132_v49 = vunpack.i.h.bf16 %v5130_v45  ;;  %v5131_v52 = vunpack.i.l.bf16 %v5130_v45  ;;  %v445_v45 = vrot.slane %v371_v47, 7 }
  0x9a   : > { %5359 = vrot.lane.b32.xlu2 %v6490_v34, %s6065_s25 }
  0x9b   : > { %5354 = vrot.lane.b32.xlu1 %v6347_v4, %s6059_s30  ;;  %v1565_v12 = vsel %vm1564_vm5, %v1532_v8, %v5131_v52  ;;  %v1566_v19 = vsel %vm1564_vm5, %v1533_v59, %v5132_v49  ;;  %v5151_v4 = vunpack.i.l.bf16 %v6427_v21  ;;  %v6518_v49 = vpack.i.bf16 %v725_v56, %v723_v53 }
  0x9c   : > { %v6510_v25 = vpop.permute.xlu2 %5194  ;;  %v1598_v39 = vsel %vm1597_vm6, %v1565_v12, %v5136_v11  ;;  %v1599_v42 = vsel %vm1597_vm6, %v1566_v19, %v5137_v10  ;;  %v547_v46 = vsel %vm423_vm0, %v445_v45, 0.0  ;;  %v6524_v59 = vsel %vm423_vm0, %v444_v35, %v445_v45 }
  0x9d   : > { %v5145_v43 = vpop.permute.xlu1 %5144  ;;  %8363 = vst [vmem:[#allocation7_spill] sm:$0xff] %v6524_v59  ;;  %v6527_v8 = vsel %vm423_vm0, 0.0, %v444_v35  ;;  %v626_v11 = vrot.slane %v6524_v59, 1  ;;  %v5142_v35 = vunpack.i.h.bf16 %v6384_v40  ;;  %v5141_v45 = vunpack.i.l.bf16 %v6384_v40 }
  0x9e   : > { %v5147_v44 = vunpack.i.h.bf16 %v5145_v43  ;;  %v5146_v31 = vunpack.i.l.bf16 %v5145_v43  ;;  %5364 = vrot.lane.b32.xlu0 %v6353_v13, %s6062_s18  ;;  %8364 = vst [vmem:[#allocation8_spill] sm:$0xff] %v6527_v8  ;;  %v625_v21 = vrot.slane %v6527_v8, 1  ;;  %v628_v13 = vrot.slane %v547_v46, 1 }
  0xa0   : > { %v1632_v47 = vsel %vm1630_vm7, %v1599_v42, %v5147_v44  ;;  %v1631_v52 = vsel %vm1630_vm7, %v1598_v39, %v5146_v31  ;;  %v5155_v10 = vpop.permute.xlu0 %5154  ;;  %v6543_v42 = vpack.i.bf16 %v6524_v59, %v6527_v8 }
  0xa1   : > { %v1665_v53 = vsel %vm1663_vm8, %v1632_v47, %v5152_v7  ;;  %v1664_v56 = vsel %vm1663_vm8, %v1631_v52, %v5151_v4  ;;  %v5157_v12 = vunpack.i.h.bf16 %v5155_v10  ;;  %v5156_v19 = vunpack.i.l.bf16 %v5155_v10 }
  0xa2   : > { %5374 = vrot.lane.b32.xlu2 %v6400_v54, %s8361_s27  ;;  %v627_v7 = vsel %vm589_vm1, %v625_v21, %v626_v11  ;;  %v1697_v31 = vsel %vm1696_vm9, %v1664_v56, %v5141_v45  ;;  %v1698_v4 = vsel %vm1696_vm9, %v1665_v53, %v5142_v35  ;;  %v629_v52 = vsel %vm589_vm1, %v626_v11, %v628_v13 }
  0xa3   : > { %5369 = vrot.lane.b32.xlu1 %v6518_v49, %s6066_s26  ;;  %v1730_v40 = vsel %vm1729_vm10, %v1697_v31, %v5156_v19  ;;  %v1731_v47 = vsel %vm1729_vm10, %v1698_v4, %v5157_v12  ;;  %v706_v10 = vrot.slane %v6527_v8, 2  ;;  %v709_v56 = vrot.slane %v547_v46, 2 }
  0xa4   : > { %v6539_v39 = vpop.permute.xlu2 %5209  ;;  %v5167_v53 = vunpack.i.h.bf16 %v6460_v55  ;;  %v5166_v35 = vunpack.i.l.bf16 %v6460_v55  ;;  %v6564_v11 = vpack.i.bf16 %v629_v52, %v627_v7  ;;  %v5182_v52 = vunpack.i.h.bf16 %v6488_v30 }
  0xa5   : > { %v5160_v54 = vpop.permute.xlu1 %5159 }
  0xa6   : > { %v5162_v43 = vunpack.i.h.bf16 %v5160_v54  ;;  %v5161_v44 = vunpack.i.l.bf16 %v5160_v54  ;;  %5379 = vrot.lane.b32.xlu0 %v6386_v41, %s8362_s28  ;;  %v707_v54 = vrot.slane %v6524_v59, 2  ;;  %v1535_v55 = vsel %vm8342_vm4, %v6234_v27, %v5167_v53 }
  0xa7   : > { %v5181_v27 = vunpack.i.l.bf16 %v6488_v30 }
  0xa8   : > { %v1763_v9 = vsel %vm1762_vm11, %v1730_v40, %v5161_v44  ;;  %v1764_v21 = vsel %vm1762_vm11, %v1731_v47, %v5162_v43  ;;  %v5170_v45 = vpop.permute.xlu0 %5169  ;;  %v708_v46 = vsel %vm670_vm2, %v706_v10, %v707_v54  ;;  %v1534_v43 = vsel %vm8342_vm4, %v6237_v28, %v5166_v35  ;;  %v378_v28 = vld [vmem:[%s6202_s29 + $0xa0] sm:$0xff]  ;;  %v379_v10 = vld [vmem:[%s6202_s29 + $0xa8] sm:$0xff] }
  0xa9   : > { %v1795_v5 = vpack.c.bf16 %v1764_v21, %v1763_v9  ;;  %v5172_v13 = vunpack.i.h.bf16 %v5170_v45  ;;  %v5171_v12 = vunpack.i.l.bf16 %v5170_v45  ;;  %v710_v9 = vsel %vm670_vm2, %v707_v54, %v709_v56 }
  0xaa   : > { %5389 = vrot.lane.b32.xlu2 %v6543_v42, %s6060_s11  ;;  %v6576_v31 = vpack.i.bf16 %v710_v9, %v708_v46  ;;  %v456_v30 = vrot.slane %v378_v28, 7 }
  0xab   : > { %5384 = vrot.lane.b32.xlu1 %v6408_v62, %s6063_s20  ;;  %4650 = vmatmul.msk.bf16.vlgmr.msra.gmra.mxu0 %vm1830_vm12, %v1795_v5  ;;  %v1567_v4 = vsel %vm1564_vm5, %v1534_v43, %v5171_v12  ;;  %v1568_v40 = vsel %vm1564_vm5, %v1535_v55, %v5172_v13  ;;  %v457_v13 = vrot.slane %v379_v10, 7  ;;  %v380_v43 = vld [vmem:[%s6202_s29 + $0xb0] sm:$0xff] }
  0xac   : > { %v6566_v19 = vpop.permute.xlu2 %5224  ;;  %v6606_v10 = vsel %vm423_vm0, 0.0, %v456_v30 }
  0xad   : > { %v5175_v44 = vpop.permute.xlu1 %5174  ;;  %8365 = vst [vmem:[#allocation9_spill] sm:$0xff] %v6606_v10 }
  0xae   : > { %v5177_v5 = vunpack.i.h.bf16 %v5175_v44  ;;  %v5176_v7 = vunpack.i.l.bf16 %v5175_v44  ;;  %5394 = vrot.lane.b32.xlu0 %v6564_v11, %s6065_s25  ;;  %v381_v44 = vld [vmem:[%s6202_s29 + $0xb8] sm:$0xff] }
  0xb0   : > { %v5185_v47 = vpop.permute.xlu0 %5184  ;;  %v1601_v21 = vsel %vm1597_vm6, %v1568_v40, %v5177_v5  ;;  %v1600_v54 = vsel %vm1597_vm6, %v1567_v4, %v5176_v7  ;;  %v5197_v5 = vunpack.i.h.bf16 %v6510_v25  ;;  %v5196_v7 = vunpack.i.l.bf16 %v6510_v25 }
  0xb1   : > { %v5187_v56 = vunpack.i.h.bf16 %v5185_v47  ;;  %v5186_v53 = vunpack.i.l.bf16 %v5185_v47  ;;  %v1633_v12 = vsel %vm1630_vm7, %v1600_v54, %v5181_v27  ;;  %v1634_v46 = vsel %vm1630_vm7, %v1601_v21, %v5182_v52 }
  0xb2   : > { %5404 = vrot.lane.b32.xlu2 %v6474_v0, %s6059_s30  ;;  %v551_v52 = vsel %vm423_vm0, %v457_v13, 0.0  ;;  %v459_v21 = vrot.slane %v380_v43, 7  ;;  %v460_v54 = vrot.slane %v381_v44, 7 }
  0xb3   : > { %5399 = vrot.lane.b32.xlu1 %v6576_v31, %s6066_s26  ;;  %v1666_v4 = vsel %vm1663_vm8, %v1633_v12, %v5186_v53  ;;  %v1667_v40 = vsel %vm1663_vm8, %v1634_v46, %v5187_v56  ;;  %v6611_v56 = vsel %vm423_vm0, %v456_v30, %v457_v13  ;;  %v645_v53 = vrot.slane %v6606_v10, 1 }
  0xb4   : > { %v6590_v35 = vpop.permute.xlu2 %5239  ;;  %8366 = vst [vmem:[#allocation10_spill] sm:$0xff] %v6611_v56  ;;  %v726_v30 = vrot.slane %v6606_v10, 2  ;;  %v727_v13 = vrot.slane %v6611_v56, 2 }
  0xb5   : > { %v5190_v45 = vpop.permute.xlu1 %5189 }
  0xb6   : > { %v5192_v9 = vunpack.i.h.bf16 %v5190_v45  ;;  %v5191_v55 = vunpack.i.l.bf16 %v5190_v45  ;;  %5409 = vrot.lane.b32.xlu0 %v6470_v63, %s6062_s18 }
  0xb8   : > { %v1699_v47 = vsel %vm1696_vm9, %v1666_v4, %v5191_v55  ;;  %v1700_v27 = vsel %vm1696_vm9, %v1667_v40, %v5192_v9  ;;  %v5200_v28 = vpop.permute.xlu0 %5199  ;;  %v646_v9 = vrot.slane %v6611_v56, 1  ;;  %v648_v55 = vrot.slane %v551_v52, 1 }
  0xb9   : > { %v5202_v25 = vunpack.i.h.bf16 %v5200_v28  ;;  %v5201_v45 = vunpack.i.l.bf16 %v5200_v28  ;;  %v1732_v12 = vsel %vm1729_vm10, %v1699_v47, %v5196_v7  ;;  %v1733_v46 = vsel %vm1729_vm10, %v1700_v27, %v5197_v5 }
  0xba   : > { %5419 = vrot.lane.b32.xlu2 %v6490_v34, %s8362_s28  ;;  %v6626_v7 = vsel %vm423_vm0, %v459_v21, %v460_v54  ;;  %v6629_v5 = vsel %vm423_vm0, 0.0, %v459_v21  ;;  %v552_v47 = vsel %vm423_vm0, %v460_v54, 0.0  ;;  %v6637_v27 = vpack.i.bf16 %v6611_v56, %v6606_v10 }
  0xbb   : > { %5414 = vrot.lane.b32.xlu1 %v6484_v17, %s8361_s27  ;;  %v1765_v44 = vsel %vm1762_vm11, %v1732_v12, %v5201_v45  ;;  %v1766_v4 = vsel %vm1762_vm11, %v1733_v46, %v5202_v25  ;;  %v729_v17 = vrot.slane %v551_v52, 2  ;;  %v647_v25 = vsel %vm589_vm1, %v645_v53, %v646_v9 }
  0xbc   : > { %v6619_v43 = vpop.permute.xlu2 %5254  ;;  %v1796_v28 = vpack.c.bf16 %v1766_v4, %v1765_v44  ;;  %v649_v52 = vsel %vm589_vm1, %v646_v9, %v648_v55  ;;  %v650_v45 = vrot.slane %v6629_v5, 1  ;;  %v651_v21 = vrot.slane %v6626_v7, 1 }
  0xbd   : > { %v5205_v40 = vpop.permute.xlu1 %5204  ;;  %v728_v54 = vsel %vm670_vm2, %v726_v30, %v727_v13  ;;  %v730_v46 = vsel %vm670_vm2, %v727_v13, %v729_v17  ;;  %v653_v44 = vrot.slane %v552_v47, 1  ;;  %v6649_v53 = vpack.i.bf16 %v649_v52, %v647_v25 }
  0xbe   : > { %5424 = vrot.lane.b32.xlu0 %v6518_v49, %s6063_s20  ;;  %4651 = vmatmul.msk.bf16.gmra.mxu0 %vm1830_vm12, %v1796_v28  ;;  %v5207_v4 = vunpack.i.h.bf16 %v5205_v40  ;;  %v5206_v28 = vunpack.i.l.bf16 %v5205_v40  ;;  %v5212_v9 = vunpack.i.h.bf16 %v6539_v39  ;;  %v5211_v55 = vunpack.i.l.bf16 %v6539_v39 }
  0xbf   : > { %v6655_v30 = vpack.i.bf16 %v730_v46, %v728_v54  ;;  %v652_v13 = vsel %vm589_vm1, %v650_v45, %v651_v21  ;;  %v654_v40 = vsel %vm589_vm1, %v651_v21, %v653_v44  ;;  %v732_v20 = vrot.slane %v6626_v7, 2 }
  0xc0   : > { %v5215_v12 = vpop.permute.xlu0 %5214  ;;  %v734_v10 = vrot.slane %v552_v47, 2  ;;  %v1537_v25 = vsel %vm8342_vm4, %v6222_v22, %v5207_v4  ;;  %v1536_v39 = vsel %vm8342_vm4, %v6225_v23, %v5206_v28  ;;  %v5227_v45 = vunpack.i.h.bf16 %v6566_v19 }
  0xc1   : > { %v5217_v52 = vunpack.i.h.bf16 %v5215_v12  ;;  %v5216_v56 = vunpack.i.l.bf16 %v5215_v12  ;;  %v5226_v21 = vunpack.i.l.bf16 %v6566_v19  ;;  %v1569_v47 = vsel %vm1564_vm5, %v1536_v39, %v5211_v55 }
  0xc2   : > { %5434 = vrot.lane.b32.xlu2 %v6386_v41, %s6059_s30  ;;  %v731_v41 = vrot.slane %v6629_v5, 2  ;;  %v1570_v22 = vsel %vm1564_vm5, %v1537_v25, %v5212_v9  ;;  %v6671_v4 = vpack.i.bf16 %v654_v40, %v652_v13  ;;  %v735_v19 = vsel %vm670_vm2, %v732_v20, %v734_v10  ;;  %v383_v40 = vld [vmem:[%s6202_s29 + $0xc8] sm:$0xff] }
  0xc3   : > { %5429 = vrot.lane.b32.xlu1 %v6637_v27, %s6060_s11  ;;  %v1602_v23 = vsel %vm1597_vm6, %v1569_v47, %v5216_v56  ;;  %v1603_v12 = vsel %vm1597_vm6, %v1570_v22, %v5217_v52  ;;  %v382_v56 = vld [vmem:[%s6202_s29 + $0xc0] sm:$0xff]  ;;  %v5242_v25 = vunpack.i.h.bf16 %v6590_v35  ;;  %v5241_v52 = vunpack.i.l.bf16 %v6590_v35 }
  0xc4   : > { %v6653_v6 = vpop.permute.xlu2 %5269  ;;  %v733_v28 = vsel %vm670_vm2, %v731_v41, %v732_v20 }
  0xc5   : > { %v5220_v17 = vpop.permute.xlu1 %5219  ;;  %v6689_v47 = vpack.i.bf16 %v735_v19, %v733_v28 }
  0xc6   : > { %v5222_v54 = vunpack.i.h.bf16 %v5220_v17  ;;  %v5221_v46 = vunpack.i.l.bf16 %v5220_v17  ;;  %5439 = vrot.lane.b32.xlu0 %v6649_v53, %s6065_s25 }
  0xc8   : > { %v5230_v44 = vpop.permute.xlu0 %5229  ;;  %v1635_v17 = vsel %vm1630_vm7, %v1602_v23, %v5221_v46  ;;  %v1636_v55 = vsel %vm1630_vm7, %v1603_v12, %v5222_v54  ;;  %v463_v23 = vrot.slane %v383_v40, 7 }
  0xc9   : > { %v5232_v39 = vunpack.i.h.bf16 %v5230_v44  ;;  %v5231_v9 = vunpack.i.l.bf16 %v5230_v44  ;;  %v1668_v20 = vsel %vm1663_vm8, %v1635_v17, %v5226_v21  ;;  %v1669_v10 = vsel %vm1663_vm8, %v1636_v55, %v5227_v45 }
  0xca   : > { %5449 = vrot.lane.b32.xlu2 %v6655_v30, %s6066_s26  ;;  %v462_v44 = vrot.slane %v382_v56, 7  ;;  %v553_v19 = vsel %vm423_vm0, %v463_v23, 0.0 }
  0xcb   : > { %5444 = vrot.lane.b32.xlu1 %v6408_v62, %s6062_s18  ;;  %v1701_v22 = vsel %vm1696_vm9, %v1668_v20, %v5231_v9  ;;  %v1702_v62 = vsel %vm1696_vm9, %v1669_v10, %v5232_v39  ;;  %v739_v20 = vrot.slane %v553_v19, 2 }
  0xcc   : > { %v6683_v13 = vpop.permute.xlu2 %5284  ;;  %v6707_v55 = vsel %vm423_vm0, %v462_v44, %v463_v23  ;;  %v6710_v39 = vsel %vm423_vm0, 0.0, %v462_v44  ;;  %v384_v23 = vld [vmem:[%s6202_s29 + $0xd0] sm:$0xff] }
  0xcd   : > { %v5235_v41 = vpop.permute.xlu1 %5234  ;;  %8367 = vst [vmem:[#allocation11_spill] sm:$0xff] %v6707_v55  ;;  %v655_v56 = vrot.slane %v6710_v39, 1  ;;  %v656_v40 = vrot.slane %v6707_v55, 1 }
  0xce   : > { %v5237_v54 = vunpack.i.h.bf16 %v5235_v41  ;;  %v5236_v46 = vunpack.i.l.bf16 %v5235_v41  ;;  %5454 = vrot.lane.b32.xlu0 %v6671_v4, %s6059_s30  ;;  %8368 = vst [vmem:[#allocation12_spill] sm:$0xff] %v6710_v39  ;;  %v737_v41 = vrot.slane %v6707_v55, 2 }
  0xd0   : > { %v1734_v35 = vsel %vm1729_vm10, %v1701_v22, %v5236_v46  ;;  %v1735_v12 = vsel %vm1729_vm10, %v1702_v62, %v5237_v54  ;;  %v5245_v28 = vpop.permute.xlu0 %5244  ;;  %v6723_v46 = vpack.i.bf16 %v6707_v55, %v6710_v39  ;;  %v657_v22 = vsel %vm589_vm1, %v655_v56, %v656_v40 }
  0xd1   : > { %v1767_v21 = vsel %vm1762_vm11, %v1734_v35, %v5241_v52  ;;  %v1768_v45 = vsel %vm1762_vm11, %v1735_v12, %v5242_v25  ;;  %v658_v25 = vrot.slane %v553_v19, 1  ;;  %v5247_v10 = vunpack.i.h.bf16 %v5245_v28  ;;  %v385_v35 = vld [vmem:[%s6202_s29 + $0xd8] sm:$0xff] }
  0xd2   : > { %5464 = vrot.lane.b32.xlu2 %v6689_v47, %s6062_s18  ;;  %v1797_v17 = vpack.c.bf16 %v1768_v45, %v1767_v21  ;;  %v5246_v54 = vunpack.i.l.bf16 %v5245_v28  ;;  %v740_v45 = vsel %vm670_vm2, %v737_v41, %v739_v20 }
  0xd3   : > { %5459 = vrot.lane.b32.xlu1 %v6543_v42, %s8361_s27  ;;  %v736_v42 = vrot.slane %v6710_v39, 2  ;;  %v659_v62 = vsel %vm589_vm1, %v656_v40, %v658_v25  ;;  %v1539_v19 = vsel %vm8342_vm4, %v6272_v60, %v5247_v10  ;;  %v465_v25 = vrot.slane %v384_v23, 7 }
  0xd4   : > { %4652 = vmatmul.msk.bf16.gmra.mxu0 %vm1830_vm12, %v1797_v17  ;;  %v6713_v9 = vpop.permute.xlu2 %5299  ;;  %v1538_v17 = vsel %vm8342_vm4, %v6275_v61, %v5246_v54  ;;  %v6739_v56 = vpack.i.bf16 %v659_v62, %v657_v22  ;;  %v5257_v39 = vunpack.i.h.bf16 %v6619_v43  ;;  %v6753_v62 = vpack.i.bf16 %v6377_v36, %v6380_v38 }
  0xd5   : > { %v5250_v52 = vpop.permute.xlu1 %5249  ;;  %v738_v28 = vsel %vm670_vm2, %v736_v42, %v737_v41  ;;  %v5256_v42 = vunpack.i.l.bf16 %v6619_v43  ;;  %v5272_v23 = vunpack.i.h.bf16 %v6653_v6 }
  0xd6   : > { %5469 = vrot.lane.b32.xlu0 %v6564_v11, %s8362_s28  ;;  %v5252_v12 = vunpack.i.h.bf16 %v5250_v52  ;;  %v5251_v21 = vunpack.i.l.bf16 %v5250_v52  ;;  %v466_v52 = vrot.slane %v385_v35, 7  ;;  %v6745_v20 = vpack.i.bf16 %v740_v45, %v738_v28 }
  0xd7   : > { %v5271_v35 = vunpack.i.l.bf16 %v6653_v6 }
  0xd8   : > { %v5260_v44 = vpop.permute.xlu0 %5259  ;;  %v1572_v60 = vsel %vm1564_vm5, %v1539_v19, %v5252_v12  ;;  %v1571_v61 = vsel %vm1564_vm5, %v1538_v17, %v5251_v21  ;;  %v554_v43 = vsel %vm423_vm0, %v466_v52, 0.0  ;;  %v6759_v12 = vsel %vm423_vm0, %v465_v25, %v466_v52 }
  0xd9   : > { %v5262_v10 = vunpack.i.h.bf16 %v5260_v44  ;;  %v5261_v54 = vunpack.i.l.bf16 %v5260_v44  ;;  %v6762_v44 = vsel %vm423_vm0, 0.0, %v465_v25  ;;  %v1604_v21 = vsel %vm1597_vm6, %v1571_v61, %v5256_v42 }
  0xda   : > { %5479 = vrot.lane.b32.xlu2 %v6576_v31, %s6063_s20  ;;  %v1605_v28 = vsel %vm1597_vm6, %v1572_v60, %v5257_v39  ;;  %v660_v19 = vrot.slane %v6762_v44, 1  ;;  %v661_v17 = vrot.slane %v6759_v12, 1  ;;  %v663_v6 = vrot.slane %v554_v43, 1 }
  0xdb   : > { %5474 = vrot.lane.b32.xlu1 %v6723_v46, %s8361_s27  ;;  %v1638_v8 = vsel %vm1630_vm7, %v1605_v28, %v5262_v10  ;;  %v741_v59 = vrot.slane %v6762_v44, 2 }
  0xdc   : > { %v6741_v40 = vpop.permute.xlu2 %5314  ;;  %v662_v10 = vsel %vm589_vm1, %v660_v19, %v661_v17 }
  0xdd   : > { %v5265_v41 = vpop.permute.xlu1 %5264 }
  0xde   : > { %v5267_v55 = vunpack.i.h.bf16 %v5265_v41  ;;  %v5266_v22 = vunpack.i.l.bf16 %v5265_v41  ;;  %5484 = vrot.lane.b32.xlu0 %v6739_v56, %s8362_s28  ;;  %v1637_v41 = vsel %vm1630_vm7, %v1604_v21, %v5261_v54  ;;  %v6780_v54 = vpack.i.bf16 %v6759_v12, %v6762_v44 }
  0xe0   : > { %v5275_v45 = vpop.permute.xlu0 %5274  ;;  %v1670_v25 = vsel %vm1663_vm8, %v1637_v41, %v5266_v22  ;;  %v1671_v52 = vsel %vm1663_vm8, %v1638_v8, %v5267_v55  ;;  %v664_v41 = vsel %vm589_vm1, %v661_v17, %v663_v6 }
  0xe1   : > { %v5277_v42 = vunpack.i.h.bf16 %v5275_v45  ;;  %v5276_v61 = vunpack.i.l.bf16 %v5275_v45  ;;  %v1703_v21 = vsel %vm1696_vm9, %v1670_v25, %v5271_v35  ;;  %v1704_v22 = vsel %vm1696_vm9, %v1671_v52, %v5272_v23 }
  0xe2   : > { %5494 = vrot.lane.b32.xlu2 %v6745_v20, %s6063_s20  ;;  %v742_v35 = vrot.slane %v6759_v12, 2  ;;  %v744_v23 = vrot.slane %v554_v43, 2  ;;  %v5287_v25 = vunpack.i.h.bf16 %v6683_v13  ;;  %v5286_v52 = vunpack.i.l.bf16 %v6683_v13 }
  0xe3   : > { %5489 = vrot.lane.b32.xlu1 %v6753_v62, %s6060_s11  ;;  %v1736_v55 = vsel %vm1729_vm10, %v1703_v21, %v5276_v61  ;;  %v1737_v45 = vsel %vm1729_vm10, %v1704_v22, %v5277_v42  ;;  %v6801_v17 = vpack.i.bf16 %v664_v41, %v662_v10 }
  0xe4   : > { %v6776_v39 = vpop.permute.xlu2 %5329  ;;  %v743_v43 = vsel %vm670_vm2, %v741_v59, %v742_v35  ;;  %v745_v13 = vsel %vm670_vm2, %v742_v35, %v744_v23  ;;  %v1540_v22 = vsel %vm8342_vm4, %v6303_v29, %v5286_v52 }
  0xe5   : > { %v5280_v60 = vpop.permute.xlu1 %5279  ;;  %v6813_v10 = vpack.i.bf16 %v745_v13, %v743_v43  ;;  %v5316_v43 = vunpack.i.l.bf16 %v6741_v40 }
  0xe6   : > { %v5282_v28 = vunpack.i.h.bf16 %v5280_v60  ;;  %v5281_v8 = vunpack.i.l.bf16 %v5280_v60  ;;  %5499 = vrot.lane.b32.xlu0 %v6438_v33, %s6065_s25 }
  0xe8   : > { %v1769_v37 = vsel %vm1762_vm11, %v1736_v55, %v5281_v8  ;;  %v1770_v19 = vsel %vm1762_vm11, %v1737_v45, %v5282_v28  ;;  %v5290_v61 = vpop.permute.xlu0 %5289 }
  0xe9   : > { %v1798_v42 = vpack.c.bf16 %v1770_v19, %v1769_v37  ;;  %v5292_v6 = vunpack.i.h.bf16 %v5290_v61  ;;  %v5291_v60 = vunpack.i.l.bf16 %v5290_v61  ;;  %v1541_v37 = vsel %vm8342_vm4, %v6300_v26, %v5287_v25 }
  0xea   : > { %5509 = vrot.lane.b32.xlu2 %v6436_v32, %s6066_s26  ;;  %v5302_v19 = vunpack.i.h.bf16 %v6713_v9  ;;  %v5301_v26 = vunpack.i.l.bf16 %v6713_v9 }
  0xeb   : > { %5504 = vrot.lane.b32.xlu1 %v6780_v54, %s6060_s11  ;;  %4653 = vmatmul.msk.bf16.gmra.mxu0 %vm1830_vm12, %v1798_v42  ;;  %v1573_v45 = vsel %vm1564_vm5, %v1540_v22, %v5291_v60  ;;  %v1574_v59 = vsel %vm1564_vm5, %v1541_v37, %v5292_v6 }
  0xec   : > { %v6803_v21 = vpop.permute.xlu2 %5344 }
  0xed   : > { %v5295_v28 = vpop.permute.xlu1 %5294 }
  0xee   : > { %v5297_v8 = vunpack.i.h.bf16 %v5295_v28  ;;  %v5296_v55 = vunpack.i.l.bf16 %v5295_v28  ;;  %5514 = vrot.lane.b32.xlu0 %v6801_v17, %s6065_s25 }
  0xf0   : > { %v5305_v41 = vpop.permute.xlu0 %5304  ;;  %v1607_v29 = vsel %vm1597_vm6, %v1574_v59, %v5297_v8  ;;  %v1606_v35 = vsel %vm1597_vm6, %v1573_v45, %v5296_v55 }
  0xf1   : > { %v5307_v23 = vunpack.i.h.bf16 %v5305_v41  ;;  %v5306_v25 = vunpack.i.l.bf16 %v5305_v41  ;;  %v1639_v42 = vsel %vm1630_vm7, %v1606_v35, %v5301_v26  ;;  %v1640_v6 = vsel %vm1630_vm7, %v1607_v29, %v5302_v19 }
  0xf2   : > { %5524 = vrot.lane.b32.xlu2 %v6490_v34, %s6059_s30  ;;  %v5317_v34 = vunpack.i.h.bf16 %v6741_v40 }
  0xf3   : > { %5519 = vrot.lane.b32.xlu1 %v6813_v10, %s6066_s26  ;;  %v1672_v13 = vsel %vm1663_vm8, %v1639_v42, %v5306_v25  ;;  %v1673_v37 = vsel %vm1663_vm8, %v1640_v6, %v5307_v23 }
  0xf4   : > { %v6825_v52 = vpop.permute.xlu2 %5359 }
  0xf5   : > { %v5310_v61 = vpop.permute.xlu1 %5309 }
  0xf6   : > { %v5312_v9 = vunpack.i.h.bf16 %v5310_v61  ;;  %v5311_v60 = vunpack.i.l.bf16 %v5310_v61  ;;  %5529 = vrot.lane.b32.xlu0 %v6518_v49, %s6062_s18 }
  0xf8   : > { %v1705_v22 = vsel %vm1696_vm9, %v1672_v13, %v5311_v60  ;;  %v1706_v28 = vsel %vm1696_vm9, %v1673_v37, %v5312_v9  ;;  %v5320_v8 = vpop.permute.xlu0 %5319  ;;  %v5332_v9 = vunpack.i.h.bf16 %v6776_v39  ;;  %v5331_v60 = vunpack.i.l.bf16 %v6776_v39 }
  0xf9   : > { %v5322_v55 = vunpack.i.h.bf16 %v5320_v8  ;;  %v5321_v45 = vunpack.i.l.bf16 %v5320_v8  ;;  %v1738_v40 = vsel %vm1729_vm10, %v1705_v22, %v5316_v43  ;;  %v1739_v59 = vsel %vm1729_vm10, %v1706_v28, %v5317_v34 }
  0xfa   : > { %5539 = vrot.lane.b32.xlu2 %v6649_v53, %s8362_s28  ;;  %v5347_v39 = vunpack.i.h.bf16 %v6803_v21 }
  0xfb   : > { %5534 = vrot.lane.b32.xlu1 %v6637_v27, %s8361_s27  ;;  %v1771_v49 = vsel %vm1762_vm11, %v1738_v40, %v5321_v45  ;;  %v1772_v19 = vsel %vm1762_vm11, %v1739_v59, %v5322_v55  ;;  %v6852_v27 = vpack.i.bf16 %v6626_v7, %v6629_v5 }
  0xfc   : > { %v6843_v41 = vpop.permute.xlu2 %5374  ;;  %v1799_v29 = vpack.c.bf16 %v1772_v19, %v1771_v49 }
  0xfd   : > { %v5325_v26 = vpop.permute.xlu1 %5324 }
  0xfe   : > { %5544 = vrot.lane.b32.xlu0 %v6655_v30, %s6063_s20  ;;  %4654 = vmatmul.msk.bf16.gmra.mxu0 %vm1830_vm12, %v1799_v29  ;;  %v5327_v61 = vunpack.i.h.bf16 %v5325_v26  ;;  %v5326_v42 = vunpack.i.l.bf16 %v5325_v26  ;;  %v5362_v29 = vunpack.i.h.bf16 %v6825_v52 }
 0x100   : > { %v5335_v35 = vpop.permute.xlu0 %5334  ;;  %v1548_v34 = vsel %vm8342_vm4, %v6380_v38, %v5326_v42 }
 0x101   : > { %v5337_v43 = vunpack.i.h.bf16 %v5335_v35  ;;  %v5336_v13 = vunpack.i.l.bf16 %v5335_v35  ;;  %v1581_v55 = vsel %vm1564_vm5, %v1548_v34, %v5331_v60 }
 0x102   : > { %5554 = vrot.lane.b32.xlu2 %v6564_v11, %s6059_s30  ;;  %v1549_v11 = vsel %vm8342_vm4, %v6377_v36, %v5327_v61  ;;  %v5346_v36 = vunpack.i.l.bf16 %v6803_v21  ;;  %v5361_v21 = vunpack.i.l.bf16 %v6825_v52 }
 0x103   : > { %5549 = vrot.lane.b32.xlu1 %v6852_v27, %s6060_s11  ;;  %v1582_v45 = vsel %vm1564_vm5, %v1549_v11, %v5332_v9  ;;  %v1614_v38 = vsel %vm1597_vm6, %v1581_v55, %v5336_v13  ;;  %v386_v55 = vld [vmem:[%s6202_s29 + $0xe0] sm:$0xff] }
 0x104   : > { %v6858_v23 = vpop.permute.xlu2 %5389  ;;  %v1615_v40 = vsel %vm1597_vm6, %v1582_v45, %v5337_v43  ;;  %v387_v45 = vld [vmem:[%s6202_s29 + $0xe8] sm:$0xff] }
 0x105   : > { %v5340_v25 = vpop.permute.xlu1 %5339 }
 0x106   : > { %5559 = vrot.lane.b32.xlu0 %v6671_v4, %s6065_s25  ;;  %v5342_v37 = vunpack.i.h.bf16 %v5340_v25  ;;  %v5341_v22 = vunpack.i.l.bf16 %v5340_v25 }
 0x108   : > { %v5350_v6 = vpop.permute.xlu0 %5349  ;;  %v1648_v59 = vsel %vm1630_vm7, %v1615_v40, %v5342_v37 }
 0x109   : > { %v5352_v49 = vunpack.i.h.bf16 %v5350_v6  ;;  %v5351_v19 = vunpack.i.l.bf16 %v5350_v6  ;;  %v1681_v25 = vsel %vm1663_vm8, %v1648_v59, %v5347_v39  ;;  %v5376_v59 = vunpack.i.l.bf16 %v6843_v41 }
 0x10a   : > { %5569 = vrot.lane.b32.xlu2 %v6689_v47, %s6066_s26 }
 0x10b   : > { %5564 = vrot.lane.b32.xlu1 %v6576_v31, %s6062_s18  ;;  %v1647_v31 = vsel %vm1630_vm7, %v1614_v38, %v5341_v22  ;;  %v1714_v42 = vsel %vm1696_vm9, %v1681_v25, %v5352_v49 }
 0x10c   : > { %v6872_v28 = vpop.permute.xlu2 %5404  ;;  %v1680_v35 = vsel %vm1663_vm8, %v1647_v31, %v5346_v36  ;;  %v1747_v34 = vsel %vm1729_vm10, %v1714_v42, %v5362_v29  ;;  %v468_v31 = vrot.slane %v386_v55, 7 }
 0x10d   : > { %v5355_v8 = vpop.permute.xlu1 %5354  ;;  %v1713_v61 = vsel %vm1696_vm9, %v1680_v35, %v5351_v19 }
 0x10e   : > { %5574 = vrot.lane.b32.xlu0 %v6739_v56, %s6059_s30  ;;  %v1746_v52 = vsel %vm1729_vm10, %v1713_v61, %v5361_v21  ;;  %v5357_v13 = vunpack.i.h.bf16 %v5355_v8  ;;  %v5356_v37 = vunpack.i.l.bf16 %v5355_v8  ;;  %v469_v8 = vrot.slane %v387_v45, 7 }
 0x10f   : > { %v5392_v61 = vunpack.i.h.bf16 %v6858_v23  ;;  %v6928_v42 = vsel %vm423_vm0, 0.0, %v468_v31 }
 0x110   : > { %v5365_v26 = vpop.permute.xlu0 %5364  ;;  %v1543_v49 = vsel %vm8342_vm4, %v6328_v50, %v5357_v13  ;;  %v1542_v19 = vsel %vm8342_vm4, %v6331_v51, %v5356_v37  ;;  %v5391_v50 = vunpack.i.l.bf16 %v6858_v23  ;;  %v6925_v51 = vsel %vm423_vm0, %v468_v31, %v469_v8 }
 0x111   : > { %v5367_v36 = vunpack.i.h.bf16 %v5365_v26  ;;  %v5366_v38 = vunpack.i.l.bf16 %v5365_v26 }
 0x112   : > { %5584 = vrot.lane.b32.xlu2 %v6745_v20, %s6062_s18 }
 0x113   : > { %5579 = vrot.lane.b32.xlu1 %v6753_v62, %s8361_s27  ;;  %v1575_v26 = vsel %vm1564_vm5, %v1542_v19, %v5366_v38  ;;  %v6951_v38 = vpack.i.bf16 %v6925_v51, %v6928_v42 }
 0x114   : > { %v6894_v6 = vpop.permute.xlu2 %5419 }
 0x115   : > { %v5370_v9 = vpop.permute.xlu1 %5369 }
 0x116   : > { %v5372_v60 = vunpack.i.h.bf16 %v5370_v9  ;;  %v5371_v11 = vunpack.i.l.bf16 %v5370_v9  ;;  %5589 = vrot.lane.b32.xlu0 %v6438_v33, %s8362_s28  ;;  %v5377_v33 = vunpack.i.h.bf16 %v6843_v41  ;;  %v555_v41 = vsel %vm423_vm0, %v469_v8, 0.0 }
 0x117   : > { %v1608_v9 = vsel %vm1597_vm6, %v1575_v26, %v5376_v59  ;;  %v668_v23 = vrot.slane %v555_v41, 1  ;;  %v746_v26 = vrot.slane %v6928_v42, 2 }
 0x118   : > { %v1779_v62 = vsel %vm1762_vm11, %v1746_v52, %v5371_v11  ;;  %v1780_v43 = vsel %vm1762_vm11, %v1747_v34, %v5372_v60  ;;  %v5380_v22 = vpop.permute.xlu0 %5379  ;;  %v665_v52 = vrot.slane %v6928_v42, 1  ;;  %v666_v34 = vrot.slane %v6925_v51, 1 }
 0x119   : > { %v1803_v39 = vpack.c.bf16 %v1780_v43, %v1779_v62  ;;  %v5382_v29 = vunpack.i.h.bf16 %v5380_v22  ;;  %v5381_v21 = vunpack.i.l.bf16 %v5380_v22 }
 0x11a   : > { %5599 = vrot.lane.b32.xlu2 %v6436_v32, %s6063_s20 }
 0x11b   : > { %5594 = vrot.lane.b32.xlu1 %v6780_v54, %s8361_s27  ;;  %4658 = vmatmul.msk.bf16.vlgmr.msra.gmra.mxu2 %vm1830_vm12, %v1803_v39  ;;  %v1576_v54 = vsel %vm1564_vm5, %v1543_v49, %v5367_v36  ;;  %v1641_v62 = vsel %vm1630_vm7, %v1608_v9, %v5381_v21  ;;  %v6947_v36 = vld [vmem:[%s8315_s2] ss:$0 sm:$0xff] }
 0x11c   : > { %v6910_v40 = vpop.permute.xlu2 %5434  ;;  %v1609_v60 = vsel %vm1597_vm6, %v1576_v54, %v5377_v33  ;;  %v667_v33 = vsel %vm589_vm1, %v665_v52, %v666_v34 }
 0x11d   : > { %v5385_v32 = vpop.permute.xlu1 %5384  ;;  %v1642_v43 = vsel %vm1630_vm7, %v1609_v60, %v5382_v29  ;;  %v5407_v60 = vunpack.i.h.bf16 %v6872_v28 }
 0x11e   : > { %v5387_v35 = vunpack.i.h.bf16 %v5385_v32  ;;  %v5386_v25 = vunpack.i.l.bf16 %v5385_v32  ;;  %5604 = vrot.lane.b32.xlu0 %v6801_v17, %s8362_s28  ;;  %v669_v32 = vsel %vm589_vm1, %v666_v34, %v668_v23 }
 0x11f   : > { %v1551_v23 = vsel %vm8342_vm4, %v6430_v24, %v5407_v60 }
 0x120   : > { %v5395_v11 = vpop.permute.xlu0 %5394  ;;  %v1674_v13 = vsel %vm1663_vm8, %v1641_v62, %v5386_v25  ;;  %v1675_v37 = vsel %vm1663_vm8, %v1642_v43, %v5387_v35  ;;  %v747_v35 = vrot.slane %v6925_v51, 2  ;;  %v749_v25 = vrot.slane %v555_v41, 2 }
 0x121   : > { %v5397_v22 = vunpack.i.h.bf16 %v5395_v11  ;;  %v5396_v39 = vunpack.i.l.bf16 %v5395_v11  ;;  %v1707_v31 = vsel %vm1696_vm9, %v1674_v13, %v5391_v50  ;;  %v1708_v8 = vsel %vm1696_vm9, %v1675_v37, %v5392_v61 }
 0x122   : > { %5614 = vrot.lane.b32.xlu2 %v6813_v10, %s6063_s20  ;;  %v6973_v11 = vpack.i.bf16 %v669_v32, %v667_v33  ;;  %v5437_v41 = vunpack.i.h.bf16 %v6910_v40  ;;  %v748_v34 = vsel %vm670_vm2, %v746_v26, %v747_v35  ;;  %v750_v62 = vsel %vm670_vm2, %v747_v35, %v749_v25 }
 0x123   : > { %5609 = vrot.lane.b32.xlu1 %v6455_v48, %s6060_s11  ;;  %v1740_v49 = vsel %vm1729_vm10, %v1707_v31, %v5396_v39  ;;  %v1741_v19 = vsel %vm1729_vm10, %v1708_v8, %v5397_v22  ;;  %v5422_v22 = vunpack.i.h.bf16 %v6894_v6  ;;  %v5421_v39 = vunpack.i.l.bf16 %v6894_v6 }
 0x124   : > { %v6942_v55 = vpop.permute.xlu2 %5449  ;;  %v6991_v33 = vpack.i.bf16 %v750_v62, %v748_v34  ;;  %v388_v34 = vld [vmem:[%s6202_s29 + $0xf0] sm:$0xff]  ;;  %v389_v62 = vld [vmem:[%s6202_s29 + $0xf8] sm:$0xff]  ;;  %s6068_s29 = smov 8  }
 0x125   : > { %v5400_v45 = vpop.permute.xlu1 %5399 }
 0x126   : > { %v5402_v59 = vunpack.i.h.bf16 %v5400_v45  ;;  %v5401_v48 = vunpack.i.l.bf16 %v5400_v45  ;;  %5619 = vrot.lane.b32.xlu0 %v6474_v0, %s6065_s25  ;;  %v5406_v0 = vunpack.i.l.bf16 %v6872_v28  ;;  %v5436_v28 = vunpack.i.l.bf16 %v6910_v40 }
 0x127   : > { %v6995_v40 = vsel %vm8342_vm4, %v6356_v14, %v5437_v41 }
 0x128   : > { %v1894_v54 = vpop.f32.mrf.mxu0  ;;  %v1773_v29 = vsel %vm1762_vm11, %v1740_v49, %v5401_v48  ;;  %v1774_v21 = vsel %vm1762_vm11, %v1741_v19, %v5402_v59  ;;  %v5410_v50 = vpop.permute.xlu0 %5409  ;;  %v1550_v13 = vsel %vm8342_vm4, %v6421_v18, %v5406_v0  ;;  %v6999_v24 = vsel %vm8342_vm4, %v6359_v16, %v5436_v28 }
 0x129   : > { %v1895_v61 = vadd.f32 %v6947_v36, %v1894_v54  ;;  %v1800_v9 = vpack.c.bf16 %v1774_v21, %v1773_v29  ;;  %v5411_v37 = vunpack.i.l.bf16 %v5410_v50  ;;  %v5412_v45 = vunpack.i.h.bf16 %v5410_v50 }
 0x12a   : > { %5629 = vrot.lane.b32.xlu2 %v6470_v63, %s6066_s26  ;;  %v5452_v49 = vunpack.i.h.bf16 %v6942_v55  ;;  %v5451_v16 = vunpack.i.l.bf16 %v6942_v55 }
 0x12b   : > { %5624 = vrot.lane.b32.xlu1 %v6951_v38, %s6060_s11  ;;  %4655 = vmatmul.msk.bf16.gmra.mxu0 %vm1830_vm12, %v1800_v9  ;;  %v6981_v43 = vmax.f32 %v1895_v61, 0.0  ;;  %v1583_v6 = vsel %vm1564_vm5, %v1550_v13, %v5411_v37  ;;  %v1584_v19 = vsel %vm1564_vm5, %v1551_v23, %v5412_v45 }
 0x12c   : > { %v6976_v52 = vpop.permute.xlu2 %5464 }
 0x12d   : > { %v5415_v63 = vpop.permute.xlu1 %5414  ;;  %v2038_v18 = vrot.slane %v6981_v43, 2  ;;  %v2039_v14 = vrot.slane %v6981_v43, 4  ;;  %v2040_v26 = vrot.slane %v6981_v43, 6  ;;  %v4666_v54 = vrot.slane %v6981_v43, 9 }
 0x12e   : > { %5634 = vrot.lane.b32.xlu0 %v6973_v11, %s6065_s25  ;;  %v5416_v8 = vunpack.i.l.bf16 %v5415_v63  ;;  %v5417_v48 = vunpack.i.h.bf16 %v5415_v63 }
 0x12f   : > { %v4667_v29 = vrot.slane %v2038_v18, 9  ;;  %v4668_v60 = vrot.slane %v2039_v14, 9  ;;  %v4669_v28 = vrot.slane %v2040_v26, 9  ;;  %v7026_v63 = vmax.f32 %v6981_v43, %v4666_v54 }
 0x130   : > { %v1896_v31 = vpop.f32.mrf.mxu0  ;;  %v5425_v59 = vpop.permute.xlu0 %5424  ;;  %v1616_v21 = vsel %vm1597_vm6, %v1583_v6, %v5416_v8  ;;  %v1617_v50 = vsel %vm1597_vm6, %v1584_v19, %v5417_v48  ;;  %v472_v43 = vrot.slane %v389_v62, 7 }
 0x131   : > { %v1897_v32 = vadd.f32 %v6947_v36, %v1896_v31  ;;  %v5426_v35 = vunpack.i.l.bf16 %v5425_v59  ;;  %v5427_v9 = vunpack.i.h.bf16 %v5425_v59  ;;  %v1649_v13 = vsel %vm1630_vm7, %v1616_v21, %v5421_v39 }
 0x132   : > { %5644 = vrot.lane.b32.xlu2 %v6649_v53, %s6059_s30  ;;  %v7030_v37 = vmax.f32 %v2038_v18, %v4667_v29  ;;  %v1650_v45 = vsel %vm1630_vm7, %v1617_v50, %v5422_v22  ;;  %v471_v59 = vrot.slane %v388_v34, 7  ;;  %v7037_v19 = vmax.f32 %v2039_v14, %v4668_v60 }
 0x133   : > { %5639 = vrot.lane.b32.xlu1 %v6991_v33, %s6066_s26  ;;  %v7019_v55 = vmax.f32 %v1897_v32, 0.0  ;;  %v1682_v31 = vsel %vm1663_vm8, %v1649_v13, %v5426_v35  ;;  %v7050_v35 = vmax.f32 %v2040_v26, %v4669_v28  ;;  %v556_v28 = vsel %vm423_vm0, %v472_v43, 0.0 }
 0x134   : > { %v7014_v53 = vpop.permute.xlu2 %5479 }
 0x135   : > { %v5430_v25 = vpop.permute.xlu1 %5429  ;;  %v2041_v39 = vrot.slane %v7019_v55, 2  ;;  %v2042_v32 = vrot.slane %v7019_v55, 4  ;;  %v2043_v54 = vrot.slane %v7019_v55, 6  ;;  %v4670_v60 = vrot.slane %v7019_v55, 9 }
 0x136   : > { %v5432_v0 = vunpack.i.h.bf16 %v5430_v25  ;;  %v5431_v41 = vunpack.i.l.bf16 %v5430_v25  ;;  %5649 = vrot.lane.b32.xlu0 %v6655_v30, %s6062_s18  ;;  %v1683_v30 = vsel %vm1663_vm8, %v1650_v45, %v5427_v9 }
 0x137   : > { %v4671_v34 = vrot.slane %v2041_v39, 9  ;;  %v4672_v13 = vrot.slane %v2042_v32, 9  ;;  %v4673_v45 = vrot.slane %v2043_v54, 9 }
 0x138   : > { %v5440_v8 = vpop.permute.xlu0 %5439  ;;  %v1715_v18 = vsel %vm1696_vm9, %v1682_v31, %v5431_v41  ;;  %v1716_v22 = vsel %vm1696_vm9, %v1683_v30, %v5432_v0  ;;  %v473_v41 = vsel %vm423_vm0, %v471_v59, %v472_v43  ;;  %v7067_v43 = vmax.f32 %v7019_v55, %v4670_v60 }
 0x139   : > { %v5442_v6 = vunpack.i.h.bf16 %v5440_v8  ;;  %v5441_v48 = vunpack.i.l.bf16 %v5440_v8  ;;  %v754_v61 = vrot.slane %v473_v41, 1 }
 0x13a   : > { %5659 = vrot.lane.b32.xlu2 %v6671_v4, %s8362_s28 }
 0x13b   : > { %5654 = vrot.lane.b32.xlu1 %v6852_v27, %s8361_s27  ;;  %v1748_v29 = vsel %vm1729_vm10, %v1715_v18, %v5441_v48  ;;  %v1749_v4 = vsel %vm1729_vm10, %v1716_v22, %v5442_v6  ;;  %v1899_v14 = vpop.f32.mrf.mxu0  ;;  %v539_v27 = vsel %vm423_vm0, 0.0, %v471_v59  ;;  %v7069_v18 = vmax.f32 %v2041_v39, %v4671_v34 }
 0x13c   : > { %v7048_v21 = vpop.permute.xlu2 %5494  ;;  %v1900_v50 = vadd.f32 %v6947_v36, %v1899_v14  ;;  %v1781_v9 = vsel %vm1762_vm11, %v1748_v29, %v5451_v16  ;;  %v1782_v0 = vsel %vm1762_vm11, %v1749_v4, %v5452_v49  ;;  %v758_v31 = vrot.slane %v539_v27, 2 }
 0x13d   : > { %v5445_v25 = vpop.permute.xlu1 %5444  ;;  %v1804_v26 = vpack.c.bf16 %v1782_v0, %v1781_v9  ;;  %v759_v49 = vrot.slane %v473_v41, 2  ;;  %v7073_v4 = vmax.f32 %v2042_v32, %v4672_v13  ;;  %v7075_v14 = vmax.f32 %v2043_v54, %v4673_v45 }
 0x13e   : > { %v1976_v62 = vmax.f32 %v1900_v50, 0.0  ;;  %5664 = vrot.lane.b32.xlu0 %v6689_v47, %s6063_s20  ;;  %v761_v47 = vrot.slane %v556_v28, 2  ;;  %v753_v60 = vrot.slane %v539_v27, 1  ;;  %v5497_v32 = vunpack.i.h.bf16 %v7048_v21 }
 0x13f   : > { %4659 = vmatmul.msk.bf16.gmra.mxu2 %vm1830_vm12, %v1804_v26  ;;  %v5446_v26 = vunpack.i.l.bf16 %v5445_v25  ;;  %v760_v39 = vsel %vm670_vm2, %v758_v31, %v759_v49  ;;  %v7084_v45 = vpack.i.bf16 %v473_v41, %v539_v27 }
 0x140   : > { %v2044_v16 = vrot.slane %v1976_v62, 2  ;;  %v2045_v8 = vrot.slane %v1976_v62, 4  ;;  %v2046_v30 = vrot.slane %v1976_v62, 6  ;;  %v5455_v6 = vpop.permute.xlu0 %5454  ;;  %v4674_v22 = vrot.slane %v1976_v62, 9 }
 0x141   : > { %v762_v48 = vsel %vm670_vm2, %v759_v49, %v761_v47  ;;  %v5457_v13 = vunpack.i.h.bf16 %v5455_v6  ;;  %v755_v41 = vsel %vm589_vm1, %v753_v60, %v754_v61 }
 0x142   : > { %5674 = vrot.lane.b32.xlu2 %v6739_v56, %s6065_s25  ;;  %v4675_v29 = vrot.slane %v2044_v16, 9  ;;  %v4676_v50 = vrot.slane %v2045_v8, 9  ;;  %v4677_v9 = vrot.slane %v2046_v30, 9  ;;  %v5447_v56 = vunpack.i.h.bf16 %v5445_v25 }
 0x143   : > { %5669 = vrot.lane.b32.xlu1 %v6723_v46, %s6060_s11  ;;  %v1901_v55 = vpop.f32.mrf.mxu0  ;;  %v756_v46 = vrot.slane %v556_v28, 1  ;;  %v2622_v54 = vmax.f32 %v1976_v62, %v4674_v22  ;;  %v5496_v25 = vunpack.i.l.bf16 %v7048_v21  ;;  %v1577_v28 = vsel %vm1564_vm5, %v6999_v24, %v5446_v26 }
 0x144   : > { %v7077_v0 = vpop.permute.xlu2 %5509  ;;  %v2623_v34 = vmax.f32 %v2044_v16, %v4675_v29  ;;  %v2624_v23 = vmax.f32 %v2045_v8, %v4676_v50  ;;  %v2625_v31 = vmax.f32 %v2046_v30, %v4677_v9  ;;  %v1902_v16 = vadd.f32 %v6947_v36, %v1901_v55 }
 0x145   : > { %v5460_v59 = vpop.permute.xlu1 %5459  ;;  %v1578_v49 = vsel %vm1564_vm5, %v6995_v40, %v5447_v56  ;;  %v5456_v62 = vunpack.i.l.bf16 %v5455_v6  ;;  %v7094_v22 = vpack.i.bf16 %v762_v48, %v760_v39  ;;  %v757_v8 = vsel %vm589_vm1, %v754_v61, %v756_v46 }
 0x146   : > { %5679 = vrot.lane.b32.xlu0 %v6745_v20, %s6066_s26  ;;  %v2743_v20 = vmax.f32 %v7030_v37, %v2623_v34  ;;  %v1977_v27 = vmax.f32 %v1902_v16, 0.0  ;;  %v2742_v40 = vmax.f32 %v7026_v63, %v2622_v54  ;;  %v1557_v24 = vsel %vm8342_vm4, %v6626_v7, %v5457_v13 }
 0x147   : > { %v5462_v30 = vunpack.i.h.bf16 %v5460_v59  ;;  %v5461_v6 = vunpack.i.l.bf16 %v5460_v59  ;;  %v2744_v37 = vmax.f32 %v7037_v19, %v2624_v23  ;;  %v2745_v48 = vmax.f32 %v7050_v35, %v2625_v31 }
 0x148   : > { %v7092_v47 = vpop.permute.xlu0 %5469  ;;  %v2048_v29 = vrot.slane %v1977_v27, 4  ;;  %v1556_v61 = vsel %vm8342_vm4, %v6629_v5, %v5456_v62  ;;  %v2049_v63 = vrot.slane %v1977_v27, 6  ;;  %v4678_v9 = vrot.slane %v1977_v27, 9 }
 0x149   : > { %v7110_v26 = vpack.i.bf16 %v757_v8, %v755_v41  ;;  %v2871_v7 = vperm.slane %v2743_v20, 0  ;;  %v2870_v39 = vperm.slane %v2742_v40, 0  ;;  %v5511_v23 = vunpack.i.l.bf16 %v7077_v0 }
 0x14a   : > { %5689 = vrot.lane.b32.xlu2 %v6813_v10, %s6062_s18  ;;  %v2047_v10 = vrot.slane %v1977_v27, 2  ;;  %v4680_v55 = vrot.slane %v2048_v29, 9  ;;  %v1610_v19 = vsel %vm1597_vm6, %v1577_v28, %v5461_v6  ;;  %v2872_v35 = vperm.slane %v2744_v37, 0 }
 0x14b   : > { %5684 = vrot.lane.b32.xlu1 %v6801_v17, %s6059_s30  ;;  %v5512_v17 = vunpack.i.h.bf16 %v7077_v0  ;;  %v7117_v5 = vperm.slane %v2745_v48, 0  ;;  %v1611_v60 = vsel %vm1597_vm6, %v1578_v49, %v5462_v30  ;;  %v8369_v34 = vunpack.i.l.bf16 %v6976_v52 }
 0x14c   : > { %v5525_v50 = vpop.permute.xlu2 %5524  ;;  %v4679_v59 = vrot.slane %v2047_v10, 9  ;;  %v4681_v54 = vrot.slane %v2049_v63, 9  ;;  %v2626_v13 = vmax.f32 %v1977_v27, %v4678_v9  ;;  %v5471_v31 = vunpack.i.l.bf16 %v7092_v47 }
 0x14d   : > { %v5475_v56 = vpop.permute.xlu1 %5474  ;;  %v1589_v46 = vsel %vm1564_vm5, %v1556_v61, %v8369_v34  ;;  %v8370_v16 = vunpack.i.h.bf16 %v6976_v52  ;;  %v2628_v8 = vmax.f32 %v2048_v29, %v4680_v55  ;;  %v5472_v49 = vunpack.i.h.bf16 %v7092_v47 }
 0x14e   : > { %5694 = vrot.lane.b32.xlu0 %v6951_v38, %s8361_s27  ;;  %v2935_v38 = vsel %vm8346_vm13, %v2871_v7, %v2870_v39  ;;  %v2627_v41 = vmax.f32 %v2047_v10, %v4679_v59  ;;  %v5527_v40 = vunpack.i.h.bf16 %v5525_v50  ;;  %v5526_v30 = vunpack.i.l.bf16 %v5525_v50 }
 0x14f   : > { %v1590_v28 = vsel %vm1564_vm5, %v1557_v24, %v8370_v16  ;;  %v5477_v27 = vunpack.i.h.bf16 %v5475_v56  ;;  %v5476_v52 = vunpack.i.l.bf16 %v5475_v56  ;;  %v7134_v24 = vmax.f32 %v2049_v63, %v4681_v54 }
 0x150   : > { %v5485_v20 = vpop.permute.xlu0 %5484  ;;  %v2746_v37 = vmax.f32 %v7067_v43, %v2626_v13  ;;  %v1643_v48 = vsel %vm1630_vm7, %v1610_v19, %v5471_v31  ;;  %v2937_v10 = vsel %vm8345_vm14, %v2872_v35, %v2935_v38  ;;  %v2747_v29 = vmax.f32 %v7069_v18, %v2627_v41 }
 0x151   : > { %v1904_v62 = vpop.f32.mrf.mxu0  ;;  %v2748_v50 = vmax.f32 %v7073_v4, %v2628_v8  ;;  %v1644_v61 = vsel %vm1630_vm7, %v1611_v60, %v5472_v49  ;;  %v7146_v63 = vsel %vm8342_vm4, %v6464_v57, %v5527_v40  ;;  %v7150_v43 = vsel %vm8342_vm4, %v6467_v58, %v5526_v30 }
 0x152   : > { %5704 = vrot.lane.b32.xlu2 %v6991_v33, %s6063_s20  ;;  %v1905_v6 = vadd.f32 %v6947_v36, %v1904_v62  ;;  %v1623_v56 = vsel %vm1597_vm6, %v1590_v28, %v5477_v27  ;;  %v1622_v18 = vsel %vm1597_vm6, %v1589_v46, %v5476_v52  ;;  %v5487_v4 = vunpack.i.h.bf16 %v5485_v20 }
 0x153   : > { %5699 = vrot.lane.b32.xlu1 %v6973_v11, %s8362_s28  ;;  %v5486_v59 = vunpack.i.l.bf16 %v5485_v20  ;;  %v8371_v55 = vunpack.i.l.bf16 %v7014_v53  ;;  %v2749_v39 = vmax.f32 %v7075_v14, %v7134_v24  ;;  %v2874_v58 = vperm.slane %v2746_v37, 0 }
 0x154   : > { %v7142_v9 = vpop.permute.xlu2 %5539  ;;  %v7153_v7 = vmax.f32 %v1905_v6, 0.0  ;;  %v2875_v54 = vperm.slane %v2747_v29, 0  ;;  %v2876_v13 = vperm.slane %v2748_v50, 0  ;;  %v8372_v31 = vunpack.i.h.bf16 %v7014_v53 }
 0x155   : > { %v5490_v47 = vpop.permute.xlu1 %5489  ;;  %v1676_v57 = vsel %vm1663_vm8, %v1643_v48, %v8371_v55  ;;  %v5748_v20 = vpack.i.bf16 %v6182_v1, %v6187_v2  ;;  %v1655_v41 = vsel %vm1630_vm7, %v1622_v18, %v5486_v59  ;;  %v1656_v8 = vsel %vm1630_vm7, %v1623_v56, %v5487_v4 }
 0x156   : > { %5709 = vrot.lane.b32.xlu0 %v7084_v45, %s6060_s11  ;;  %v5492_v19 = vunpack.i.h.bf16 %v5490_v47  ;;  %v5491_v35 = vunpack.i.l.bf16 %v5490_v47  ;;  %v1677_v46 = vsel %vm1663_vm8, %v1644_v61, %v8372_v31  ;;  %v2050_v28 = vrot.slane %v7153_v7, 2 }
 0x157   : > { %v2051_v38 = vrot.slane %v7153_v7, 4  ;;  %v2052_v53 = vrot.slane %v7153_v7, 6  ;;  %v5542_v49 = vunpack.i.h.bf16 %v7142_v9  ;;  %v5541_v40 = vunpack.i.l.bf16 %v7142_v9 }
 0x158   : > { %v5500_v34 = vpop.permute.xlu0 %5499  ;;  %v1709_v30 = vsel %vm1696_vm9, %v1676_v57, %v5491_v35  ;;  %v1710_v27 = vsel %vm1696_vm9, %v1677_v46, %v5492_v19  ;;  %v4682_v52 = vrot.slane %v7153_v7, 9  ;;  %v4683_v47 = vrot.slane %v2050_v28, 9 }
 0x159   : > { %v1906_v60 = vpop.f32.mrf.mxu0  ;;  %v5502_v62 = vunpack.i.h.bf16 %v5500_v34  ;;  %v5501_v14 = vunpack.i.l.bf16 %v5500_v34  ;;  %v1688_v29 = vsel %vm1663_vm8, %v1655_v41, %v5496_v25  ;;  %v1689_v50 = vsel %vm1663_vm8, %v1656_v8, %v5497_v32 }
 0x15a   : > { %v1907_v16 = vadd.f32 %v6947_v36, %v1906_v60  ;;  %5719 = vrot.lane.b32.xlu2 %v7094_v22, %s6066_s26  ;;  %v2939_v61 = vsel %vm8343_vm15, %v7117_v5, %v2937_v10  ;;  %v4684_v56 = vrot.slane %v2051_v38, 9  ;;  %v4685_v18 = vrot.slane %v2052_v53, 9 }
 0x15b   : > { %5714 = vrot.lane.b32.xlu1 %v7110_v26, %s6065_s25  ;;  %v1742_v37 = vsel %vm1729_vm10, %v1709_v30, %v5501_v14  ;;  %v1743_v48 = vsel %vm1729_vm10, %v1710_v27, %v5502_v62  ;;  %v2941_v59 = vsel %vm8344_vm3, %v2874_v58, %v2939_v61  ;;  %vm2942_vm4 = vcmask 1045509  }
 0x15c   : > { %v7183_v24 = vmax.f32 %v1907_v16, 0.0  ;;  %v7199_v4 = vpop.permute.xlu2 %5554  ;;  %v1775_v21 = vsel %vm1762_vm11, %v1742_v37, %v5511_v23  ;;  %vm2944_vm15 = vcmask 1046534   ;;  %v7209_v5 = vmax.f32 %v7153_v7, %v4682_v52 }
 0x15d   : > { %v5505_v6 = vpop.permute.xlu1 %5504  ;;  %v2943_v0 = vsel %vm2942_vm4, %v2875_v54, %v2941_v59  ;;  %vm2946_vm3 = vcmask 1047559   ;;  %v7229_v41 = vmax.f32 %v2050_v28, %v4683_v47  ;;  %v7231_v8 = vmax.f32 %v2051_v38, %v4684_v56 }
 0x15e   : > { %5724 = vrot.lane.b32.xlu0 %v6973_v11, %s6059_s30  ;;  %v5506_v25 = vunpack.i.l.bf16 %v5505_v6  ;;  %v1776_v11 = vsel %vm1762_vm11, %v1743_v48, %v5512_v17  ;;  %v2053_v10 = vrot.slane %v7183_v24, 2  ;;  %v5507_v55 = vunpack.i.h.bf16 %v5505_v6  ;;  %s6069_s30 = smov 16  }
 0x15f   : > { %v1801_v57 = vpack.c.bf16 %v1776_v11, %v1775_v21  ;;  %v2877_v17 = vperm.slane %v2749_v39, 0  ;;  %v2945_v23 = vsel %vm2944_vm15, %v2876_v13, %v2943_v0  ;;  %v2054_v35 = vrot.slane %v7183_v24, 4 }
 0x160   : > { %v5515_v32 = vpop.permute.xlu0 %5514  ;;  %v2055_v60 = vrot.slane %v7183_v24, 6  ;;  %v4686_v34 = vrot.slane %v7183_v24, 9  ;;  %v1722_v46 = vsel %vm1696_vm9, %v1689_v50, %v5507_v55  ;;  %v4687_v62 = vrot.slane %v2053_v10, 9 }
 0x161   : > { %v5517_v58 = vunpack.i.h.bf16 %v5515_v32  ;;  %v5516_v19 = vunpack.i.l.bf16 %v5515_v32  ;;  %4656 = vmatmul.msk.bf16.gmra.mxu0 %vm1830_vm12, %v1801_v57  ;;  %v2947_v54 = vsel %vm2946_vm3, %v2877_v17, %v2945_v23  ;;  %v4688_v28 = vrot.slane %v2054_v35, 9 }
 0x162   : > { %5734 = vrot.lane.b32.xlu2 %v7084_v45, %s8361_s27  ;;  %v1721_v45 = vsel %vm1696_vm9, %v1688_v29, %v5506_v25  ;;  %v2997_v14 = vrot.slane %v2947_v54, 7  ;;  %v7253_v56 = vrot.slane %v2055_v60, 9  ;;  %v7256_v59 = vmax.f32 %v7183_v24, %v4686_v34  ;;  %s6072_s27 = smov 48  }
 0x163   : > { %5729 = vrot.lane.b32.xlu1 %v6991_v33, %s6062_s18  ;;  %v1754_v39 = vsel %vm1729_vm10, %v1721_v45, %v5516_v19  ;;  %v1755_v13 = vsel %vm1729_vm10, %v1722_v46, %v5517_v58  ;;  %v7258_v7 = vmax.f32 %v2053_v10, %v4687_v62  ;;  %v8374_v25 = vrot.slane %v6187_v2, 1  ;;  %s8354_s18 = smov 32  }
 0x164   : > { %v7237_v29 = vsel %vm423_vm0, 0.0, %v2997_v14  ;;  %v3021_v50 = vsel %vm423_vm0, %v2997_v14, 0.0  ;;  %v7244_v38 = vpop.permute.xlu2 %5569  ;;  %v8375_v54 = vrot.slane %v6191_v3, 2  ;;  %v8376_v62 = vrot.slane %v6187_v2, 2 }
 0x165   : > { %v5520_v31 = vpop.permute.xlu1 %5519  ;;  %v3044_v47 = vrot.slane %v7237_v29, 1  ;;  %v3045_v61 = vrot.slane %v3021_v50, 1  ;;  %v3066_v0 = vrot.slane %v7237_v29, 2  ;;  %v3067_v17 = vrot.slane %v3021_v50, 2  ;;  %v8377_v50 = vld [vmem:[#allocation5_spill] sm:$0xff] }
 0x166   : > { %v5522_v33 = vunpack.i.h.bf16 %v5520_v31  ;;  %v5521_v16 = vunpack.i.l.bf16 %v5520_v31  ;;  %5739 = vrot.lane.b32.xlu0 %v7110_v26, %s8362_s28  ;;  %v7242_v26 = vmax.f32 %v2052_v53, %v4685_v18  ;;  %v8373_v18 = vrot.slane %v6191_v3, 1  ;;  %s8352_s28 = smov 64  }
 0x167   : > { %v7271_v11 = vsel %vm589_vm1, %v3044_v47, %v3045_v61  ;;  %v7297_v3 = vsel %vm670_vm2, %v3066_v0, %v3067_v17 }
 0x168   : > { %v1909_v30 = vpop.f32.mrf.mxu0  ;;  %v1787_v27 = vsel %vm1762_vm11, %v1754_v39, %v5521_v16  ;;  %v1788_v6 = vsel %vm1762_vm11, %v1755_v13, %v5522_v33  ;;  %v5530_v37 = vpop.permute.xlu0 %5529  ;;  %v7268_v21 = vsel %vm589_vm1, %v8374_v25, %v8373_v18  ;;  %v7287_v39 = vsel %vm670_vm2, %v8376_v62, %v8375_v54 }
 0x169   : > { %v1910_v52 = vadd.f32 %v6947_v36, %v1909_v30  ;;  %v1807_v48 = vpack.c.bf16 %v1788_v6, %v1787_v27  ;;  %v5532_v1 = vunpack.i.h.bf16 %v5530_v37  ;;  %v5572_v27 = vunpack.i.h.bf16 %v7244_v38 }
 0x16a   : > { %5749 = vrot.lane.b32.xlu2 %v5748_v20, %s6060_s11  ;;  %v5531_v20 = vunpack.i.l.bf16 %v5530_v37  ;;  %v5571_v6 = vunpack.i.l.bf16 %v7244_v38  ;;  %s6070_s11 = smov 40  }
 0x16b   : > { %v1980_v53 = vmax.f32 %v1910_v52, 0.0  ;;  %5744 = vrot.lane.b32.xlu1 %v7094_v22, %s6063_s20  ;;  %4662 = vmatmul.msk.bf16.vlgmr.msra.gmra.mxu3 %vm1830_vm12, %v1807_v48  ;;  %v7273_v22 = vmax.f32 %v2054_v35, %v4688_v28  ;;  %v1586_v46 = vsel %vm1564_vm5, %v7146_v63, %v5532_v1  ;;  %v5763_v35 = vpack.i.bf16 %v7271_v11, %v7268_v21 }
 0x16c   : > { %v7304_v28 = vpop.permute.xlu2 %5584 }
 0x16d   : > { %v2056_v32 = vrot.slane %v1980_v53, 2  ;;  %v2057_v10 = vrot.slane %v1980_v53, 4  ;;  %v2058_v55 = vrot.slane %v1980_v53, 6  ;;  %v4690_v57 = vrot.slane %v1980_v53, 9  ;;  %v5535_v58 = vpop.permute.xlu1 %5534 }
 0x16e   : > { %v5537_v19 = vunpack.i.h.bf16 %v5535_v58  ;;  %5754 = vrot.lane.b32.xlu0 %v6213_v15, %s6065_s25  ;;  %v5536_v33 = vunpack.i.l.bf16 %v5535_v58  ;;  %v1585_v15 = vsel %vm1564_vm5, %v7150_v43, %v5531_v20 }
 0x16f   : > { %v4691_v23 = vrot.slane %v2056_v32, 9  ;;  %v4692_v34 = vrot.slane %v2057_v10, 9  ;;  %v4693_v45 = vrot.slane %v2058_v55, 9  ;;  %v2638_v31 = vmax.f32 %v1980_v53, %v4690_v57 }
 0x170   : > { %v1911_v16 = vpop.f32.mrf.mxu0  ;;  %v5545_v63 = vpop.permute.xlu0 %5544  ;;  %v1619_v43 = vsel %vm1597_vm6, %v1586_v46, %v5537_v19  ;;  %v1618_v38 = vsel %vm1597_vm6, %v1585_v15, %v5536_v33 }
 0x171   : > { %v2639_v13 = vmax.f32 %v2056_v32, %v4691_v23  ;;  %v2640_v14 = vmax.f32 %v2057_v10, %v4692_v34  ;;  %v2750_v30 = vmax.f32 %v7209_v5, %v2638_v31  ;;  %v1912_v52 = vadd.f32 %v6947_v36, %v1911_v16 }
 0x172   : > { %5764 = vrot.lane.b32.xlu2 %v5763_v35, %s6068_s29  ;;  %v2641_v37 = vmax.f32 %v2058_v55, %v4693_v45  ;;  %v5547_v61 = vunpack.i.h.bf16 %v5545_v63  ;;  %v5546_v53 = vunpack.i.l.bf16 %v5545_v63  ;;  %v1651_v19 = vsel %vm1630_vm7, %v1618_v38, %v5541_v40 }
 0x173   : > { %v2751_v48 = vmax.f32 %v7229_v41, %v2639_v13  ;;  %v2752_v5 = vmax.f32 %v7231_v8, %v2640_v14  ;;  %5759 = vrot.lane.b32.xlu1 %v8377_v50, %s6066_s26  ;;  %v1981_v47 = vmax.f32 %v1912_v52, 0.0  ;;  %v2878_v1 = vperm.slane %v2750_v30, 0 }
 0x174   : > { %v5768_v41 = vpack.i.bf16 %v7297_v3, %v7287_v39  ;;  %v2753_v57 = vmax.f32 %v7242_v26, %v2641_v37  ;;  %v1652_v45 = vsel %vm1630_vm7, %v1619_v43, %v5542_v49  ;;  %v1684_v26 = vsel %vm1663_vm8, %v1651_v19, %v5546_v53 }
 0x175   : > { %v2879_v20 = vperm.slane %v2751_v48, 0  ;;  %v2880_v18 = vperm.slane %v2752_v5, 0  ;;  %v5550_v25 = vpop.permute.xlu1 %5549  ;;  %v2059_v8 = vrot.slane %v1981_v47, 2  ;;  %v2060_v32 = vrot.slane %v1981_v47, 4 }
 0x176   : > { %v2061_v10 = vrot.slane %v1981_v47, 6  ;;  %v4694_v55 = vrot.slane %v1981_v47, 9  ;;  %v5552_v0 = vunpack.i.h.bf16 %v5550_v25  ;;  %5769 = vrot.lane.b32.xlu0 %v5768_v41, %s6069_s30  ;;  %v1685_v46 = vsel %vm1663_vm8, %v1652_v45, %v5547_v61 }
 0x177   : > { %v2948_v58 = vsel %vm8346_vm13, %v2879_v20, %v2878_v1  ;;  %v4695_v17 = vrot.slane %v2059_v8, 9  ;;  %v4696_v23 = vrot.slane %v2060_v32, 9  ;;  %v5551_v33 = vunpack.i.l.bf16 %v5550_v25 }
 0x178   : > { %v4697_v34 = vrot.slane %v2061_v10, 9  ;;  %v2642_v31 = vmax.f32 %v1981_v47, %v4694_v55  ;;  %v5560_v16 = vpop.permute.xlu0 %5559  ;;  %v2949_v40 = vsel %vm8345_vm14, %v2880_v18, %v2948_v58  ;;  %v1718_v30 = vsel %vm1696_vm9, %v1685_v46, %v5552_v0  ;;  %v7331_v47 = vpop.permute.xlu2 %5599 }
 0x179   : > { %v2643_v35 = vmax.f32 %v2059_v8, %v4695_v17  ;;  %v2644_v54 = vmax.f32 %v2060_v32, %v4696_v23  ;;  %v5562_v62 = vunpack.i.h.bf16 %v5560_v16  ;;  %v5561_v9 = vunpack.i.l.bf16 %v5560_v16 }
 0x17a   : > { %v2645_v13 = vmax.f32 %v2061_v10, %v4697_v34  ;;  %v2754_v14 = vmax.f32 %v7256_v59, %v2642_v31  ;;  %v1717_v63 = vsel %vm1696_vm9, %v1684_v26, %v5551_v33  ;;  %v2637_v37 = vmax.f32 %v2055_v60, %v7253_v56 }
 0x17b   : > { %v2755_v49 = vmax.f32 %v7258_v7, %v2643_v35  ;;  %v2756_v15 = vmax.f32 %v7273_v22, %v2644_v54  ;;  %v1751_v52 = vsel %vm1729_vm10, %v1718_v30, %v5562_v62  ;;  %v2881_v48 = vperm.slane %v2753_v57, 0  ;;  %v1914_v45 = vpop.f32.mrf.mxu0  ;;  %v8380_v35 = vld [vmem:[#allocation7_spill] sm:$0xff]  ;;  %v8382_v62 = vld [vmem:[#allocation8_spill] sm:$0xff] }
 0x17c   : > { %v2882_v5 = vperm.slane %v2754_v14, 0  ;;  %v1750_v43 = vsel %vm1729_vm10, %v1717_v63, %v5561_v9  ;;  %v1784_v22 = vsel %vm1762_vm11, %v1751_v52, %v5572_v27  ;;  %v2757_v61 = vmax.f32 %v2637_v37, %v2645_v13 }
 0x17d   : > { %v5565_v59 = vpop.permute.xlu1 %5564  ;;  %v2883_v50 = vperm.slane %v2755_v49, 0  ;;  %v2884_v38 = vperm.slane %v2756_v15, 0  ;;  %v1783_v7 = vsel %vm1762_vm11, %v1750_v43, %v5571_v6  ;;  %vm8378_vm14 = vcmask 1043459  }
 0x17e   : > { %v2950_v53 = vsel %vm8378_vm14, %v2881_v48, %v2949_v40  ;;  %v1805_v1 = vpack.c.bf16 %v1784_v22, %v1783_v7  ;;  %vm8379_vm13 = vcmask 1044484   ;;  %v2885_v18 = vperm.slane %v2757_v61, 0 }
 0x17f   : > { %v2951_v24 = vsel %vm8379_vm13, %v2882_v5, %v2950_v53  ;;  %v5557_v58 = vunpack.i.h.bf16 %v7199_v4  ;;  %v5556_v0 = vunpack.i.l.bf16 %v7199_v4  ;;  %v5567_v46 = vunpack.i.h.bf16 %v5565_v59 }
 0x180   : > { %v7337_v60 = vpop.permute.xlu0 %5574  ;;  %v2952_v56 = vsel %vm2942_vm4, %v2883_v50, %v2951_v24  ;;  %4660 = vmatmul.msk.bf16.gmra.mxu2 %vm1830_vm12, %v1805_v1  ;;  %v7343_v41 = vpop.permute.xlu2 %5614  ;;  %v5566_v33 = vunpack.i.l.bf16 %v5565_v59  ;;  %vm8381_vm13 = vcmask 23552   ;;  %v1915_v48 = vadd.f32 %v6947_v36, %v1914_v45 }
 0x181   : > { %v2953_v20 = vsel %vm2944_vm15, %v2884_v38, %v2952_v56  ;;  %v1547_v54 = vsel %vm8381_vm13, %v8380_v35, %v5557_v58  ;;  %vm8383_vm14 = vmmov %vm8381_vm13  ;;  %v5577_v5 = vunpack.i.h.bf16 %v7337_v60  ;;  %v5587_v61 = vunpack.i.h.bf16 %v7304_v28 }
 0x182   : > { %v2954_v6 = vsel %vm2946_vm3, %v2885_v18, %v2953_v20  ;;  %v1546_v13 = vsel %vm8383_vm14, %v8382_v62, %v5556_v0  ;;  %v1580_v63 = vsel %vm1564_vm5, %v1547_v54, %v5567_v46  ;;  %v5586_v53 = vunpack.i.l.bf16 %v7304_v28  ;;  %v8385_v28 = vld [vmem:[#allocation12_spill] sm:$0xff]  ;;  %vm8386_vm14 = vmmov %vm8381_vm13 }
 0x183   : > { %v2998_v27 = vrot.slane %v2954_v6, 7  ;;  %v1579_v52 = vsel %vm1564_vm5, %v1546_v13, %v5566_v33  ;;  %v1916_v56 = vpop.f32.mrf.mxu0  ;;  %v5617_v62 = vunpack.i.h.bf16 %v7343_v41 }
 0x184   : > { %v1917_v0 = vadd.f32 %v6947_v36, %v1916_v56 }
 0x185   : > { %v5580_v25 = vpop.permute.xlu1 %5579  ;;  %v7346_v32 = vsel %vm423_vm0, 0.0, %v2998_v27  ;;  %v3022_v10 = vsel %vm423_vm0, %v2998_v27, 0.0 }
 0x186   : > { %v5773_v55 = vpack.i.bf16 %v7346_v32, %v7237_v29  ;;  %v3069_v57 = vrot.slane %v7346_v32, 2  ;;  %v3070_v17 = vrot.slane %v3022_v10, 2  ;;  %v3047_v23 = vrot.slane %v7346_v32, 1 }
 0x187   : > { %v3048_v34 = vrot.slane %v3022_v10, 1  ;;  %v5582_v30 = vunpack.i.h.bf16 %v5580_v25  ;;  %v5581_v9 = vunpack.i.l.bf16 %v5580_v25  ;;  %v8384_v10 = vld [vmem:[#allocation11_spill] sm:$0xff] }
 0x188   : > { %v5590_v8 = vpop.permute.xlu0 %5589  ;;  %5774 = vrot.lane.b32.xlu1 %v5773_v55, %s6066_s26  ;;  %v7359_v31 = vsel %vm670_vm2, %v3069_v57, %v3070_v17  ;;  %v5630_v14 = vpop.permute.xlu2 %5629  ;;  %v1559_v55 = vsel %vm8381_vm13, %v8384_v10, %v5577_v5 }
 0x189   : > { %v7362_v26 = vsel %vm589_vm1, %v3047_v23, %v3048_v34  ;;  %v5783_v16 = vpack.i.bf16 %v7359_v31, %v7297_v3  ;;  %v5592_v49 = vunpack.i.h.bf16 %v5590_v8  ;;  %v5591_v15 = vunpack.i.l.bf16 %v5590_v8 }
 0x18a   : > { %v5778_v4 = vpack.i.bf16 %v7362_v26, %v7271_v11  ;;  %v5602_v11 = vunpack.i.h.bf16 %v7331_v47  ;;  %v5601_v3 = vunpack.i.l.bf16 %v7331_v47  ;;  %v1612_v43 = vsel %vm1597_vm6, %v1579_v52, %v5581_v9 }
 0x18b   : > { %5784 = vrot.lane.b32.xlu0 %v5783_v16, %s6070_s11  ;;  %v1613_v59 = vsel %vm1597_vm6, %v1580_v63, %v5582_v30  ;;  %v1645_v50 = vsel %vm1630_vm7, %v1612_v43, %v5591_v15  ;;  %v5576_v47 = vunpack.i.l.bf16 %v7337_v60  ;;  %v5632_v1 = vunpack.i.h.bf16 %v5630_v14 }
 0x18c   : > { %5779 = vrot.lane.b32.xlu2 %v5778_v4, %s8354_s18  ;;  %v1646_v38 = vsel %vm1630_vm7, %v1613_v59, %v5592_v49  ;;  %v5631_v24 = vunpack.i.l.bf16 %v5630_v14  ;;  %v1678_v18 = vsel %vm1663_vm8, %v1645_v50, %v5601_v3  ;;  %v7391_v8 = vmax.f32 %v1915_v48, 0.0 }
 0x18d   : > { %v7353_v19 = vpop.permute.xlu1 %5594  ;;  %v1679_v25 = vsel %vm1663_vm8, %v1646_v38, %v5602_v11  ;;  %v1558_v58 = vsel %vm8386_vm14, %v8385_v28, %v5576_v47  ;;  %v1592_v30 = vsel %vm1564_vm5, %v1559_v55, %v5587_v61  ;;  %v7416_v9 = vmax.f32 %v1917_v0, 0.0  ;;  %v7442_v0 = vld [vmem:[%s8315_s2] ss:$0 sm:$0xff]  ;;  %vm8389_vm14 = vmmov %vm8381_vm13 }
 0x18e   : > { %v5597_v45 = vunpack.i.h.bf16 %v7353_v19  ;;  %v5596_v46 = vunpack.i.l.bf16 %v7353_v19  ;;  %v2062_v13 = vrot.slane %v7391_v8, 2  ;;  %v1591_v14 = vsel %vm1564_vm5, %v1558_v58, %v5586_v53 }
 0x18f   : > { %v5616_v19 = vunpack.i.l.bf16 %v7343_v41  ;;  %v2064_v48 = vrot.slane %v7391_v8, 6  ;;  %v4698_v41 = vrot.slane %v7391_v8, 9  ;;  %v2065_v50 = vrot.slane %v7416_v9, 2 }
 0x190   : > { %v7368_v40 = vpop.permute.xlu0 %5604  ;;  %v7400_v17 = vpop.permute.xlu2 %5644  ;;  %v1625_v49 = vsel %vm1597_vm6, %v1592_v30, %v5597_v45  ;;  %v1624_v15 = vsel %vm1597_vm6, %v1591_v14, %v5596_v46  ;;  %v4699_v59 = vrot.slane %v2062_v13, 9  ;;  %v2066_v38 = vrot.slane %v7416_v9, 4 }
 0x191   : > { %v5607_v35 = vunpack.i.h.bf16 %v7368_v40  ;;  %v5606_v54 = vunpack.i.l.bf16 %v7368_v40  ;;  %v4702_v10 = vrot.slane %v7416_v9, 9  ;;  %v4703_v28 = vrot.slane %v2065_v50, 9 }
 0x192   : > { %v4704_v58 = vrot.slane %v2066_v38, 9  ;;  %v2646_v46 = vmax.f32 %v7391_v8, %v4698_v41 }
 0x193   : > { %v1657_v11 = vsel %vm1630_vm7, %v1624_v15, %v5606_v54  ;;  %v1658_v3 = vsel %vm1630_vm7, %v1625_v49, %v5607_v35  ;;  %v7452_v14 = vmax.f32 %v7416_v9, %v4702_v10  ;;  %v7454_v30 = vmax.f32 %v2065_v50, %v4703_v28 }
 0x195   : > { %v5610_v37 = vpop.permute.xlu1 %5609 }
 0x196   : > { %v5612_v7 = vunpack.i.h.bf16 %v5610_v37  ;;  %v5611_v22 = vunpack.i.l.bf16 %v5610_v37  ;;  %v2063_v37 = vrot.slane %v7391_v8, 4 }
 0x198   : > { %v5620_v20 = vpop.permute.xlu0 %5619  ;;  %v1711_v60 = vsel %vm1696_vm9, %v1678_v18, %v5611_v22  ;;  %v1712_v57 = vsel %vm1696_vm9, %v1679_v25, %v5612_v7  ;;  %v1690_v7 = vsel %vm1663_vm8, %v1657_v11, %v5616_v19  ;;  %v1691_v22 = vsel %vm1663_vm8, %v1658_v3, %v5617_v62  ;;  %v7429_v61 = vpop.permute.xlu2 %5659  ;;  %v8387_v11 = vld [vmem:[#allocation10_spill] sm:$0xff]  ;;  %v8388_v3 = vld [vmem:[#allocation9_spill] sm:$0xff] }
 0x199   : > { %v5622_v6 = vunpack.i.h.bf16 %v5620_v20  ;;  %v5621_v27 = vunpack.i.l.bf16 %v5620_v20  ;;  %v4700_v20 = vrot.slane %v2063_v37, 9  ;;  %v4701_v18 = vrot.slane %v2064_v48, 9 }
 0x19a   : > { %v7456_v19 = vmax.f32 %v2066_v38, %v4704_v58  ;;  %v5662_v38 = vunpack.i.h.bf16 %v7429_v61 }
 0x19b   : > { %v1744_v23 = vsel %vm1729_vm10, %v1711_v60, %v5621_v27  ;;  %v1745_v34 = vsel %vm1729_vm10, %v1712_v57, %v5622_v6  ;;  %v2067_v27 = vrot.slane %v7416_v9, 6  ;;  %v2648_v35 = vmax.f32 %v2063_v37, %v4700_v20 }
 0x19c   : > { %v1777_v16 = vsel %vm1762_vm11, %v1744_v23, %v5631_v24  ;;  %v1778_v4 = vsel %vm1762_vm11, %v1745_v34, %v5632_v1  ;;  %v7449_v54 = vmax.f32 %v2064_v48, %v4701_v18  ;;  %v5661_v20 = vunpack.i.l.bf16 %v7429_v61 }
 0x19d   : > { %v5625_v33 = vpop.permute.xlu1 %5624  ;;  %v1802_v36 = vpack.c.bf16 %v1778_v4, %v1777_v16  ;;  %v5646_v16 = vunpack.i.l.bf16 %v7400_v17  ;;  %v2647_v4 = vmax.f32 %v2062_v13, %v4699_v59  ;;  %v4705_v62 = vrot.slane %v2067_v27, 9 }
 0x19e   : > { %v5627_v63 = vunpack.i.h.bf16 %v5625_v33  ;;  %v5626_v52 = vunpack.i.l.bf16 %v5625_v33  ;;  %v5647_v33 = vunpack.i.h.bf16 %v7400_v17 }
 0x19f   : > { %4657 = vmatmul.msk.bf16.gmra.mxu0 %vm1830_vm12, %v1802_v36  ;;  %v7464_v50 = vmax.f32 %v2067_v27, %v4705_v62 }
 0x1a0   : > { %v5635_v40 = vpop.permute.xlu0 %5634  ;;  %v1723_v53 = vsel %vm1696_vm9, %v1690_v7, %v5626_v52  ;;  %v1724_v1 = vsel %vm1696_vm9, %v1691_v22, %v5627_v63  ;;  %v1555_v13 = vsel %vm8381_vm13, %v8387_v11, %v5647_v33  ;;  %v1554_v63 = vsel %vm8389_vm14, %v8388_v3, %v5646_v16  ;;  %v7462_v48 = vpop.permute.xlu2 %5674 }
 0x1a1   : > { %v5637_v5 = vunpack.i.h.bf16 %v5635_v40  ;;  %v5636_v43 = vunpack.i.l.bf16 %v5635_v40  ;;  %v5677_v27 = vunpack.i.h.bf16 %v7462_v48  ;;  %vm8390_vm13 = vcmask 1041409  }
 0x1a2   : > { %vm8391_vm14 = vcmask 1042434  }
 0x1a3   : > { %v1756_v25 = vsel %vm1729_vm10, %v1723_v53, %v5636_v43  ;;  %v1757_v6 = vsel %vm1729_vm10, %v1724_v1, %v5637_v5 }
 0x1a5   : > { %v5640_v47 = vpop.permute.xlu1 %5639 }
 0x1a6   : > { %v5642_v24 = vunpack.i.h.bf16 %v5640_v47  ;;  %v5641_v56 = vunpack.i.l.bf16 %v5640_v47 }
 0x1a8   : > { %v1919_v55 = vpop.f32.mrf.mxu0  ;;  %v1789_v60 = vsel %vm1762_vm11, %v1756_v25, %v5641_v56  ;;  %v1790_v57 = vsel %vm1762_vm11, %v1757_v6, %v5642_v24  ;;  %v5650_v34 = vpop.permute.xlu0 %5649 }
 0x1a9   : > { %v1920_v23 = vadd.f32 %v7442_v0, %v1919_v55  ;;  %v1808_v45 = vpack.c.bf16 %v1790_v57, %v1789_v60  ;;  %v5652_v52 = vunpack.i.h.bf16 %v5650_v34  ;;  %v5651_v37 = vunpack.i.l.bf16 %v5650_v34 }
 0x1ab   : > { %4663 = vmatmul.msk.bf16.gmra.mxu3 %vm1830_vm12, %v1808_v45  ;;  %v1984_v36 = vmax.f32 %v1920_v23, 0.0  ;;  %v1587_v18 = vsel %vm1564_vm5, %v1554_v63, %v5651_v37  ;;  %v1588_v25 = vsel %vm1564_vm5, %v1555_v13, %v5652_v52  ;;  %v7477_v63 = vpop.permute.xlu2 %5689 }
 0x1ad   : > { %v5655_v8 = vpop.permute.xlu1 %5654  ;;  %v2068_v49 = vrot.slane %v1984_v36, 2  ;;  %v2069_v15 = vrot.slane %v1984_v36, 4  ;;  %v2070_v40 = vrot.slane %v1984_v36, 6  ;;  %v4706_v17 = vrot.slane %v1984_v36, 9 }
 0x1ae   : > { %v5657_v7 = vunpack.i.h.bf16 %v5655_v8  ;;  %v5656_v56 = vunpack.i.l.bf16 %v5655_v8 }
 0x1af   : > { %v4707_v9 = vrot.slane %v2068_v49, 9  ;;  %v4708_v5 = vrot.slane %v2069_v15, 9  ;;  %v4709_v43 = vrot.slane %v2070_v40, 9  ;;  %v2654_v41 = vmax.f32 %v1984_v36, %v4706_v17 }
 0x1b0   : > { %v1921_v59 = vpop.f32.mrf.mxu0  ;;  %v5665_v47 = vpop.permute.xlu0 %5664  ;;  %v1621_v33 = vsel %vm1597_vm6, %v1588_v25, %v5657_v7  ;;  %v1620_v61 = vsel %vm1597_vm6, %v1587_v18, %v5656_v56 }
 0x1b1   : > { %v1922_v22 = vadd.f32 %v7442_v0, %v1921_v59  ;;  %v2655_v53 = vmax.f32 %v2068_v49, %v4707_v9  ;;  %v2656_v1 = vmax.f32 %v2069_v15, %v4708_v5  ;;  %v2758_v24 = vmax.f32 %v2646_v46, %v2654_v41 }
 0x1b2   : > { %v2657_v10 = vmax.f32 %v2070_v40, %v4709_v43  ;;  %v5676_v49 = vunpack.i.l.bf16 %v7462_v48  ;;  %v5666_v15 = vunpack.i.l.bf16 %v5665_v47  ;;  %v1653_v9 = vsel %vm1630_vm7, %v1620_v61, %v5661_v20 }
 0x1b3   : > { %v1985_v6 = vmax.f32 %v1922_v22, 0.0  ;;  %v2759_v55 = vmax.f32 %v2647_v4, %v2655_v53  ;;  %v2760_v60 = vmax.f32 %v2648_v35, %v2656_v1  ;;  %v2886_v45 = vperm.slane %v2758_v24, 0 }
 0x1b4   : > { %v2761_v4 = vmax.f32 %v7449_v54, %v2657_v10  ;;  %v5667_v35 = vunpack.i.h.bf16 %v5665_v47  ;;  %v1654_v5 = vsel %vm1630_vm7, %v1621_v33, %v5662_v38  ;;  %v1686_v59 = vsel %vm1663_vm8, %v1653_v9, %v5666_v15 }
 0x1b5   : > { %v2071_v57 = vrot.slane %v1985_v6, 2  ;;  %v2072_v28 = vrot.slane %v1985_v6, 4  ;;  %v2073_v58 = vrot.slane %v1985_v6, 6  ;;  %v4710_v23 = vrot.slane %v1985_v6, 9  ;;  %v5670_v34 = vpop.permute.xlu1 %5669 }
 0x1b6   : > { %v2887_v46 = vperm.slane %v2759_v55, 0  ;;  %v2888_v40 = vperm.slane %v2760_v60, 0  ;;  %v5672_v43 = vunpack.i.h.bf16 %v5670_v34  ;;  %v5671_v41 = vunpack.i.l.bf16 %v5670_v34  ;;  %v5705_v34 = vpop.permute.xlu2 %5704 }
 0x1b7   : > { %v4711_v16 = vrot.slane %v2071_v57, 9  ;;  %v4712_v36 = vrot.slane %v2072_v28, 9  ;;  %v4713_v62 = vrot.slane %v2073_v58, 9  ;;  %v2658_v8 = vmax.f32 %v1985_v6, %v4710_v23 }
 0x1b8   : > { %v2955_v17 = vsel %vm8390_vm13, %v2887_v46, %v2886_v45  ;;  %v5680_v3 = vpop.permute.xlu0 %5679  ;;  %v1687_v7 = vsel %vm1663_vm8, %v1654_v5, %v5667_v35  ;;  %v2889_v56 = vperm.slane %v2761_v4, 0  ;;  %vm8392_vm13 = vcmask 1043459  }
 0x1b9   : > { %v2659_v11 = vmax.f32 %v2071_v57, %v4711_v16  ;;  %v2660_v13 = vmax.f32 %v2072_v28, %v4712_v36  ;;  %v2661_v52 = vmax.f32 %v2073_v58, %v4713_v62  ;;  %v2762_v37 = vmax.f32 %v7452_v14, %v2658_v8 }
 0x1ba   : > { %v5682_v22 = vunpack.i.h.bf16 %v5680_v3  ;;  %v5681_v47 = vunpack.i.l.bf16 %v5680_v3  ;;  %v2956_v53 = vsel %vm8391_vm14, %v2888_v40, %v2955_v17  ;;  %v1719_v14 = vsel %vm1696_vm9, %v1686_v59, %v5671_v41 }
 0x1bb   : > { %v2763_v48 = vmax.f32 %v7454_v30, %v2659_v11  ;;  %v2764_v54 = vmax.f32 %v7456_v19, %v2660_v13  ;;  %v2890_v1 = vperm.slane %v2762_v37, 0  ;;  %v1720_v24 = vsel %vm1696_vm9, %v1687_v7, %v5672_v43  ;;  %v1934_v37 = vpop.f32.mrf.mxu2 }
 0x1bc   : > { %v2765_v19 = vmax.f32 %v7464_v50, %v2661_v52  ;;  %v1752_v18 = vsel %vm1729_vm10, %v1719_v14, %v5676_v49  ;;  %v1753_v25 = vsel %vm1729_vm10, %v1720_v24, %v5677_v27  ;;  %v2957_v55 = vsel %vm8392_vm13, %v2889_v56, %v2956_v53 }
 0x1bd   : > { %v5685_v38 = vpop.permute.xlu1 %5684  ;;  %v2891_v30 = vperm.slane %v2763_v48, 0  ;;  %v2892_v20 = vperm.slane %v2764_v54, 0  ;;  %v1785_v6 = vsel %vm1762_vm11, %v1752_v18, %v5681_v47  ;;  %v1786_v10 = vsel %vm1762_vm11, %v1753_v25, %v5682_v22 }
 0x1be   : > { %v1806_v60 = vpack.c.bf16 %v1786_v10, %v1785_v6  ;;  %vm8393_vm14 = vcmask 1044484   ;;  %v2893_v58 = vperm.slane %v2765_v19, 0  ;;  %v5687_v33 = vunpack.i.h.bf16 %v5685_v38  ;;  %v5720_v5 = vpop.permute.xlu2 %5719 }
 0x1bf   : > { %v2958_v28 = vsel %vm8393_vm14, %v2890_v1, %v2957_v55  ;;  %v5686_v61 = vunpack.i.l.bf16 %v5685_v38  ;;  %v5692_v49 = vunpack.i.h.bf16 %v7477_v63  ;;  %v5691_v4 = vunpack.i.l.bf16 %v7477_v63 }
 0x1c0   : > { %v5695_v57 = vpop.permute.xlu0 %5694  ;;  %v2959_v23 = vsel %vm2942_vm4, %v2891_v30, %v2958_v28  ;;  %4661 = vmatmul.msk.bf16.gmra.mxu2 %vm1830_vm12, %v1806_v60  ;;  %vm8394_vm13 = vcmask 23552   ;;  %v5707_v41 = vunpack.i.h.bf16 %v5705_v34  ;;  %v5722_v6 = vunpack.i.h.bf16 %v5720_v5 }
 0x1c1   : > { %v2960_v50 = vsel %vm2944_vm15, %v2892_v20, %v2959_v23  ;;  %v1561_v15 = vsel %vm8394_vm13, %v6759_v12, %v5687_v33  ;;  %vm8395_vm14 = vmmov %vm8394_vm13  ;;  %v5697_v17 = vunpack.i.h.bf16 %v5695_v57  ;;  %v5696_v11 = vunpack.i.l.bf16 %v5695_v57 }
 0x1c2   : > { %v2961_v27 = vsel %vm2946_vm3, %v2893_v58, %v2960_v50  ;;  %v1560_v40 = vsel %vm8395_vm14, %v6762_v44, %v5686_v61  ;;  %v1594_v54 = vsel %vm1564_vm5, %v1561_v15, %v5692_v49  ;;  %v5706_v44 = vunpack.i.l.bf16 %v5705_v34  ;;  %vm8396_vm14 = vmmov %vm8394_vm13 }
 0x1c3   : > { %v2999_v46 = vrot.slane %v2961_v27, 7  ;;  %v1593_v48 = vsel %vm1564_vm5, %v1560_v40, %v5691_v4  ;;  %v1627_v7 = vsel %vm1597_vm6, %v1594_v54, %v5697_v17  ;;  %v1936_v57 = vpop.f32.mrf.mxu2 }
 0x1c4   : > { %v1626_v59 = vsel %vm1597_vm6, %v1593_v48, %v5696_v11 }
 0x1c5   : > { %v5700_v45 = vpop.permute.xlu1 %5699  ;;  %v7501_v16 = vsel %vm423_vm0, 0.0, %v2999_v46  ;;  %v3023_v8 = vsel %vm423_vm0, %v2999_v46, 0.0 }
 0x1c6   : > { %v5788_v36 = vpack.i.bf16 %v7501_v16, %v7346_v32  ;;  %v3072_v35 = vrot.slane %v7501_v16, 2  ;;  %v5701_v13 = vunpack.i.l.bf16 %v5700_v45  ;;  %v3073_v3 = vrot.slane %v3023_v8, 2  ;;  %v5735_v28 = vpop.permute.xlu2 %5734 }
 0x1c7   : > { %v3050_v52 = vrot.slane %v7501_v16, 1  ;;  %v5702_v9 = vunpack.i.h.bf16 %v5700_v45  ;;  %v3051_v12 = vrot.slane %v3023_v8, 1  ;;  %v5737_v8 = vunpack.i.h.bf16 %v5735_v28 }
 0x1c8   : > { %v5710_v62 = vpop.permute.xlu0 %5709  ;;  %5789 = vrot.lane.b32.xlu1 %v5788_v36, %s6072_s27  ;;  %v7518_v43 = vsel %vm670_vm2, %v3072_v35, %v3073_v3  ;;  %v1659_v22 = vsel %vm1630_vm7, %v1626_v59, %v5701_v13  ;;  %v5736_v49 = vunpack.i.l.bf16 %v5735_v28 }
 0x1c9   : > { %v5711_v47 = vunpack.i.l.bf16 %v5710_v62  ;;  %v5798_v53 = vpack.i.bf16 %v7518_v43, %v7359_v31  ;;  %v7526_v1 = vsel %vm589_vm1, %v3050_v52, %v3051_v12  ;;  %v1660_v14 = vsel %vm1630_vm7, %v1627_v7, %v5702_v9 }
 0x1ca   : > { %v5712_v24 = vunpack.i.h.bf16 %v5710_v62  ;;  %v5793_v38 = vpack.i.bf16 %v7526_v1, %v7362_v26  ;;  %v1692_v20 = vsel %vm1663_vm8, %v1659_v22, %v5706_v44  ;;  %v5721_v31 = vunpack.i.l.bf16 %v5720_v5 }
 0x1cb   : > { %5799 = vrot.lane.b32.xlu0 %v5798_v53, %s8352_s28  ;;  %v1693_v18 = vsel %vm1663_vm8, %v1660_v14, %v5707_v41  ;;  %v1725_v25 = vsel %vm1696_vm9, %v1692_v20, %v5711_v47  ;;  %v1939_v4 = vpop.f32.mrf.mxu2 }
 0x1cc   : > { %5794 = vrot.lane.b32.xlu2 %v5793_v38, %s6074_s12  ;;  %v1726_v10 = vsel %vm1696_vm9, %v1693_v18, %v5712_v24  ;;  %v1940_v52 = vadd.f32 %v7442_v0, %v1939_v4 }
 0x1cd   : > { %v5715_v63 = vpop.permute.xlu1 %5714 }
 0x1ce   : > { %v5716_v56 = vunpack.i.l.bf16 %v5715_v63  ;;  %v5717_v19 = vunpack.i.h.bf16 %v5715_v63  ;;  %v1992_v22 = vmax.f32 %v1940_v52, 0.0 }
 0x1d0   : > { %v5725_v30 = vpop.permute.xlu0 %5724  ;;  %v1758_v26 = vsel %vm1729_vm10, %v1725_v25, %v5716_v56  ;;  %v1759_v60 = vsel %vm1729_vm10, %v1726_v10, %v5717_v19  ;;  %5804 = vrot.lane.b32.xlu1 %v5793_v38, %s6068_s29  ;;  %v2092_v18 = vrot.slane %v1992_v22, 2 }
 0x1d1   : > { %v5727_v58 = vunpack.i.h.bf16 %v5725_v30  ;;  %v5726_v23 = vunpack.i.l.bf16 %v5725_v30  ;;  %v1791_v50 = vsel %vm1762_vm11, %v1758_v26, %v5721_v31  ;;  %v1792_v34 = vsel %vm1762_vm11, %v1759_v60, %v5722_v6 }
 0x1d2   : > { %v1809_v45 = vpack.c.bf16 %v1792_v34, %v1791_v50  ;;  %v2093_v26 = vrot.slane %v1992_v22, 4  ;;  %v4739_v60 = vrot.slane %v2092_v18, 9 }
 0x1d3   : > { %v1563_v61 = vsel %vm8394_vm13, %v6925_v51, %v5727_v58  ;;  %v1562_v36 = vsel %vm8396_vm14, %v6928_v42, %v5726_v23  ;;  %v1935_v51 = vadd.f32 %v7442_v0, %v1934_v37  ;;  %v5750_v42 = vpop.permute.xlu2 %5749  ;;  %v1941_v19 = vpop.f32.mrf.mxu2  ;;  %v4738_v23 = vrot.slane %v1992_v22, 9 }
 0x1d4   : > { %5809 = vrot.lane.b32.xlu2 %v5798_v53, %s6069_s30  ;;  %4664 = vmatmul.msk.bf16.gmra.mxu3 %vm1830_vm12, %v1809_v45  ;;  %v5752_v5 = vunpack.i.h.bf16 %v5750_v42  ;;  %v5751_v48 = vunpack.i.l.bf16 %v5750_v42  ;;  %v1942_v10 = vadd.f32 %v7442_v0, %v1941_v19  ;;  %v4740_v34 = vrot.slane %v2093_v26, 9 }
 0x1d5   : > { %v5730_v55 = vpop.permute.xlu1 %5729  ;;  %v1990_v38 = vmax.f32 %v1935_v51, 0.0  ;;  %vm3313_vm13 = vcmask 261120  }
 0x1d6   : > { %v5732_v46 = vunpack.i.h.bf16 %v5730_v55  ;;  %v5731_v33 = vunpack.i.l.bf16 %v5730_v55  ;;  %v1937_v55 = vadd.f32 %v7442_v0, %v1936_v57  ;;  %v1993_v50 = vmax.f32 %v1942_v10, 0.0 }
 0x1d7   : > { %v2086_v6 = vrot.slane %v1990_v38, 2  ;;  %v2087_v28 = vrot.slane %v1990_v38, 4  ;;  %v2688_v4 = vmax.f32 %v2093_v26, %v4740_v34 }
 0x1d8   : > { %v5740_v27 = vpop.permute.xlu0 %5739  ;;  %v1596_v35 = vsel %vm1564_vm5, %v1563_v61, %v5732_v46  ;;  %v1595_v15 = vsel %vm1564_vm5, %v1562_v36, %v5731_v33  ;;  %v1991_v45 = vmax.f32 %v1937_v55, 0.0  ;;  %v2094_v46 = vrot.slane %v1992_v22, 6 }
 0x1d9   : > { %v5742_v40 = vunpack.i.h.bf16 %v5740_v27  ;;  %v5741_v17 = vunpack.i.l.bf16 %v5740_v27  ;;  %v1628_v9 = vsel %vm1597_vm6, %v1595_v15, %v5736_v49  ;;  %v1629_v63 = vsel %vm1597_vm6, %v1596_v35, %v5737_v8 }
 0x1da   : > { %v4731_v58 = vrot.slane %v2086_v6, 9  ;;  %v4730_v27 = vrot.slane %v1990_v38, 9  ;;  %v2687_v33 = vmax.f32 %v2092_v18, %v4739_v60  ;;  %v4732_v61 = vrot.slane %v2087_v28, 9 }
 0x1db   : > { %v1661_v54 = vsel %vm1630_vm7, %v1628_v9, %v5741_v17  ;;  %v1662_v12 = vsel %vm1630_vm7, %v1629_v63, %v5742_v40  ;;  %v2088_v36 = vrot.slane %v1990_v38, 6  ;;  %v2686_v8 = vmax.f32 %v1992_v22, %v4738_v23 }
 0x1dc   : > { %v2095_v49 = vrot.slane %v1993_v50, 2  ;;  %v4742_v35 = vrot.slane %v1993_v50, 9  ;;  %v2678_v15 = vmax.f32 %v1990_v38, %v4730_v27  ;;  %v2089_v40 = vrot.slane %v1991_v45, 2 }
 0x1dd   : > { %v5745_v62 = vpop.permute.xlu1 %5744  ;;  %v4741_v57 = vrot.slane %v2094_v46, 9  ;;  %v4733_v51 = vrot.slane %v2088_v36, 9  ;;  %v2090_v9 = vrot.slane %v1991_v45, 4  ;;  %vm8397_vm5 = vcmask 1041409  }
 0x1de   : > { %v5747_v11 = vunpack.i.h.bf16 %v5745_v62  ;;  %v5746_v13 = vunpack.i.l.bf16 %v5745_v62  ;;  %v2679_v62 = vmax.f32 %v2086_v6, %v4731_v58  ;;  %v2774_v52 = vmax.f32 %v2678_v15, %v2686_v8  ;;  %v1924_v27 = vpop.f32.mrf.mxu0  ;;  %vm8401_vm14 = vmmov %vm8397_vm5 }
 0x1df   : > { %v4743_v42 = vrot.slane %v2095_v49, 9  ;;  %vm8398_vm6 = vcmask 1042434   ;;  %vm8399_vm7 = vcmask 1043459  }
 0x1e0   : > { %v5755_v3 = vpop.permute.xlu0 %5754  ;;  %v1694_v41 = vsel %vm1663_vm8, %v1661_v54, %v5746_v13  ;;  %v1695_v44 = vsel %vm1663_vm8, %v1662_v12, %v5747_v11  ;;  %v2775_v17 = vmax.f32 %v2679_v62, %v2687_v33  ;;  %v2680_v11 = vmax.f32 %v2087_v28, %v4732_v61 }
 0x1e1   : > { %v5757_v59 = vunpack.i.h.bf16 %v5755_v3  ;;  %v5756_v7 = vunpack.i.l.bf16 %v5755_v3  ;;  %v1727_v47 = vsel %vm1696_vm9, %v1694_v41, %v5751_v48  ;;  %v1728_v53 = vsel %vm1696_vm9, %v1695_v44, %v5752_v5 }
 0x1e2   : > { %v4734_v13 = vrot.slane %v1991_v45, 9  ;;  %v2096_v3 = vrot.slane %v1993_v50, 4  ;;  %v2776_v63 = vmax.f32 %v2680_v11, %v2688_v4  ;;  %v2690_v5 = vmax.f32 %v1993_v50, %v4742_v35  ;;  %v5765_v35 = vpop.permute.xlu2 %5764 }
 0x1e3   : > { %v1760_v56 = vsel %vm1729_vm10, %v1727_v47, %v5756_v7  ;;  %v1761_v30 = vsel %vm1729_vm10, %v1728_v53, %v5757_v59  ;;  %v4735_v48 = vrot.slane %v2089_v40, 9  ;;  %v2689_v54 = vmax.f32 %v2094_v46, %v4741_v57 }
 0x1e4   : > { %v2903_v12 = vperm.slane %v2775_v17, 0  ;;  %v2682_v41 = vmax.f32 %v1991_v45, %v4734_v13  ;;  %v4744_v44 = vrot.slane %v2096_v3, 9  ;;  %v2681_v59 = vmax.f32 %v2088_v36, %v4733_v51 }
 0x1e5   : > { %v5760_v37 = vpop.permute.xlu1 %5759  ;;  %v2902_v7 = vperm.slane %v2774_v52, 0  ;;  %v2691_v22 = vmax.f32 %v2095_v49, %v4743_v42  ;;  %v4736_v47 = vrot.slane %v2090_v9, 9  ;;  %v2904_v53 = vperm.slane %v2776_v63, 0 }
 0x1e6   : > { %v5762_v14 = vunpack.i.h.bf16 %v5760_v37  ;;  %v5761_v24 = vunpack.i.l.bf16 %v5760_v37  ;;  %v2097_v37 = vrot.slane %v1993_v50, 6  ;;  %v2683_v38 = vmax.f32 %v2089_v40, %v4735_v48  ;;  %v1926_v4 = vpop.f32.mrf.mxu0 }
 0x1e7   : > { %v2692_v19 = vmax.f32 %v2096_v3, %v4744_v44  ;;  %v2684_v18 = vmax.f32 %v2090_v9, %v4736_v47  ;;  %vm8400_vm8 = vcmask 1044484   ;;  %v1925_v36 = vadd.f32 %v7442_v0, %v1924_v27 }
 0x1e8   : > { %v1793_v20 = vsel %vm1762_vm11, %v1760_v56, %v5761_v24  ;;  %v1794_v31 = vsel %vm1762_vm11, %v1761_v30, %v5762_v14  ;;  %v2778_v14 = vmax.f32 %v2682_v41, %v2690_v5  ;;  %v2091_v24 = vrot.slane %v1991_v45, 6  ;;  %v5770_v52 = vpop.permute.xlu0 %5769 }
 0x1e9   : > { %v1810_v25 = vpack.c.bf16 %v1794_v31, %v1793_v20  ;;  %v2777_v56 = vmax.f32 %v2681_v59, %v2689_v54  ;;  %v2969_v30 = vsel %vm8397_vm5, %v2903_v12, %v2902_v7  ;;  %v4745_v20 = vrot.slane %v2097_v37, 9 }
 0x1ea   : > { %v2779_v31 = vmax.f32 %v2683_v38, %v2691_v22  ;;  %v2906_v6 = vperm.slane %v2778_v14, 0  ;;  %v4737_v10 = vrot.slane %v2091_v24, 9  ;;  %v2780_v55 = vmax.f32 %v2684_v18, %v2692_v19 }
 0x1eb   : > { %4665 = vmatmul.msk.bf16.gmra.mxu3 %vm1830_vm12, %v1810_v25  ;;  %v2970_v25 = vsel %vm8398_vm6, %v2904_v53, %v2969_v30  ;;  %v2905_v26 = vperm.slane %v2777_v56, 0  ;;  %v2693_v60 = vmax.f32 %v2097_v37, %v4745_v20  ;;  %v1986_v49 = vmax.f32 %v1925_v36, 0.0 }
 0x1ec   : > { %v2907_v28 = vperm.slane %v2779_v31, 0  ;;  %v2685_v50 = vmax.f32 %v2091_v24, %v4737_v10  ;;  %v2908_v34 = vperm.slane %v2780_v55, 0  ;;  %v1927_v15 = vadd.f32 %v7442_v0, %v1926_v4  ;;  %v7589_v24 = vpop.permute.xlu2 %5779  ;;  %v3370_v55 = vld [vmem:[%s8316_s3 + $0x20] sm:$0xf] }
 0x1ed   : > { %v2971_v58 = vsel %vm8399_vm7, %v2905_v26, %v2970_v25  ;;  %v2074_v57 = vrot.slane %v1986_v49, 2  ;;  %v2075_v17 = vrot.slane %v1986_v49, 4  ;;  %v2076_v11 = vrot.slane %v1986_v49, 6 }
 0x1ee   : > { %v2972_v23 = vsel %vm8400_vm8, %v2906_v6, %v2971_v58  ;;  %v2781_v45 = vmax.f32 %v2685_v50, %v2693_v60  ;;  %vm3287_vm9 = vcmask 64512   ;;  %v5767_v3 = vunpack.i.h.bf16 %v5765_v35  ;;  %v1954_v42 = vpop.f32.mrf.mxu3 }
 0x1ef   : > { %v2973_v46 = vsel %vm2942_vm4, %v2907_v28, %v2972_v23  ;;  %v5766_v51 = vunpack.i.l.bf16 %v5765_v35  ;;  %v4714_v5 = vrot.slane %v1986_v49, 9  ;;  %v7582_v48 = vmax.f32 %v1927_v15, 0.0 }
 0x1f0   : > { %v2974_v33 = vsel %vm2944_vm15, %v2908_v34, %v2973_v46  ;;  %v2909_v61 = vperm.slane %v2781_v45, 0  ;;  %v4715_v41 = vrot.slane %v2074_v57, 9  ;;  %v4716_v44 = vrot.slane %v2075_v17, 9 }
 0x1f1   : > { %v4717_v59 = vrot.slane %v2076_v11, 9  ;;  %v5771_v7 = vunpack.i.l.bf16 %v5770_v52  ;;  %v1955_v37 = vadd.f32 %v7442_v0, %v1954_v42  ;;  %v3289_v22 = vsel %vm3287_vm9, %v7237_v29, %v5767_v3 }
 0x1f2   : > { %v2975_v62 = vsel %vm2946_vm3, %v2909_v61, %v2974_v33  ;;  %v3288_v47 = vsel %vm3287_vm9, %v6187_v2, %v5766_v51  ;;  %vm3296_vm10 = vcmask 130048   ;;  %v5772_v53 = vunpack.i.h.bf16 %v5770_v52 }
 0x1f3   : > { %v3001_v8 = vrot.slane %v2975_v62, 7  ;;  %v2662_v14 = vmax.f32 %v1986_v49, %v4714_v5  ;;  %v2077_v38 = vrot.slane %v7582_v48, 2  ;;  %v2663_v20 = vmax.f32 %v2074_v57, %v4715_v41 }
 0x1f4   : > { %v7598_v31 = vmax.f32 %v2075_v17, %v4716_v44  ;;  %v7600_v29 = vmax.f32 %v2076_v11, %v4717_v59  ;;  %v2078_v25 = vrot.slane %v7582_v48, 4  ;;  %v2079_v6 = vrot.slane %v7582_v48, 6 }
 0x1f5   : > { %v7577_v40 = vsel %vm423_vm0, 0.0, %v3001_v8  ;;  %v3025_v13 = vsel %vm423_vm0, %v3001_v8, 0.0  ;;  %v7606_v10 = vsel %vm3296_vm10, %v3288_v47, %v5771_v7  ;;  %v7608_v26 = vmax.f32 %v1955_v37, 0.0 }
 0x1f6   : > { %v3056_v9 = vrot.slane %v7577_v40, 1  ;;  %v3078_v63 = vrot.slane %v7577_v40, 2  ;;  %v3057_v54 = vrot.slane %v3025_v13, 1  ;;  %v3079_v12 = vrot.slane %v3025_v13, 2  ;;  %v1956_v49 = vpop.f32.mrf.mxu3 }
 0x1f7   : > { %v5782_v60 = vunpack.i.h.bf16 %v7589_v24  ;;  %v7615_v28 = vsel %vm3296_vm10, %v3289_v22, %v5772_v53  ;;  %v3392_v23 = vunpack.c.l.b16 %v3370_v55  ;;  %v5781_v50 = vunpack.i.l.bf16 %v7589_v24 }
 0x1f8   : > { %v7593_v30 = vsel %vm589_vm1, %v3056_v9, %v3057_v54  ;;  %v7596_v19 = vsel %vm670_vm2, %v3078_v63, %v3079_v12  ;;  %v4718_v34 = vrot.slane %v7582_v48, 9  ;;  %v4719_v27 = vrot.slane %v2077_v38, 9  ;;  %v5024_v54 = vld [vmem:[%s8316_s3 + $0x18] sm:$0xff] }
 0x1f9   : > { %vm3415_vm12 = vcmask 1043456   ;;  %v4720_v36 = vrot.slane %v2078_v25, 9  ;;  %v4721_v62 = vrot.slane %v2079_v6, 9  ;;  %v2110_v8 = vrot.slane %v7608_v26, 2 }
 0x1fa   : > { %v3397_v4 = vpack.c.b16 %v3392_v23, %v3392_v23  ;;  %v2111_v11 = vrot.slane %v7608_v26, 4  ;;  %v2112_v13 = vrot.slane %v7608_v26, 6  ;;  %v4762_v3 = vrot.slane %v7608_v26, 9 }
 0x1fb   : > { %v1957_v42 = vadd.f32 %v7442_v0, %v1956_v49  ;;  %v2666_v12 = vmax.f32 %v7582_v48, %v4718_v34  ;;  %v2667_v41 = vmax.f32 %v2077_v38, %v4719_v27  ;;  %v2668_v44 = vmax.f32 %v2078_v25, %v4720_v36 }
 0x1fc   : > { %v3417_v52 = vsel %vm3415_vm12, %v3397_v4, 0  ;;  %v4763_v7 = vrot.slane %v2110_v8, 9  ;;  %v7642_v38 = vmax.f32 %v7608_v26, %v4762_v3  ;;  %vm3322_vm5 = vcmask 326656  }
 0x1fd   : > { %3422 = vmatpush.bf16.msra.mxu1 %v3417_v52  ;;  %v7644_v25 = vmax.f32 %v1957_v42, 0.0  ;;  %vm3331_vm12 = vcmask 392192  }
 0x201   : > { %3423 = vmatpush.bf16.msra.mxu1 %v5024_v54 }
 0x203   : > { %v1944_v37 = vpop.f32.mrf.mxu2 }
 0x21c   : > { %v1929_v56 = vpop.f32.mrf.mxu0 }
 0x21d   : > { %v1930_v18 = vadd.f32 %v7442_v0, %v1929_v56  ;;  %v7631_v56 = vmax.f32 %v2079_v6, %v4721_v62  ;;  %v5775_v6 = vpop.permute.xlu1 %5774 }
 0x21e   : > { %v5777_v3 = vunpack.i.h.bf16 %v5775_v6 }
 0x21f   : > { %v1988_v58 = vmax.f32 %v1930_v18, 0.0  ;;  %v7639_v18 = vrot.slane %v2112_v13, 9 }
 0x221   : > { %v2080_v45 = vrot.slane %v1988_v58, 2  ;;  %v2081_v46 = vrot.slane %v1988_v58, 4  ;;  %v2082_v33 = vrot.slane %v1988_v58, 6  ;;  %v4722_v61 = vrot.slane %v1988_v58, 9 }
 0x223   : > { %v4723_v35 = vrot.slane %v2080_v45, 9  ;;  %v4724_v15 = vrot.slane %v2081_v46, 9  ;;  %v4725_v57 = vrot.slane %v2082_v33, 9  ;;  %v2670_v17 = vmax.f32 %v1988_v58, %v4722_v61 }
 0x224   : > { %v1931_v51 = vpop.f32.mrf.mxu0 }
 0x225   : > { %v2671_v9 = vmax.f32 %v2080_v45, %v4723_v35  ;;  %v2672_v63 = vmax.f32 %v2081_v46, %v4724_v15  ;;  %v2766_v5 = vmax.f32 %v2662_v14, %v2670_v17  ;;  %v1932_v59 = vadd.f32 %v7442_v0, %v1931_v51 }
 0x226   : > { %v2673_v22 = vmax.f32 %v2082_v33, %v4725_v57  ;;  %v7635_v14 = vrot.slane %v2111_v11, 9  ;;  %v7649_v45 = vmax.f32 %v2110_v8, %v4763_v7  ;;  %v1945_v46 = vadd.f32 %v7442_v0, %v1944_v37  ;;  %v5022_v8 = vld [vmem:[%s8316_s3 + $0x8] sm:$0xff] }
 0x227   : > { %v2767_v47 = vmax.f32 %v2663_v20, %v2671_v9  ;;  %v2768_v53 = vmax.f32 %v7598_v31, %v2672_v63  ;;  %v1989_v48 = vmax.f32 %v1932_v59, 0.0  ;;  %v2894_v55 = vperm.slane %v2766_v5, 0  ;;  %v5023_v31 = vld [vmem:[%s8316_s3 + $0x10] sm:$0xff] }
 0x228   : > { %v2769_v33 = vmax.f32 %v7600_v29, %v2673_v22  ;;  %v2113_v35 = vrot.slane %v7644_v25, 2  ;;  %v2114_v15 = vrot.slane %v7644_v25, 4  ;;  %v5776_v57 = vunpack.i.l.bf16 %v5775_v6  ;;  %3424 = vmatpush.bf16.msra.mxu1 %v5023_v31  ;;  %v5021_v31 = vld [vmem:[%s8316_s3] sm:$0xff] }
 0x229   : > { %v2895_v20 = vperm.slane %v2767_v47, 0  ;;  %v2083_v58 = vrot.slane %v1989_v48, 2  ;;  %v2084_v23 = vrot.slane %v1989_v48, 4  ;;  %v2085_v34 = vrot.slane %v1989_v48, 6 }
 0x22a   : > { %v4726_v27 = vrot.slane %v1989_v48, 9  ;;  %v2896_v61 = vperm.slane %v2768_v53, 0  ;;  %v2115_v9 = vrot.slane %v7644_v25, 6  ;;  %v1994_v63 = vmax.f32 %v1945_v46, 0.0  ;;  %v1946_v53 = vpop.f32.mrf.mxu2 }
 0x22b   : > { %v2962_v36 = vsel %vm8401_vm14, %v2895_v20, %v2894_v55  ;;  %v4727_v62 = vrot.slane %v2083_v58, 9  ;;  %v4728_v49 = vrot.slane %v2084_v23, 9  ;;  %v4729_v4 = vrot.slane %v2085_v34, 9 }
 0x22c   : > { %v2674_v17 = vmax.f32 %v1989_v48, %v4726_v27  ;;  %v2963_v5 = vsel %vm8398_vm6, %v2896_v61, %v2962_v36  ;;  %v4766_v59 = vrot.slane %v7644_v25, 9  ;;  %v2897_v7 = vperm.slane %v2769_v33, 0  ;;  %3425 = vmatpush.bf16.msra.mxu1 %v5022_v8 }
 0x22d   : > { %v2675_v51 = vmax.f32 %v2083_v58, %v4727_v62  ;;  %v2676_v29 = vmax.f32 %v2084_v23, %v4728_v49  ;;  %v2677_v52 = vmax.f32 %v2085_v34, %v4729_v4  ;;  %v3305_v47 = vsel %vm1762_vm11, %v7606_v10, %v5776_v57  ;;  %v5785_v58 = vpop.permute.xlu0 %5784 }
 0x22e   : > { %v1959_v42 = vpop.f32.mrf.mxu3  ;;  %v2770_v54 = vmax.f32 %v2666_v12, %v2674_v17  ;;  %v3306_v12 = vsel %vm1762_vm11, %v7615_v28, %v5777_v3  ;;  %v2098_v10 = vrot.slane %v1994_v63, 2  ;;  %v2099_v23 = vrot.slane %v1994_v63, 4 }
 0x22f   : > { %v2771_v37 = vmax.f32 %v2667_v41, %v2675_v51  ;;  %v2772_v22 = vmax.f32 %v2668_v44, %v2676_v29  ;;  %v1960_v55 = vadd.f32 %v7442_v0, %v1959_v42  ;;  %v2773_v20 = vmax.f32 %v7631_v56, %v2677_v52 }
 0x230   : > { %v2898_v48 = vperm.slane %v2770_v54, 0  ;;  %v2964_v44 = vsel %vm8399_vm7, %v2897_v7, %v2963_v5  ;;  %v2100_v34 = vrot.slane %v1994_v63, 6  ;;  %v4767_v46 = vrot.slane %v2113_v35, 9  ;;  %3426 = vmatpush.bf16.msra.mxu1 %v5021_v31 }
 0x231   : > { %v2899_v6 = vperm.slane %v2771_v37, 0  ;;  %v2900_v41 = vperm.slane %v2772_v22, 0  ;;  %v4768_v33 = vrot.slane %v2114_v15, 9  ;;  %v1947_v56 = vadd.f32 %v7442_v0, %v1946_v53 }
 0x232   : > { %v2965_v27 = vsel %vm8400_vm8, %v2898_v48, %v2964_v44  ;;  %v3314_v28 = vsel %vm3313_vm13, %v3305_v47, %v5781_v50  ;;  %v3315_v36 = vsel %vm3313_vm13, %v3306_v12, %v5782_v60  ;;  %v7681_v62 = vmax.f32 %v1960_v55, 0.0 }
 0x233   : > { %v2966_v61 = vsel %vm2942_vm4, %v2899_v6, %v2965_v27  ;;  %v2901_v49 = vperm.slane %v2773_v20, 0  ;;  %v5787_v4 = vunpack.i.h.bf16 %v5785_v58  ;;  %v5786_v57 = vunpack.i.l.bf16 %v5785_v58 }
 0x234   : > { %v4746_v17 = vrot.slane %v1994_v63, 9  ;;  %v2967_v8 = vsel %vm2944_vm15, %v2900_v41, %v2966_v61  ;;  %v4747_v3 = vrot.slane %v2098_v10, 9  ;;  %v4748_v51 = vrot.slane %v2099_v23, 9 }
 0x235   : > { %v4749_v29 = vrot.slane %v2100_v34, 9  ;;  %v2968_v52 = vsel %vm2946_vm3, %v2901_v49, %v2967_v8  ;;  %v7688_v24 = vmax.f32 %v2111_v11, %v7635_v14  ;;  %v7693_v60 = vmax.f32 %v2112_v13, %v7639_v18 }
 0x236   : > { %v7695_v50 = vmax.f32 %v1947_v56, 0.0  ;;  %v3000_v42 = vrot.slane %v2968_v52, 7  ;;  %v7699_v5 = vrot.slane %v2115_v9, 9  ;;  %v7702_v54 = vmax.f32 %v7644_v25, %v4766_v59  ;;  %v5795_v59 = vpop.permute.xlu2 %5794  ;;  %v1961_v55 = vpop.f32.mrf.mxu3 }
 0x237   : > { %v7704_v7 = vmax.f32 %v2113_v35, %v4767_v46  ;;  %v2116_v11 = vrot.slane %v7681_v62, 2  ;;  %v7707_v14 = vmax.f32 %v2114_v15, %v4768_v33  ;;  %v3323_v26 = vsel %vm3322_vm5, %v3314_v28, %v5786_v57 }
 0x238   : > { %v3324_v13 = vsel %vm3322_vm5, %v3315_v36, %v5787_v4  ;;  %v7711_v18 = vmax.f32 %v1994_v63, %v4746_v17  ;;  %v7713_v37 = vmax.f32 %v2098_v10, %v4747_v3  ;;  %v7715_v22 = vmax.f32 %v2099_v23, %v4748_v51 }
 0x239   : > { %v7717_v47 = vmax.f32 %v2100_v34, %v4749_v29  ;;  %v2117_v35 = vrot.slane %v7681_v62, 4  ;;  %v2101_v48 = vrot.slane %v7695_v50, 2  ;;  %v2102_v15 = vrot.slane %v7695_v50, 4 }
 0x23a   : > { %v5790_v53 = vpop.permute.xlu1 %5789  ;;  %v7723_v31 = vsel %vm423_vm0, 0.0, %v3000_v42  ;;  %v2118_v63 = vrot.slane %v7681_v62, 6  ;;  %v4771_v12 = vrot.slane %v2116_v11, 9  ;;  %v2103_v41 = vrot.slane %v7695_v50, 6 }
 0x23b   : > { %v5792_v20 = vunpack.i.h.bf16 %v5790_v53  ;;  %v5791_v6 = vunpack.i.l.bf16 %v5790_v53  ;;  %v5797_v44 = vunpack.i.h.bf16 %v5795_v59  ;;  %v4770_v58 = vrot.slane %v7681_v62, 9 }
 0x23c   : > { %vm8349_vm14 = vcmask 457728   ;;  %v5796_v10 = vunpack.i.l.bf16 %v5795_v59  ;;  %v4772_v23 = vrot.slane %v2117_v35, 9  ;;  %v1962_v34 = vadd.f32 %v7442_v0, %v1961_v55 }
 0x23d   : > { %v5813_v27 = vpack.i.bf16 %v7723_v31, %v7501_v16  ;;  %v3332_v46 = vsel %vm3331_vm12, %v3323_v26, %v5791_v6  ;;  %v3333_v33 = vsel %vm3331_vm12, %v3324_v13, %v5792_v20  ;;  %v3024_v56 = vsel %vm423_vm0, %v3000_v42, 0.0  ;;  %v5800_v3 = vpop.permute.xlu0 %5799 }
 0x23e   : > { %v3053_v61 = vrot.slane %v7723_v31, 1  ;;  %v4773_v28 = vrot.slane %v2118_v63, 9  ;;  %v2719_v36 = vmax.f32 %v2116_v11, %v4771_v12  ;;  %v3054_v49 = vrot.slane %v3024_v56, 1 }
 0x23f   : > { %5814 = vrot.lane.b32.xlu0 %v5813_v27, %s6066_s26  ;;  %v3075_v4 = vrot.slane %v7723_v31, 2  ;;  %v4750_v0 = vrot.slane %v7695_v50, 9  ;;  %v2718_v57 = vmax.f32 %v7681_v62, %v4770_v58  ;;  %v3076_v17 = vrot.slane %v3024_v56, 2 }
 0x240   : > { %vm8348_vm6 = vcmask 523264   ;;  %v7739_v8 = vmax.f32 %v1962_v34, 0.0  ;;  %v3055_v51 = vsel %vm589_vm1, %v3053_v61, %v3054_v49  ;;  %v3341_v29 = vsel %vm8349_vm14, %v3332_v46, %v5796_v10 }
 0x241   : > { %v3342_v52 = vsel %vm8349_vm14, %v3333_v33, %v5797_v44  ;;  %v5802_v42 = vunpack.i.h.bf16 %v5800_v3  ;;  %v5801_v11 = vunpack.i.l.bf16 %v5800_v3  ;;  %v5823_v26 = vpack.i.bf16 %v3055_v51, %v7526_v1  ;;  %v7754_v1 = vld [vmem:[%s8315_s2] ss:$0 sm:$0xff] }
 0x242   : > { %v3077_v13 = vsel %vm670_vm2, %v3075_v4, %v3076_v17  ;;  %v2720_v59 = vmax.f32 %v2117_v35, %v4772_v23  ;;  %v2721_v53 = vmax.f32 %v2118_v63, %v4773_v28  ;;  %v2791_v62 = vmax.f32 %v7649_v45, %v2719_v36 }
 0x243   : > { %v5828_v55 = vpack.i.bf16 %v3077_v13, %v7518_v43  ;;  %v1949_v20 = vpop.f32.mrf.mxu2  ;;  %5824 = vrot.lane.b32.xlu1 %v5823_v26, %s8354_s18  ;;  %v3350_v12 = vsel %vm8348_vm6, %v3341_v29, %v5801_v11  ;;  %v3351_v6 = vsel %vm8348_vm6, %v3342_v52, %v5802_v42  ;;  %vm8347_vm7 = vcmask 588800  }
 0x244   : > { %v1950_v35 = vadd.f32 %v7754_v1, %v1949_v20  ;;  %v2790_v63 = vmax.f32 %v7642_v38, %v2718_v57  ;;  %v2119_v45 = vrot.slane %v7739_v8, 2  ;;  %v3358_v43 = vpack.c.bf16 %v3351_v6, %v3350_v12 }
 0x245   : > { %5829 = vrot.lane.b32.xlu2 %v5828_v55, %s6070_s11  ;;  %v5818_v44 = vpack.i.bf16 %v7577_v40, %v7723_v31  ;;  %v4751_v58 = vrot.slane %v2101_v48, 9  ;;  %v4752_v10 = vrot.slane %v2102_v15, 9  ;;  %v4753_v23 = vrot.slane %v2103_v41, 9 }
 0x246   : > { %v1996_v34 = vmax.f32 %v1950_v35, 0.0  ;;  %v2792_v38 = vmax.f32 %v7688_v24, %v2720_v59  ;;  %v2793_v27 = vmax.f32 %v7693_v60, %v2721_v53  ;;  %v2919_v46 = vperm.slane %v2791_v62, 0  ;;  %4810 = vmatmul.msk.bf16.vlgmr.msra.gmra.mxu1 %vm8347_vm7, %v3358_v43 }
 0x247   : > { %v4774_v33 = vrot.slane %v7739_v8, 9  ;;  %5819 = vrot.lane.b32.xlu0 %v5818_v44, %s6072_s27  ;;  %v2918_v49 = vperm.slane %v2790_v63, 0  ;;  %v2120_v4 = vrot.slane %v7739_v8, 4  ;;  %v4775_v57 = vrot.slane %v2119_v45, 9 }
 0x248   : > { %v2104_v56 = vrot.slane %v1996_v34, 2  ;;  %v2105_v61 = vrot.slane %v1996_v34, 4  ;;  %v2106_v28 = vrot.slane %v1996_v34, 6  ;;  %v4754_v36 = vrot.slane %v1996_v34, 9 }
 0x249   : > { %v7775_v17 = vpack.i.bf16 %v7593_v30, %v3055_v51  ;;  %v2920_v52 = vperm.slane %v2792_v38, 0  ;;  %vm8402_vm8 = vcmask 1041409   ;;  %v2121_v11 = vrot.slane %v7739_v8, 6 }
 0x24a   : > { %v4755_v24 = vrot.slane %v2104_v56, 9  ;;  %v4756_v60 = vrot.slane %v2105_v61, 9  ;;  %v4757_v3 = vrot.slane %v2106_v28, 9  ;;  %v2702_v29 = vmax.f32 %v1996_v34, %v4754_v36 }
 0x24b   : > { %v2983_v42 = vsel %vm8402_vm8, %v2919_v46, %v2918_v49  ;;  %v7780_v26 = vpack.i.bf16 %v7596_v19, %v3077_v13  ;;  %v1951_v59 = vpop.f32.mrf.mxu2  ;;  %v2722_v53 = vmax.f32 %v7739_v8, %v4774_v33  ;;  %5834 = vrot.lane.b32.xlu1 %v7775_v17, %s6074_s12  ;;  %v2698_v20 = vmax.f32 %v7695_v50, %v4750_v0 }
 0x24c   : > { %v2703_v62 = vmax.f32 %v2104_v56, %v4755_v24  ;;  %v2704_v55 = vmax.f32 %v2105_v61, %v4756_v60  ;;  %v2782_v51 = vmax.f32 %v7711_v18, %v2702_v29  ;;  %v2699_v12 = vmax.f32 %v2101_v48, %v4751_v58 }
 0x24d   : > { %v4776_v6 = vrot.slane %v2120_v4, 9  ;;  %5839 = vrot.lane.b32.xlu2 %v7780_v26, %s8352_s28  ;;  %v1952_v13 = vadd.f32 %v7754_v1, %v1951_v59  ;;  %v2723_v35 = vmax.f32 %v2119_v45, %v4775_v57  ;;  %v2705_v8 = vmax.f32 %v2106_v28, %v4757_v3 }
 0x24e   : > { %v2783_v63 = vmax.f32 %v7713_v37, %v2703_v62  ;;  %v2784_v18 = vmax.f32 %v7715_v22, %v2704_v55  ;;  %v2700_v43 = vmax.f32 %v2102_v15, %v4752_v10  ;;  %v2921_v44 = vperm.slane %v2793_v27, 0 }
 0x24f   : > { %vm8403_vm8 = vcmask 1042434   ;;  %v1997_v34 = vmax.f32 %v1952_v13, 0.0  ;;  %v4777_v48 = vrot.slane %v2121_v11, 9  ;;  %v2794_v58 = vmax.f32 %v7702_v54, %v2722_v53 }
 0x250   : > { %v2984_v0 = vsel %vm8403_vm8, %v2920_v52, %v2983_v42  ;;  %v2910_v38 = vperm.slane %v2782_v51, 0  ;;  %v2911_v46 = vperm.slane %v2783_v63, 0  ;;  %v2724_v28 = vmax.f32 %v2120_v4, %v4776_v6 }
 0x251   : > { %v2107_v33 = vrot.slane %v1997_v34, 2  ;;  %v2108_v56 = vrot.slane %v1997_v34, 4  ;;  %v2109_v45 = vrot.slane %v1997_v34, 6  ;;  %v4758_v61 = vrot.slane %v1997_v34, 9 }
 0x252   : > { %v2795_v37 = vmax.f32 %v7704_v7, %v2723_v35  ;;  %v2785_v22 = vmax.f32 %v7717_v47, %v2705_v8  ;;  %v2912_v36 = vperm.slane %v2784_v18, 0  ;;  %vm8404_vm7 = vcmask 1041409  }
 0x253   : > { %v2976_v15 = vsel %vm8404_vm7, %v2911_v46, %v2910_v38  ;;  %v4759_v10 = vrot.slane %v2107_v33, 9  ;;  %v4760_v27 = vrot.slane %v2108_v56, 9  ;;  %v4761_v49 = vrot.slane %v2109_v45, 9 }
 0x254   : > { %v2701_v54 = vmax.f32 %v2103_v41, %v4753_v23  ;;  %vm8405_vm8 = vcmask 1043459   ;;  %v2922_v24 = vperm.slane %v2794_v58, 0  ;;  %v2706_v60 = vmax.f32 %v1997_v34, %v4758_v61 }
 0x255   : > { %v2985_v57 = vsel %vm8405_vm8, %v2921_v44, %v2984_v0  ;;  %v2725_v3 = vmax.f32 %v2121_v11, %v4777_v48  ;;  %v2707_v29 = vmax.f32 %v2107_v33, %v4759_v10  ;;  %v2708_v4 = vmax.f32 %v2108_v56, %v4760_v27 }
 0x256   : > { %v2709_v52 = vmax.f32 %v2109_v45, %v4761_v49  ;;  %v2796_v7 = vmax.f32 %v7707_v14, %v2724_v28  ;;  %v2923_v47 = vperm.slane %v2795_v37, 0  ;;  %vm8406_vm6 = vcmask 1042434  }
 0x257   : > { %v2977_v42 = vsel %vm8406_vm6, %v2912_v36, %v2976_v15  ;;  %v2786_v59 = vmax.f32 %v2698_v20, %v2706_v60  ;;  %v2913_v53 = vperm.slane %v2785_v22, 0  ;;  %v2787_v62 = vmax.f32 %v2699_v12, %v2707_v29  ;;  %v1964_v18 = vpop.f32.mrf.mxu3 }
 0x258   : > { %v2788_v55 = vmax.f32 %v2700_v43, %v2708_v4  ;;  %v2789_v51 = vmax.f32 %v2701_v54, %v2709_v52  ;;  %vm8407_vm7 = vcmask 1044484   ;;  %v2717_v23 = vmax.f32 %v2115_v9, %v7699_v5 }
 0x259   : > { %v2986_v50 = vsel %vm8407_vm7, %v2922_v24, %v2985_v57  ;;  %v2914_v41 = vperm.slane %v2786_v59, 0  ;;  %v2915_v11 = vperm.slane %v2787_v62, 0  ;;  %v2978_v13 = vsel %vm8405_vm8, %v2913_v53, %v2977_v42  ;;  %vm8408_vm14 = vmmov %vm8407_vm7 }
 0x25a   : > { %v2916_v6 = vperm.slane %v2788_v55, 0  ;;  %v2924_v14 = vperm.slane %v2796_v7, 0  ;;  %v2797_v8 = vmax.f32 %v2717_v23, %v2725_v3  ;;  %v2917_v20 = vperm.slane %v2789_v51, 0  ;;  %vm8410_vm7 = vmmov %vm8405_vm8 }
 0x25b   : > { %v2979_v35 = vsel %vm8408_vm14, %v2914_v41, %v2978_v13  ;;  %v2987_v63 = vsel %vm2942_vm4, %v2923_v47, %v2986_v50  ;;  %v1965_v56 = vadd.f32 %v7754_v1, %v1964_v18  ;;  %vm8409_vm14 = vcmask 1041409  }
 0x25c   : > { %v2980_v12 = vsel %vm2942_vm4, %v2915_v11, %v2979_v35  ;;  %v2988_v9 = vsel %vm2944_vm15, %v2924_v14, %v2987_v63  ;;  %v2925_v5 = vperm.slane %v2797_v8, 0  ;;  %vm8411_vm8 = vcmask 1044484  }
 0x25d   : > { %v2981_v43 = vsel %vm2944_vm15, %v2916_v6, %v2980_v12  ;;  %v2002_v15 = vmax.f32 %v1965_v56, 0.0 }
 0x25e   : > { %v2982_v44 = vsel %vm2946_vm3, %v2917_v20, %v2981_v43  ;;  %v2989_v48 = vsel %vm2946_vm3, %v2925_v5, %v2988_v9 }
 0x25f   : > { %v3002_v25 = vrot.slane %v2982_v44, 7  ;;  %v1966_v28 = vpop.f32.mrf.mxu3  ;;  %v3003_v37 = vrot.slane %v2989_v48, 7  ;;  %v2122_v57 = vrot.slane %v2002_v15, 2  ;;  %v2123_v60 = vrot.slane %v2002_v15, 4 }
 0x260   : > { %v2124_v52 = vrot.slane %v2002_v15, 6  ;;  %v4778_v7 = vrot.slane %v2002_v15, 9 }
 0x261   : > { %v7818_v0 = vsel %vm423_vm0, 0.0, %v3002_v25  ;;  %v3026_v34 = vsel %vm423_vm0, %v3002_v25, 0.0  ;;  %v7835_v27 = vsel %vm423_vm0, 0.0, %v3003_v37  ;;  %v3027_v49 = vsel %vm423_vm0, %v3003_v37, 0.0 }
 0x262   : > { %v5843_v58 = vpack.i.bf16 %v7818_v0, %v7577_v40  ;;  %v3081_v38 = vrot.slane %v7818_v0, 2  ;;  %v3082_v46 = vrot.slane %v3026_v34, 2  ;;  %v3059_v33 = vrot.slane %v7818_v0, 1 }
 0x263   : > { %v3060_v61 = vrot.slane %v3026_v34, 1  ;;  %v5858_v54 = vpack.i.bf16 %v7835_v27, %v7818_v0  ;;  %v3063_v24 = vrot.slane %v3027_v49, 1  ;;  %v3084_v4 = vrot.slane %v7835_v27, 2 }
 0x264   : > { %5844 = vrot.lane.b32.xlu2 %v5843_v58, %s6066_s26  ;;  %v3083_v45 = vsel %vm670_vm2, %v3081_v38, %v3082_v46  ;;  %v4779_v47 = vrot.slane %v2122_v57, 9  ;;  %v3085_v42 = vrot.slane %v3027_v49, 2  ;;  %v4780_v62 = vrot.slane %v2123_v60, 9 }
 0x265   : > { %v5853_v22 = vpack.i.bf16 %v3083_v45, %v7596_v19  ;;  %v3061_v36 = vsel %vm589_vm1, %v3059_v33, %v3060_v61  ;;  %v3062_v19 = vrot.slane %v7835_v27, 1  ;;  %v4781_v6 = vrot.slane %v2124_v52, 9 }
 0x266   : > { %v5848_v10 = vpack.i.bf16 %v3061_v36, %v7593_v30  ;;  %v1967_v30 = vadd.f32 %v7754_v1, %v1966_v28  ;;  %v2726_v13 = vmax.f32 %v2002_v15, %v4778_v7  ;;  %v2727_v14 = vmax.f32 %v2122_v57, %v4779_v47 }
 0x267   : > { %5854 = vrot.lane.b32.xlu1 %v5853_v22, %s6070_s11  ;;  %v7848_v53 = vsel %vm589_vm1, %v3062_v19, %v3063_v24  ;;  %v2728_v63 = vmax.f32 %v2123_v60, %v4780_v62  ;;  %v2729_v33 = vmax.f32 %v2124_v52, %v4781_v6 }
 0x268   : > { %5849 = vrot.lane.b32.xlu0 %v5848_v10, %s8354_s18  ;;  %v2003_v55 = vmax.f32 %v1967_v30, 0.0  ;;  %v5883_v51 = vpack.i.bf16 %v7848_v53, %v3061_v36 }
 0x26a   : > { %v2126_v18 = vrot.slane %v2003_v55, 4  ;;  %v2127_v25 = vrot.slane %v2003_v55, 6  ;;  %v4782_v56 = vrot.slane %v2003_v55, 9 }
 0x26c   : > { %5859 = vrot.lane.b32.xlu2 %v5858_v54, %s6072_s27  ;;  %v4784_v37 = vrot.slane %v2126_v18, 9 }
 0x26e   : > { %v1969_v3 = vpop.f32.mrf.mxu3 }
 0x26f   : > { %v1970_v29 = vadd.f32 %v7754_v1, %v1969_v3  ;;  %5874 = vrot.lane.b32.xlu1 %v7780_v26, %s6069_s30  ;;  %v7854_v26 = vsel %vm670_vm2, %v3084_v4, %v3085_v42  ;;  %v2730_v3 = vmax.f32 %v2003_v55, %v4782_v56  ;;  %v2732_v4 = vmax.f32 %v2126_v18, %v4784_v37 }
 0x270   : > { %5864 = vrot.lane.b32.xlu0 %v7775_v17, %s6068_s29  ;;  %v2125_v17 = vrot.slane %v2003_v55, 2  ;;  %v5878_v43 = vpack.i.bf16 %v7854_v26, %v3083_v45  ;;  %v4785_v45 = vrot.slane %v2127_v25, 9 }
 0x271   : > { %v2004_v59 = vmax.f32 %v1970_v29, 0.0 }
 0x272   : > { %v4783_v61 = vrot.slane %v2125_v17, 9  ;;  %v2733_v7 = vmax.f32 %v2127_v25, %v4785_v45 }
 0x273   : > { %v2128_v50 = vrot.slane %v2004_v59, 2  ;;  %v2129_v41 = vrot.slane %v2004_v59, 4  ;;  %v2130_v23 = vrot.slane %v2004_v59, 6  ;;  %v4786_v11 = vrot.slane %v2004_v59, 9 }
 0x274   : > { %5884 = vrot.lane.b32.xlu2 %v5883_v51, %s6068_s29  ;;  %v2731_v29 = vmax.f32 %v2125_v17, %v4783_v61 }
 0x275   : > { %v4787_v35 = vrot.slane %v2128_v50, 9  ;;  %v4788_v8 = vrot.slane %v2129_v41, 9  ;;  %v4789_v20 = vrot.slane %v2130_v23, 9  ;;  %v2734_v12 = vmax.f32 %v2004_v59, %v4786_v11 }
 0x276   : > { %v1971_v44 = vpop.f32.mrf.mxu3 }
 0x277   : > { %v2735_v9 = vmax.f32 %v2128_v50, %v4787_v35  ;;  %v2736_v5 = vmax.f32 %v2129_v41, %v4788_v8  ;;  %v2798_v34 = vmax.f32 %v2726_v13, %v2734_v12  ;;  %v1972_v48 = vadd.f32 %v7754_v1, %v1971_v44  ;;  %5879 = vrot.lane.b32.xlu1 %v5878_v43, %s8352_s28 }
 0x278   : > { %v2737_v58 = vmax.f32 %v2130_v23, %v4789_v20  ;;  %5869 = vrot.lane.b32.xlu0 %v5883_v51, %s6074_s12 }
 0x279   : > { %v2799_v38 = vmax.f32 %v2727_v14, %v2735_v9  ;;  %v2800_v46 = vmax.f32 %v2728_v63, %v2736_v5  ;;  %v2005_v28 = vmax.f32 %v1972_v48, 0.0  ;;  %v2926_v22 = vperm.slane %v2798_v34, 0 }
 0x27a   : > { %v2801_v1 = vmax.f32 %v2729_v33, %v2737_v58 }
 0x27b   : > { %v2927_v36 = vperm.slane %v2799_v38, 0  ;;  %v2131_v15 = vrot.slane %v2005_v28, 2  ;;  %v2132_v10 = vrot.slane %v2005_v28, 4  ;;  %v2133_v49 = vrot.slane %v2005_v28, 6 }
 0x27c   : > { %v4790_v54 = vrot.slane %v2005_v28, 9  ;;  %v2928_v57 = vperm.slane %v2800_v46, 0  ;;  %v2929_v50 = vperm.slane %v2801_v1, 0 }
 0x27d   : > { %v2990_v19 = vsel %vm8409_vm14, %v2927_v36, %v2926_v22  ;;  %v4791_v24 = vrot.slane %v2131_v15, 9  ;;  %v4792_v60 = vrot.slane %v2132_v10, 9  ;;  %v4793_v30 = vrot.slane %v2133_v49, 9 }
 0x27e   : > { %v2738_v52 = vmax.f32 %v2005_v28, %v4790_v54  ;;  %v2991_v62 = vsel %vm8406_vm6, %v2928_v57, %v2990_v19  ;;  %v5805_v28 = vpop.permute.xlu1 %5804 }
 0x27f   : > { %v2739_v47 = vmax.f32 %v2131_v15, %v4791_v24  ;;  %v2740_v42 = vmax.f32 %v2132_v10, %v4792_v60  ;;  %v2741_v59 = vmax.f32 %v2133_v49, %v4793_v30  ;;  %v2992_v13 = vsel %vm8410_vm7, %v2929_v50, %v2991_v62 }
 0x280   : > { %v2802_v51 = vmax.f32 %v2730_v3, %v2738_v52  ;;  %5889 = vrot.lane.b32.xlu0 %v5878_v43, %s6069_s30  ;;  %v5806_v45 = vunpack.i.l.bf16 %v5805_v28 }
 0x281   : > { %v2803_v41 = vmax.f32 %v2731_v29, %v2739_v47  ;;  %v2804_v23 = vmax.f32 %v2732_v4, %v2740_v42  ;;  %v2805_v11 = vmax.f32 %v2733_v7, %v2741_v59 }
 0x282   : > { %v2930_v6 = vperm.slane %v2802_v51, 0  ;;  %v3290_v15 = vsel %vm3287_vm9, %v7346_v32, %v5806_v45 }
 0x283   : > { %v2931_v55 = vperm.slane %v2803_v41, 0  ;;  %v2932_v14 = vperm.slane %v2804_v23, 0  ;;  %v2933_v8 = vperm.slane %v2805_v11, 0 }
 0x284   : > { %v2993_v35 = vsel %vm8411_vm8, %v2930_v6, %v2992_v13  ;;  %vm3725_vm8 = vcmask 1042432  }
 0x285   : > { %v2994_v20 = vsel %vm2942_vm4, %v2931_v55, %v2993_v35  ;;  %v7904_v55 = vld [vmem:[%s8317_s4] ss:$0 sm:$0xff] }
 0x286   : > { %v2995_v12 = vsel %vm2944_vm15, %v2932_v14, %v2994_v20  ;;  %vm8416_vm15 = vcmask 588800  }
 0x287   : > { %v2996_v63 = vsel %vm2946_vm3, %v2933_v8, %v2995_v12  ;;  %vm8414_vm3 = vcmask 523264  }
 0x288   : > { %v3004_v17 = vrot.slane %v2996_v63, 7  ;;  %vm8415_vm4 = vmmov %vm8414_vm3 }
 0x28a   : > { %v3020_v18 = vsel %vm423_vm0, 0.0, %v3004_v17  ;;  %v3028_v44 = vsel %vm423_vm0, %v3004_v17, 0.0 }
 0x28b   : > { %v5893_v43 = vpack.i.bf16 %v3020_v18, %v7835_v27  ;;  %v3092_v25 = vrot.slane %v3020_v18, 2  ;;  %v3093_v9 = vrot.slane %v3028_v44, 2  ;;  %v3089_v5 = vrot.slane %v3020_v18, 1 }
 0x28c   : > { %v3090_v34 = vrot.slane %v3028_v44, 1  ;;  %v5908_v33 = vpack.i.bf16 %v6187_v2, %v3020_v18 }
 0x28d   : > { %5894 = vrot.lane.b32.xlu1 %v5893_v43, %s6066_s26  ;;  %v3094_v48 = vsel %vm670_vm2, %v3092_v25, %v3093_v9 }
 0x28e   : > { %v5903_v58 = vpack.i.bf16 %v3094_v48, %v7854_v26  ;;  %v3091_v38 = vsel %vm589_vm1, %v3089_v5, %v3090_v34  ;;  %v5918_v56 = vpack.i.bf16 %v7287_v39, %v3094_v48  ;;  %v5810_v26 = vpop.permute.xlu2 %5809  ;;  %vm8412_vm1 = vcmask 457728  }
 0x28f   : > { %v5898_v46 = vpack.i.bf16 %v3091_v38, %v7848_v53  ;;  %v5913_v61 = vpack.i.bf16 %v7268_v21, %v3091_v38  ;;  %v5807_v53 = vunpack.i.h.bf16 %v5805_v28  ;;  %v5812_v21 = vunpack.i.h.bf16 %v5810_v26  ;;  %vm8413_vm2 = vmmov %vm8412_vm1 }
 0x290   : > { %5904 = vrot.lane.b32.xlu0 %v5903_v58, %s6070_s11  ;;  %v5811_v49 = vunpack.i.l.bf16 %v5810_v26 }
 0x291   : > { %5899 = vrot.lane.b32.xlu2 %v5898_v46, %s8354_s18  ;;  %v3291_v2 = vsel %vm3287_vm9, %v7501_v16, %v5807_v53 }
 0x292   : > { %v3299_v19 = vsel %vm3296_vm10, %v3290_v15, %v5811_v49  ;;  %v3300_v24 = vsel %vm3296_vm10, %v3291_v2, %v5812_v21 }
 0x295   : > { %5909 = vrot.lane.b32.xlu1 %v5908_v33, %s6072_s27 }
 0x298   : > { %5919 = vrot.lane.b32.xlu0 %v5918_v56, %s8352_s28 }
 0x299   : > { %5914 = vrot.lane.b32.xlu2 %v5913_v61, %s6074_s12  ;;  %s8350_s12 = smov 96  }
 0x29f   : > { %v5830_v22 = vpop.permute.xlu2 %5829 }
 0x2a0   : > { %v5832_v4 = vunpack.i.h.bf16 %v5830_v22  ;;  %v5831_v52 = vunpack.i.l.bf16 %v5830_v22 }
 0x2a7   : > { %v5840_v7 = vpop.permute.xlu2 %5839 }
 0x2a8   : > { %v5842_v50 = vunpack.i.h.bf16 %v5840_v7  ;;  %v5841_v41 = vunpack.i.l.bf16 %v5840_v7 }
 0x2b1   : > { %v5815_v37 = vpop.permute.xlu0 %5814 }
 0x2b2   : > { %v5817_v39 = vunpack.i.h.bf16 %v5815_v37  ;;  %v5816_v10 = vunpack.i.l.bf16 %v5815_v37 }
 0x2b4   : > { %v3307_v60 = vsel %vm1762_vm11, %v3299_v19, %v5816_v10  ;;  %v3308_v30 = vsel %vm1762_vm11, %v3300_v24, %v5817_v39 }
 0x2b5   : > { %v5825_v36 = vpop.permute.xlu1 %5824 }
 0x2b6   : > { %v5827_v54 = vunpack.i.h.bf16 %v5825_v36  ;;  %v5826_v1 = vunpack.i.l.bf16 %v5825_v36 }
 0x2b8   : > { %v3316_v16 = vsel %vm3313_vm13, %v3307_v60, %v5826_v1  ;;  %v3317_v3 = vsel %vm3313_vm13, %v3308_v30, %v5827_v54 }
 0x2b9   : > { %v5820_v57 = vpop.permute.xlu0 %5819  ;;  %v3325_v42 = vsel %vm3322_vm5, %v3316_v16, %v5831_v52  ;;  %v3326_v59 = vsel %vm3322_vm5, %v3317_v3, %v5832_v4 }
 0x2ba   : > { %v5822_v32 = vunpack.i.h.bf16 %v5820_v57  ;;  %v5821_v29 = vunpack.i.l.bf16 %v5820_v57 }
 0x2bc   : > { %v3334_v23 = vsel %vm3331_vm12, %v3325_v42, %v5821_v29  ;;  %v3335_v11 = vsel %vm3331_vm12, %v3326_v59, %v5822_v32  ;;  %v8417_v29 = vld [vmem:[#allocation6_spill] sm:$0xff] }
 0x2bd   : > { %v5835_v47 = vpop.permute.xlu1 %5834  ;;  %v3721_v4 = vrot.slane %v8417_v29, 4  ;;  %v4846_v59 = vrot.slane %v8417_v29, 9 }
 0x2be   : > { %v5837_v62 = vunpack.i.h.bf16 %v5835_v47  ;;  %v5836_v51 = vunpack.i.l.bf16 %v5835_v47  ;;  %v5845_v52 = vpop.permute.xlu2 %5844 }
 0x2c0   : > { %v3343_v6 = vsel %vm8412_vm1, %v3334_v23, %v5836_v51  ;;  %v3344_v13 = vsel %vm8413_vm2, %v3335_v11, %v5837_v62  ;;  %vm8418_vm1 = vcmask 1044480   ;;  %vm3726_vm2 = vcmask 1046532  }
 0x2c1   : > { %v3352_v14 = vsel %vm8414_vm3, %v3343_v6, %v5841_v41  ;;  %v3353_v35 = vsel %vm8415_vm4, %v3344_v13, %v5842_v50  ;;  %v3730_v62 = vrot.slane %v3721_v4, 5  ;;  %vm7922_vm3 = vmor %vm3725_vm8, %vm3726_vm2  ;;  %vm3744_vm4 = vcmask 1041408  }
 0x2c2   : > { %v3359_v8 = vpack.c.bf16 %v3353_v35, %v3352_v14  ;;  %v5847_v35 = vunpack.i.h.bf16 %v5845_v52  ;;  %vm8425_vm8 = vcmask 523264   ;;  %vm8427_vm2 = vcmask 588800  }
 0x2c3   : > { %v3428_v20 = vpop.f32.mrf.mxu1 }
 0x2c4   : > { %v3429_v12 = vadd.f32 %v7904_v55, %v3428_v20  ;;  %4811 = vmatmul.msk.bf16.gmra.mxu1 %vm8416_vm15, %v3359_v8  ;;  %v5846_v8 = vunpack.i.l.bf16 %v5845_v52  ;;  %v7928_v20 = vsel %vm7922_vm3, %v4846_v59, %v3730_v62  ;;  %vm3745_vm15 = vcmask 1045508  }
 0x2c6   : > { %v3448_v63 = vmax.f32 %v3429_v12, 0.0 }
 0x2c8   : > { %v3464_v17 = vrot.slane %v3448_v63, 2  ;;  %v3465_v18 = vrot.slane %v3448_v63, 4  ;;  %v3466_v44 = vrot.slane %v3448_v63, 6  ;;  %v4814_v9 = vrot.slane %v3448_v63, 9 }
 0x2ca   : > { %v4815_v34 = vrot.slane %v3464_v17, 9  ;;  %v4816_v48 = vrot.slane %v3465_v18, 9  ;;  %v4817_v58 = vrot.slane %v3466_v44, 9  ;;  %v3608_v61 = vmax.f32 %v3448_v63, %v4814_v9 }
 0x2cb   : > { %v3430_v43 = vpop.f32.mrf.mxu1 }
 0x2cc   : > { %v3431_v25 = vadd.f32 %v7904_v55, %v3430_v43  ;;  %v3609_v45 = vmax.f32 %v3464_v17, %v4815_v34  ;;  %v3610_v22 = vmax.f32 %v3465_v18, %v4816_v48  ;;  %v3611_v36 = vmax.f32 %v3466_v44, %v4817_v58 }
 0x2ce   : > { %v3449_v5 = vmax.f32 %v3431_v25, 0.0 }
 0x2d0   : > { %v3467_v38 = vrot.slane %v3449_v5, 2  ;;  %v3468_v46 = vrot.slane %v3449_v5, 4  ;;  %v3469_v33 = vrot.slane %v3449_v5, 6  ;;  %v4818_v56 = vrot.slane %v3449_v5, 9 }
 0x2d2   : > { %v4819_v26 = vrot.slane %v3467_v38, 9  ;;  %v4820_v28 = vrot.slane %v3468_v46, 9  ;;  %v4821_v37 = vrot.slane %v3469_v33, 9  ;;  %v3612_v53 = vmax.f32 %v3449_v5, %v4818_v56  ;;  %v5860_v5 = vpop.permute.xlu2 %5859 }
 0x2d4   : > { %v3613_v2 = vmax.f32 %v3467_v38, %v4819_v26  ;;  %v3614_v15 = vmax.f32 %v3468_v46, %v4820_v28  ;;  %v3615_v39 = vmax.f32 %v3469_v33, %v4821_v37  ;;  %v3640_v10 = vmax.f32 %v3608_v61, %v3612_v53 }
 0x2d5   : > { %v5862_v28 = vunpack.i.h.bf16 %v5860_v5  ;;  %v5861_v37 = vunpack.i.l.bf16 %v5860_v5 }
 0x2d6   : > { %v3641_v21 = vmax.f32 %v3609_v45, %v3613_v2  ;;  %v3642_v49 = vmax.f32 %v3610_v22, %v3614_v15  ;;  %v3643_v54 = vmax.f32 %v3611_v36, %v3615_v39  ;;  %v3672_v1 = vperm.slane %v3640_v10, 0 }
 0x2d7   : > { %v4850_v36 = vrot.slane %v8417_v29, 10  ;;  %v3749_v2 = vrot.slane %v3721_v4, 6 }
 0x2d8   : > { %v3673_v57 = vperm.slane %v3641_v21, 0  ;;  %v3674_v19 = vperm.slane %v3642_v49, 0  ;;  %v3675_v60 = vperm.slane %v3643_v54, 0 }
 0x2d9   : > { %v5855_v24 = vpop.permute.xlu1 %5854 }
 0x2da   : > { %v3688_v30 = vsel %vm8409_vm14, %v3673_v57, %v3672_v1  ;;  %v5850_v16 = vpop.permute.xlu0 %5849  ;;  %v5857_v63 = vunpack.i.h.bf16 %v5855_v24  ;;  %v5856_v48 = vunpack.i.l.bf16 %v5855_v24  ;;  %vm8421_vm14 = vcmask 457728   ;;  %v5885_v4 = vpop.permute.xlu2 %5884 }
 0x2db   : > { %v3689_v3 = vsel %vm8406_vm6, %v3674_v19, %v3688_v30  ;;  %v5852_v44 = vunpack.i.h.bf16 %v5850_v16  ;;  %v5851_v43 = vunpack.i.l.bf16 %v5850_v16  ;;  %vm8422_vm6 = vmmov %vm8421_vm14  ;;  %v5887_v59 = vunpack.i.h.bf16 %v5885_v4 }
 0x2dc   : > { %v3690_v32 = vsel %vm8410_vm7, %v3675_v60, %v3689_v3  ;;  %vm7958_vm7 = vmor %vm3744_vm4, %vm3745_vm15  ;;  %v5886_v62 = vunpack.i.l.bf16 %v5885_v4 }
 0x2dd   : > { %v3700_v7 = vrot.slane %v3690_v32, 7  ;;  %v7966_v60 = vsel %vm7958_vm7, %v4850_v36, %v3749_v2 }
 0x2df   : > { %v3708_v47 = vsel %vm423_vm0, 0.0, %v3700_v7 }
 0x2e0   : > { %v7917_v42 = vsel %vm8418_vm1, %v3708_v47, 0.0  ;;  %vm8426_vm1 = vmmov %vm8425_vm8 }
 0x2e1   : > { %v3722_v51 = vrot.slane %v7917_v42, 4  ;;  %3775 = vst [vmem:[#allocation1 + $0x1] ss:$2 sm:$0xff] %v7917_v42  ;;  %v5875_v50 = vpop.permute.xlu1 %5874  ;;  %v4847_v34 = vrot.slane %v7917_v42, 9  ;;  %v4851_v16 = vrot.slane %v7917_v42, 10  ;;  %vm8430_vm4 = vmmov %vm8426_vm1 }
 0x2e2   : > { %v5877_v41 = vunpack.i.h.bf16 %v5875_v50  ;;  %v5876_v23 = vunpack.i.l.bf16 %v5875_v50  ;;  %v5865_v11 = vpop.permute.xlu0 %5864  ;;  %vm8431_vm15 = vmmov %vm8426_vm1 }
 0x2e3   : > { %v5867_v13 = vunpack.i.h.bf16 %v5865_v11  ;;  %v5866_v14 = vunpack.i.l.bf16 %v5865_v11  ;;  %v3734_v12 = vrot.slane %v3722_v51, 5  ;;  %v3753_v57 = vrot.slane %v3722_v51, 6 }
 0x2e5   : > { %v3293_v17 = vsel %vm3287_vm9, %v7577_v40, %v5867_v13  ;;  %v3292_v18 = vsel %vm3287_vm9, %v7723_v31, %v5866_v14  ;;  %v7945_v33 = vsel %vm7922_vm3, %v4847_v34, %v3734_v12  ;;  %v7974_v32 = vsel %vm7958_vm7, %v4851_v16, %v3753_v57 }
 0x2e6   : > { %v3302_v25 = vsel %vm3296_vm10, %v3293_v17, %v5877_v41  ;;  %v3301_v9 = vsel %vm3296_vm10, %v3292_v18, %v5876_v23  ;;  %v3295_v13 = vsel %vm3287_vm9, %v7835_v27, %v5887_v59  ;;  %v3294_v14 = vsel %vm3287_vm9, %v7818_v0, %v5886_v62  ;;  %vm8429_vm9 = vmmov %vm8422_vm6 }
 0x2e7   : > { %v3309_v58 = vsel %vm1762_vm11, %v3301_v9, %v5846_v8  ;;  %v3310_v38 = vsel %vm1762_vm11, %v3302_v25, %v5847_v35 }
 0x2e8   : > { %v7939_v46 = vld.sshfl [vmem:[#allocation1] sm:$0xff pattern:$0x75316420]  ;;  %v3318_v40 = vsel %vm3313_vm13, %v3309_v58, %v5851_v43  ;;  %v3319_v31 = vsel %vm3313_vm13, %v3310_v38, %v5852_v44 }
 0x2e9   : > { %3784 = vst [vmem:[#allocation1] ss:$2 sm:$0xff] %v7928_v20  ;;  %v5880_v56 = vpop.permute.xlu1 %5879  ;;  %v3327_v61 = vsel %vm3322_vm5, %v3318_v40, %v5856_v48  ;;  %v3328_v26 = vsel %vm3322_vm5, %v3319_v31, %v5857_v63 }
 0x2ea   : > { %3786 = vst [vmem:[#allocation1 + $0x1] ss:$2 sm:$0xff] %v7945_v33  ;;  %v5882_v53 = vunpack.i.h.bf16 %v5880_v56  ;;  %v5881_v45 = vunpack.i.l.bf16 %v5880_v56  ;;  %v5870_v22 = vpop.permute.xlu0 %5869  ;;  %v3336_v10 = vsel %vm3331_vm12, %v3327_v61, %v5861_v37  ;;  %v3337_v21 = vsel %vm3331_vm12, %v3328_v26, %v5862_v28 }
 0x2eb   : > { %v5872_v15 = vunpack.i.h.bf16 %v5870_v22  ;;  %v5871_v39 = vunpack.i.l.bf16 %v5870_v22  ;;  %v5900_v47 = vpop.permute.xlu2 %5899 }
 0x2ec   : > { %v5902_v17 = vunpack.i.h.bf16 %v5900_v47  ;;  %v5901_v18 = vunpack.i.l.bf16 %v5900_v47 }
 0x2ed   : > { %v3345_v49 = vsel %vm8421_vm14, %v3336_v10, %v5871_v39  ;;  %v3346_v54 = vsel %vm8422_vm6, %v3337_v21, %v5872_v15  ;;  %vm8432_vm14 = vmmov %vm8427_vm2 }
 0x2ee   : > { %v3354_v19 = vsel %vm8425_vm8, %v3345_v49, %v5881_v45  ;;  %v3355_v24 = vsel %vm8426_vm1, %v3346_v54, %v5882_v53  ;;  %vm8435_vm8 = vcmask 1043459   ;;  %vm8436_vm1 = vcmask 1044480  }
 0x2ef   : > { %v3360_v30 = vpack.c.bf16 %v3355_v24, %v3354_v19 }
 0x2f1   : > { %v7969_v3 = vld.sshfl [vmem:[#allocation1] sm:$0xff pattern:$0x75316420]  ;;  %4812 = vmatmul.msk.bf16.gmra.mxu1 %vm8427_vm2, %v3360_v30 }
 0x2f2   : > { %3799 = vst [vmem:[#allocation1] ss:$2 sm:$0xff] %v7966_v60  ;;  %v5890_v52 = vpop.permute.xlu0 %5889 }
 0x2f3   : > { %3801 = vst [vmem:[#allocation1 + $0x1] ss:$2 sm:$0xff] %v7974_v32  ;;  %v5892_v51 = vunpack.i.h.bf16 %v5890_v52  ;;  %v5891_v50 = vunpack.i.l.bf16 %v5890_v52  ;;  %v5915_v25 = vpop.permute.xlu2 %5914 }
 0x2f4   : > { %v5917_v48 = vunpack.i.h.bf16 %v5915_v25  ;;  %v5916_v58 = vunpack.i.l.bf16 %v5915_v25 }
 0x2f5   : > { %v3303_v35 = vsel %vm3296_vm10, %v3294_v14, %v5891_v50  ;;  %v3304_v8 = vsel %vm3296_vm10, %v3295_v13, %v5892_v51 }
 0x2fa   : > { %v7978_v7 = vld.sshfl [vmem:[#allocation1] sm:$0xff pattern:$0x75316420] }
 0x2fb   : > { %3814 = vst [vmem:[#allocation1] ss:$2 sm:$0xff] %v7917_v42 }
 0x2ff   : > { %v5895_v41 = vpop.permute.xlu1 %5894 }
 0x300   : > { %v5897_v23 = vunpack.i.h.bf16 %v5895_v41  ;;  %v5896_v11 = vunpack.i.l.bf16 %v5895_v41 }
 0x302   : > { %v5905_v12 = vpop.permute.xlu0 %5904  ;;  %v3311_v42 = vsel %vm1762_vm11, %v3303_v35, %v5896_v11  ;;  %v3312_v63 = vsel %vm1762_vm11, %v3304_v8, %v5897_v23  ;;  %vm8428_vm11 = vmmov %vm8422_vm6  ;;  %vm8434_vm6 = vcmask 1042434  }
 0x303   : > { %v5907_v44 = vunpack.i.h.bf16 %v5905_v12  ;;  %v5906_v43 = vunpack.i.l.bf16 %v5905_v12  ;;  %v3320_v9 = vsel %vm3313_vm13, %v3311_v42, %v5901_v18  ;;  %v3321_v27 = vsel %vm3313_vm13, %v3312_v63, %v5902_v17 }
 0x305   : > { %v3329_v38 = vsel %vm3322_vm5, %v3320_v9, %v5906_v43  ;;  %v3330_v40 = vsel %vm3322_vm5, %v3321_v27, %v5907_v44  ;;  %vm8433_vm5 = vcmask 1041409  }
 0x306   : > { %vm8437_vm2 = vmmov %vm8433_vm5 }
 0x307   : > { %v5910_v5 = vpop.permute.xlu1 %5909 }
 0x308   : > { %v5912_v0 = vunpack.i.h.bf16 %v5910_v5  ;;  %v5911_v34 = vunpack.i.l.bf16 %v5910_v5 }
 0x30a   : > { %v3338_v31 = vsel %vm3331_vm12, %v3329_v38, %v5911_v34  ;;  %v3339_v56 = vsel %vm3331_vm12, %v3330_v40, %v5912_v0  ;;  %v5920_v61 = vpop.permute.xlu0 %5919 }
 0x30b   : > { %v5922_v26 = vunpack.i.h.bf16 %v5920_v61  ;;  %v5921_v28 = vunpack.i.l.bf16 %v5920_v61  ;;  %v3347_v37 = vsel %vm8428_vm11, %v3338_v31, %v5916_v58  ;;  %v3348_v53 = vsel %vm8429_vm9, %v3339_v56, %v5917_v48  ;;  %vm8438_vm11 = vmmov %vm8434_vm6 }
 0x30c   : > { %vm8439_vm9 = vmmov %vm8435_vm8 }
 0x30d   : > { %v3356_v45 = vsel %vm8430_vm4, %v3347_v37, %v5921_v28  ;;  %v3357_v22 = vsel %vm8431_vm15, %v3348_v53, %v5922_v26  ;;  %vm8440_vm4 = vmmov %vm8436_vm1 }
 0x30e   : > { %v3361_v36 = vpack.c.bf16 %v3357_v22, %v3356_v45  ;;  %vm8441_vm15 = vmmov %vm8437_vm2 }
 0x310   : > { %4813 = vmatmul.msk.bf16.gmra.mxu1 %vm8432_vm14, %v3361_v36  ;;  %vm8442_vm14 = vmmov %vm8434_vm6 }
 0x341   : > { %v3433_v2 = vpop.f32.mrf.mxu1 }
 0x342   : > { %v3434_v15 = vadd.f32 %v7904_v55, %v3433_v2 }
 0x344   : > { %v3450_v39 = vmax.f32 %v3434_v15, 0.0 }
 0x346   : > { %v3470_v10 = vrot.slane %v3450_v39, 2  ;;  %v3471_v21 = vrot.slane %v3450_v39, 4  ;;  %v3472_v49 = vrot.slane %v3450_v39, 6  ;;  %v4822_v19 = vrot.slane %v3450_v39, 9 }
 0x348   : > { %v4823_v30 = vrot.slane %v3470_v10, 9  ;;  %v4824_v16 = vrot.slane %v3471_v21, 9  ;;  %v4825_v4 = vrot.slane %v3472_v49, 9  ;;  %v3616_v51 = vmax.f32 %v3450_v39, %v4822_v19 }
 0x349   : > { %v3435_v54 = vpop.f32.mrf.mxu1 }
 0x34a   : > { %v3436_v57 = vadd.f32 %v7904_v55, %v3435_v54  ;;  %v3617_v13 = vmax.f32 %v3470_v10, %v4823_v30  ;;  %v3618_v14 = vmax.f32 %v3471_v21, %v4824_v16  ;;  %v3619_v35 = vmax.f32 %v3472_v49, %v4825_v4 }
 0x34c   : > { %v3451_v24 = vmax.f32 %v3436_v57, 0.0 }
 0x34e   : > { %v3473_v52 = vrot.slane %v3451_v24, 2  ;;  %v3474_v47 = vrot.slane %v3451_v24, 4  ;;  %v3475_v59 = vrot.slane %v3451_v24, 6  ;;  %v4826_v62 = vrot.slane %v3451_v24, 9 }
 0x350   : > { %v4827_v50 = vrot.slane %v3473_v52, 9  ;;  %v4828_v41 = vrot.slane %v3474_v47, 9  ;;  %v4829_v23 = vrot.slane %v3475_v59, 9  ;;  %v3620_v11 = vmax.f32 %v3451_v24, %v4826_v62 }
 0x352   : > { %v3621_v8 = vmax.f32 %v3473_v52, %v4827_v50  ;;  %v3622_v12 = vmax.f32 %v3474_v47, %v4828_v41  ;;  %v3623_v42 = vmax.f32 %v3475_v59, %v4829_v23  ;;  %v3644_v63 = vmax.f32 %v3616_v51, %v3620_v11 }
 0x354   : > { %v3645_v17 = vmax.f32 %v3617_v13, %v3621_v8  ;;  %v3646_v18 = vmax.f32 %v3618_v14, %v3622_v12  ;;  %v3647_v44 = vmax.f32 %v3619_v35, %v3623_v42  ;;  %v3676_v43 = vperm.slane %v3644_v63, 0 }
 0x356   : > { %v3677_v25 = vperm.slane %v3645_v17, 0  ;;  %v3678_v9 = vperm.slane %v3646_v18, 0  ;;  %v3679_v27 = vperm.slane %v3647_v44, 0 }
 0x358   : > { %v3691_v5 = vsel %vm8433_vm5, %v3677_v25, %v3676_v43  ;;  %vm8443_vm5 = vmmov %vm8435_vm8 }
 0x359   : > { %v3692_v0 = vsel %vm8434_vm6, %v3678_v9, %v3691_v5  ;;  %vm8444_vm6 = vmmov %vm8436_vm1 }
 0x35a   : > { %v3693_v34 = vsel %vm8435_vm8, %v3679_v27, %v3692_v0  ;;  %vm3908_vm8 = vcmask 654336  }
 0x35b   : > { %v3701_v48 = vrot.slane %v3693_v34, 7 }
 0x35d   : > { %v3709_v58 = vsel %vm423_vm0, 0.0, %v3701_v48 }
 0x35e   : > { %v3714_v38 = vsel %vm8436_vm1, %v3709_v58, 0.0  ;;  %vm8445_vm1 = vcmask 523264  }
 0x35f   : > { %3777 = vst [vmem:[#allocation1 + $0x10] ss:$2 sm:$0xff] %v3714_v38  ;;  %v3723_v40 = vrot.slane %v3714_v38, 4  ;;  %v4848_v56 = vrot.slane %v3714_v38, 9  ;;  %v4852_v53 = vrot.slane %v3714_v38, 10 }
 0x360   : > { %3816 = vst [vmem:[#allocation1 + $0x1] ss:$2 sm:$0xff] %v3714_v38 }
 0x361   : > { %v3738_v31 = vrot.slane %v3723_v40, 5  ;;  %v3757_v28 = vrot.slane %v3723_v40, 6 }
 0x363   : > { %v8011_v26 = vsel %vm7922_vm3, %v4848_v56, %v3738_v31  ;;  %v8020_v36 = vsel %vm7958_vm7, %v4852_v53, %v3757_v28 }
 0x367   : > { %v8007_v61 = vld.sshfl [vmem:[#allocation1] sm:$0xff pattern:$0x75316420] }
 0x368   : > { %3829 = vst [vmem:[#allocation1] ss:$2 sm:$0xff] %v7945_v33 }
 0x369   : > { %3831 = vst [vmem:[#allocation1 + $0x1] ss:$2 sm:$0xff] %v8011_v26 }
 0x36e   : > { %v3438_v37 = vpop.f32.mrf.mxu1 }
 0x36f   : > { %v3439_v45 = vadd.f32 %v7904_v55, %v3438_v37 }
 0x370   : > { %v8016_v22 = vld.sshfl [vmem:[#allocation1] sm:$0xff pattern:$0x75316420] }
 0x371   : > { %3844 = vst [vmem:[#allocation1] ss:$2 sm:$0xff] %v7974_v32  ;;  %v3452_v2 = vmax.f32 %v3439_v45, 0.0 }
 0x372   : > { %3846 = vst [vmem:[#allocation1 + $0x1] ss:$2 sm:$0xff] %v8020_v36 }
 0x373   : > { %v3476_v15 = vrot.slane %v3452_v2, 2  ;;  %v3477_v33 = vrot.slane %v3452_v2, 4  ;;  %v3478_v39 = vrot.slane %v3452_v2, 6  ;;  %v4830_v49 = vrot.slane %v3452_v2, 9 }
 0x375   : > { %v4831_v19 = vrot.slane %v3476_v15, 9  ;;  %v4832_v24 = vrot.slane %v3477_v33, 9  ;;  %v4833_v30 = vrot.slane %v3478_v39, 9  ;;  %v3624_v47 = vmax.f32 %v3452_v2, %v4830_v49 }
 0x376   : > { %v3440_v10 = vpop.f32.mrf.mxu1 }
 0x377   : > { %v3441_v21 = vadd.f32 %v7904_v55, %v3440_v10  ;;  %v3625_v41 = vmax.f32 %v3476_v15, %v4831_v19  ;;  %v3626_v23 = vmax.f32 %v3477_v33, %v4832_v24  ;;  %v3627_v11 = vmax.f32 %v3478_v39, %v4833_v30 }
 0x379   : > { %v8025_v54 = vld.sshfl [vmem:[#allocation1] sm:$0xff pattern:$0x75316420]  ;;  %v3453_v57 = vmax.f32 %v3441_v21, 0.0 }
 0x37a   : > { %3859 = vst [vmem:[#allocation1] ss:$2 sm:$0xff] %v3714_v38 }
 0x37b   : > { %v3479_v16 = vrot.slane %v3453_v57, 2  ;;  %v3480_v4 = vrot.slane %v3453_v57, 4  ;;  %v3481_v32 = vrot.slane %v3453_v57, 6  ;;  %v4834_v52 = vrot.slane %v3453_v57, 9 }
 0x37d   : > { %v4835_v59 = vrot.slane %v3479_v16, 9  ;;  %v4836_v62 = vrot.slane %v3480_v4, 9  ;;  %v4837_v51 = vrot.slane %v3481_v32, 9  ;;  %v3628_v50 = vmax.f32 %v3453_v57, %v4834_v52 }
 0x37f   : > { %v3629_v13 = vmax.f32 %v3479_v16, %v4835_v59  ;;  %v3630_v14 = vmax.f32 %v3480_v4, %v4836_v62  ;;  %v3631_v35 = vmax.f32 %v3481_v32, %v4837_v51  ;;  %v3648_v8 = vmax.f32 %v3624_v47, %v3628_v50 }
 0x381   : > { %v3649_v12 = vmax.f32 %v3625_v41, %v3629_v13  ;;  %v3650_v42 = vmax.f32 %v3626_v23, %v3630_v14  ;;  %v3651_v63 = vmax.f32 %v3627_v11, %v3631_v35  ;;  %v3680_v17 = vperm.slane %v3648_v8, 0 }
 0x383   : > { %v3681_v18 = vperm.slane %v3649_v12, 0  ;;  %v3682_v44 = vperm.slane %v3650_v42, 0  ;;  %v3683_v43 = vperm.slane %v3651_v63, 0 }
 0x385   : > { %v3694_v25 = vsel %vm8437_vm2, %v3681_v18, %v3680_v17  ;;  %vm3911_vm2 = vcmask 785408  }
 0x386   : > { %v3695_v9 = vsel %vm8438_vm11, %v3682_v44, %v3694_v25  ;;  %vm3914_vm11 = vcmask 916480  }
 0x387   : > { %v3696_v27 = vsel %vm8439_vm9, %v3683_v43, %v3695_v9  ;;  %vm8448_vm9 = vmmov %vm8440_vm4 }
 0x388   : > { %v3702_v5 = vrot.slane %v3696_v27, 7 }
 0x38a   : > { %v3710_v0 = vsel %vm423_vm0, 0.0, %v3702_v5 }
 0x38b   : > { %v8032_v34 = vsel %vm8440_vm4, %v3710_v0, 0.0 }
 0x38c   : > { %v3724_v48 = vrot.slane %v8032_v34, 4  ;;  %3779 = vst [vmem:[#allocation1 + $0x11] ss:$2 sm:$0xff] %v8032_v34  ;;  %v4849_v56 = vrot.slane %v8032_v34, 9  ;;  %v4853_v52 = vrot.slane %v8032_v34, 10 }
 0x38d   : > { %v3443_v58 = vpop.f32.mrf.mxu1  ;;  %3861 = vst [vmem:[#allocation1 + $0x1] ss:$2 sm:$0xff] %v8032_v34 }
 0x38e   : > { %v3444_v38 = vadd.f32 %v7904_v55, %v3443_v58  ;;  %v3742_v31 = vrot.slane %v3724_v48, 5  ;;  %v3761_v49 = vrot.slane %v3724_v48, 6 }
 0x390   : > { %v3454_v40 = vmax.f32 %v3444_v38, 0.0  ;;  %v8043_v45 = vsel %vm7922_vm3, %v4849_v56, %v3742_v31 }
 0x392   : > { %v3482_v37 = vrot.slane %v3454_v40, 2  ;;  %v3483_v53 = vrot.slane %v3454_v40, 4  ;;  %v3484_v15 = vrot.slane %v3454_v40, 6  ;;  %v4838_v10 = vrot.slane %v3454_v40, 9 }
 0x393   : > { %v8039_v28 = vld.sshfl [vmem:[#allocation1 + $0x10] sm:$0xff pattern:$0x75316420] }
 0x394   : > { %3788 = vst [vmem:[#allocation1 + $0x10] ss:$2 sm:$0xff] %v8011_v26  ;;  %v8046_v2 = vld.sshfl [vmem:[#allocation1] sm:$0xff pattern:$0x75316420]  ;;  %v4839_v57 = vrot.slane %v3482_v37, 9  ;;  %v3632_v47 = vmax.f32 %v3454_v40, %v4838_v10 }
 0x395   : > { %v3445_v33 = vpop.f32.mrf.mxu1  ;;  %3790 = vst [vmem:[#allocation1 + $0x11] ss:$2 sm:$0xff] %v8043_v45  ;;  %v4840_v19 = vrot.slane %v3483_v53, 9  ;;  %v4841_v24 = vrot.slane %v3484_v15, 9 }
 0x396   : > { %v3446_v39 = vadd.f32 %v7904_v55, %v3445_v33  ;;  %3874 = vst [vmem:[#allocation1] ss:$2 sm:$0xff] %v8011_v26  ;;  %v3762_v26 = vsel %vm7958_vm7, %v4853_v52, %v3761_v49  ;;  %v3633_v41 = vmax.f32 %v3482_v37, %v4839_v57  ;;  %v5028_v52 = vld [vmem:[%s8318_s5 + $0x18] sm:$0xff] }
 0x397   : > { %3876 = vst [vmem:[#allocation1 + $0x1] ss:$2 sm:$0xff] %v8043_v45  ;;  %v3634_v23 = vmax.f32 %v3483_v53, %v4840_v19  ;;  %v3635_v11 = vmax.f32 %v3484_v15, %v4841_v24 }
 0x398   : > { %v3455_v21 = vmax.f32 %v3446_v39, 0.0 }
 0x39a   : > { %v3485_v30 = vrot.slane %v3455_v21, 2  ;;  %v3486_v16 = vrot.slane %v3455_v21, 4  ;;  %v3487_v4 = vrot.slane %v3455_v21, 6  ;;  %v4842_v32 = vrot.slane %v3455_v21, 9 }
 0x39c   : > { %v4843_v59 = vrot.slane %v3485_v30, 9  ;;  %v4844_v62 = vrot.slane %v3486_v16, 9  ;;  %v4845_v55 = vrot.slane %v3487_v4, 9  ;;  %v3636_v51 = vmax.f32 %v3455_v21, %v4842_v32  ;;  %v3792_v50 = vld.sshfl [vmem:[#allocation1 + $0x10] sm:$0xff pattern:$0x75316420] }
 0x39d   : > { %3803 = vst [vmem:[#allocation1 + $0x10] ss:$2 sm:$0xff] %v8020_v36  ;;  %v5923_v42 = vpack.i.bf16 %v3792_v50, %v7969_v3  ;;  %v5029_v32 = vld [vmem:[%s8318_s5 + $0x20] sm:$0xff] }
 0x39e   : > { %v3637_v13 = vmax.f32 %v3485_v30, %v4843_v59  ;;  %v3638_v14 = vmax.f32 %v3486_v16, %v4844_v62  ;;  %v3639_v35 = vmax.f32 %v3487_v4, %v4845_v55  ;;  %v3652_v8 = vmax.f32 %v3632_v47, %v3636_v51  ;;  %3805 = vst [vmem:[#allocation1 + $0x11] ss:$2 sm:$0xff] %v3762_v26  ;;  %v3881_v12 = vld.sshfl [vmem:[#allocation1] sm:$0xff pattern:$0x75316420]  ;;  %v5031_v16 = vld [vmem:[%s8318_s5 + $0x30] sm:$0xff] }
 0x39f   : > { %3889 = vst [vmem:[#allocation1] ss:$2 sm:$0xff] %v8020_v36  ;;  %5924 = vrot.lane.b32.xlu1 %v5923_v42, %s6069_s30  ;;  %v5030_v4 = vld [vmem:[%s8318_s5 + $0x28] sm:$0xff]  ;;  %v5027_v47 = vld [vmem:[%s8318_s5 + $0x10] sm:$0xff]  ;;  %v5025_v62 = vld [vmem:[%s8318_s5] sm:$0xff] }
 0x3a0   : > { %v3653_v63 = vmax.f32 %v3633_v41, %v3637_v13  ;;  %v3654_v17 = vmax.f32 %v3634_v23, %v3638_v14  ;;  %v3655_v18 = vmax.f32 %v3635_v11, %v3639_v35  ;;  %3891 = vst [vmem:[#allocation1 + $0x1] ss:$2 sm:$0xff] %v3762_v26  ;;  %v3684_v44 = vperm.slane %v3652_v8, 0  ;;  %v5026_v59 = vld [vmem:[%s8318_s5 + $0x8] sm:$0xff] }
 0x3a2   : > { %v3685_v43 = vperm.slane %v3653_v63, 0  ;;  %v3686_v25 = vperm.slane %v3654_v17, 0  ;;  %v3687_v9 = vperm.slane %v3655_v18, 0 }
 0x3a4   : > { %v3697_v27 = vsel %vm8441_vm15, %v3685_v43, %v3684_v44  ;;  %vm8449_vm15 = vmmov %vm8440_vm4 }
 0x3a5   : > { %v3698_v5 = vsel %vm8442_vm14, %v3686_v25, %v3697_v27  ;;  %v3807_v0 = vld.sshfl [vmem:[#allocation1 + $0x10] sm:$0xff pattern:$0x75316420] }
 0x3a6   : > { %v3699_v48 = vsel %vm8443_vm5, %v3687_v9, %v3698_v5  ;;  %3818 = vst [vmem:[#allocation1 + $0x10] ss:$2 sm:$0xff] %v8032_v34  ;;  %v5928_v36 = vpack.i.bf16 %v3807_v0, %v7978_v7 }
 0x3a7   : > { %v3703_v3 = vrot.slane %v3699_v48, 7  ;;  %v3896_v58 = vld.sshfl [vmem:[#allocation1] sm:$0xff pattern:$0x75316420] }
 0x3a8   : > { %4088 = vst [vmem:[#allocation1] ss:$2 sm:$0xff] %v8417_v29  ;;  %5929 = vrot.lane.b32.xlu2 %v5928_v36, %s8354_s18 }
 0x3a9   : > { %v3711_v38 = vsel %vm423_vm0, 0.0, %v3703_v3 }
 0x3aa   : > { %v3716_v40 = vsel %vm8444_vm6, %v3711_v38, 0.0 }
 0x3ab   : > { %v3764_v31 = vrot.slane %v3716_v40, 4  ;;  %3820 = vst [vmem:[#allocation1 + $0x11] ss:$2 sm:$0xff] %v3716_v40  ;;  %v4854_v37 = vrot.slane %v3716_v40, 9  ;;  %v4855_v33 = vrot.slane %v3716_v40, 10 }
 0x3ad   : > { %v3767_v56 = vrot.slane %v3764_v31, 5  ;;  %v3771_v15 = vrot.slane %v3764_v31, 6 }
 0x3af   : > { %v3768_v34 = vsel %vm7922_vm3, %v4854_v37, %v3767_v56  ;;  %v3772_v10 = vsel %vm7958_vm7, %v4855_v33, %v3771_v15 }
 0x3b2   : > { %v3822_v53 = vld.sshfl [vmem:[#allocation1 + $0x10] sm:$0xff pattern:$0x75316420] }
 0x3b3   : > { %3833 = vst [vmem:[#allocation1 + $0x10] ss:$2 sm:$0xff] %v8043_v45  ;;  %v5933_v7 = vpack.i.bf16 %v3822_v53, %v8007_v61  ;;  %v5033_v45 = vld [vmem:[%s8318_s5 + $0x40] sm:$0xff] }
 0x3b4   : > { %3835 = vst [vmem:[#allocation1 + $0x11] ss:$2 sm:$0xff] %v3768_v34  ;;  %4019 = vmatpush.bf16.msrb.mxu3 %v5033_v45 }
 0x3b5   : > { %5934 = vrot.lane.b32.xlu0 %v5933_v7, %s6072_s27  ;;  %s6075_s27 = smov 80   ;;  %v5990_v7 = vld [vmem:[%s8319_s6] ss:$0 sm:$0xff] }
 0x3bb   : > { %v3837_v39 = vld.sshfl [vmem:[#allocation1 + $0x10] sm:$0xff pattern:$0x75316420] }
 0x3bc   : > { %3848 = vst [vmem:[#allocation1 + $0x10] ss:$2 sm:$0xff] %v3762_v26  ;;  %v5938_v21 = vpack.i.bf16 %v3837_v39, %v8016_v22 }
 0x3bd   : > { %3850 = vst [vmem:[#allocation1 + $0x11] ss:$2 sm:$0xff] %v3772_v10 }
 0x3be   : > { %5939 = vrot.lane.b32.xlu1 %v5938_v21, %s8352_s28  ;;  %s8456_s28 = smov 32  }
 0x3c4   : > { %v3852_v61 = vld.sshfl [vmem:[#allocation1 + $0x10] sm:$0xff pattern:$0x75316420] }
 0x3c5   : > { %3863 = vst [vmem:[#allocation1 + $0x10] ss:$2 sm:$0xff] %v3716_v40  ;;  %v5943_v49 = vpack.i.bf16 %v3852_v61, %v8025_v54 }
 0x3c6   : > { %3865 = vst [vmem:[#allocation1 + $0x11] ss:$2 sm:$0xff] %v8417_v29 }
 0x3c7   : > { %5944 = vrot.lane.b32.xlu2 %v5943_v49, %s6075_s27  ;;  %s8450_s27 = smov 64  }
 0x3cd   : > { %v3867_v57 = vld.sshfl [vmem:[#allocation1 + $0x10] sm:$0xff pattern:$0x75316420] }
 0x3ce   : > { %3878 = vst [vmem:[#allocation1 + $0x10] ss:$2 sm:$0xff] %v3768_v34  ;;  %v5948_v22 = vpack.i.bf16 %v3867_v57, %v8046_v2  ;;  %v5032_v2 = vld [vmem:[%s8318_s5 + $0x38] sm:$0xff] }
 0x3cf   : > { %3880 = vst [vmem:[#allocation1 + $0x11] ss:$2 sm:$0xff] %v7928_v20  ;;  %3998 = vmatpush.bf16.msrb.mxu2 %v5032_v2 }
 0x3d0   : > { %5949 = vrot.lane.b32.xlu0 %v5948_v22, %s8350_s12 }
 0x3d3   : > { %3999 = vmatpush.bf16.msrb.mxu2 %v5031_v16 }
 0x3d6   : > { %v3882_v19 = vld.sshfl [vmem:[#allocation1 + $0x10] sm:$0xff pattern:$0x75316420] }
 0x3d7   : > { %3893 = vst [vmem:[#allocation1 + $0x10] ss:$2 sm:$0xff] %v3772_v10  ;;  %v5953_v24 = vpack.i.bf16 %v3882_v19, %v3881_v12  ;;  %4000 = vmatpush.bf16.msrb.mxu2 %v5030_v4 }
 0x3d8   : > { %3895 = vst [vmem:[#allocation1 + $0x11] ss:$2 sm:$0xff] %v7966_v60 }
 0x3d9   : > { %5954 = vrot.lane.b32.xlu1 %v5953_v24, %s6077_s21  ;;  %s8451_s21 = smov 96  }
 0x3db   : > { %4001 = vmatpush.bf16.msrb.mxu2 %v5029_v32 }
 0x3df   : > { %v3897_v54 = vld.sshfl [vmem:[#allocation1 + $0x10] sm:$0xff pattern:$0x75316420]  ;;  %4002 = vmatpush.bf16.msrb.mxu2 %v5028_v52 }
 0x3e0   : > { %v3918_v30 = vpack.c.bf16 %v3897_v54, %v3896_v58 }
 0x3e2   : > { %4892 = vmatmul.msk.bf16.vlgmr.msrb.gmra.mxu3 %vm3296_vm10, %v3918_v30 }
 0x3e3   : > { %4003 = vmatpush.bf16.msrb.mxu2 %v5027_v47 }
 0x3e7   : > { %4004 = vmatpush.bf16.msrb.mxu2 %v5026_v59 }
 0x3eb   : > { %4005 = vmatpush.bf16.msrb.mxu2 %v5025_v62 }
 0x402   : > { %v5930_v26 = vpop.permute.xlu2 %5929 }
 0x403   : > { %v5932_v8 = vunpack.i.h.bf16 %v5930_v26  ;;  %v5931_v12 = vunpack.i.l.bf16 %v5930_v26 }
 0x411   : > { %v5925_v55 = vpop.permute.xlu1 %5924 }
 0x412   : > { %v5927_v50 = vunpack.i.h.bf16 %v5925_v55  ;;  %v5926_v41 = vunpack.i.l.bf16 %v5925_v55 }
 0x414   : > { %v3901_v11 = vsel %vm3296_vm10, %v8039_v28, %v5927_v50  ;;  %v3900_v13 = vsel %vm3296_vm10, %v7939_v46, %v5926_v41  ;;  %vm8446_vm10 = vmmov %vm8445_vm1 }
 0x415   : > { %v3902_v44 = vsel %vm3313_vm13, %v3900_v13, %v5931_v12  ;;  %v3903_v43 = vsel %vm3313_vm13, %v3901_v11, %v5932_v8 }
 0x421   : > { %v5945_v18 = vpop.permute.xlu2 %5944 }
 0x422   : > { %v5947_v0 = vunpack.i.h.bf16 %v5945_v18  ;;  %v5946_v48 = vunpack.i.l.bf16 %v5945_v18 }
 0x427   : > { %v5935_v51 = vpop.permute.xlu0 %5934 }
 0x428   : > { %v5937_v14 = vunpack.i.h.bf16 %v5935_v51  ;;  %v5936_v35 = vunpack.i.l.bf16 %v5935_v51 }
 0x42a   : > { %v3905_v25 = vsel %vm3331_vm12, %v3903_v43, %v5937_v14  ;;  %v3904_v9 = vsel %vm3331_vm12, %v3902_v44, %v5936_v35  ;;  %vm8447_vm12 = vmmov %vm8440_vm4 }
 0x430   : > { %v5940_v23 = vpop.permute.xlu1 %5939 }
 0x431   : > { %v5942_v42 = vunpack.i.h.bf16 %v5940_v23  ;;  %v5941_v63 = vunpack.i.l.bf16 %v5940_v23 }
 0x433   : > { %v3907_v28 = vsel %vm8445_vm1, %v3905_v25, %v5942_v42  ;;  %v3906_v46 = vsel %vm8446_vm10, %v3904_v9, %v5941_v63 }
 0x434   : > { %v3909_v36 = vsel %vm3908_vm8, %v3906_v46, %v5946_v48  ;;  %v3910_v58 = vsel %vm3908_vm8, %v3907_v28, %v5947_v0 }
 0x442   : > { %v5950_v17 = vpop.permute.xlu0 %5949 }
 0x443   : > { %v5952_v27 = vunpack.i.h.bf16 %v5950_v17  ;;  %v5951_v5 = vunpack.i.l.bf16 %v5950_v17 }
 0x445   : > { %v3913_v31 = vsel %vm3911_vm2, %v3910_v58, %v5952_v27  ;;  %v3912_v56 = vsel %vm3911_vm2, %v3909_v36, %v5951_v5 }
 0x44b   : > { %v5955_v3 = vpop.permute.xlu1 %5954 }
 0x44c   : > { %v5957_v38 = vunpack.i.h.bf16 %v5955_v3  ;;  %v5956_v40 = vunpack.i.l.bf16 %v5955_v3 }
 0x44e   : > { %v3915_v37 = vsel %vm3914_vm11, %v3912_v56, %v5956_v40  ;;  %v3916_v53 = vsel %vm3914_vm11, %v3913_v31, %v5957_v38 }
 0x44f   : > { %v3917_v34 = vpack.c.bf16 %v3916_v53, %v3915_v37 }
 0x451   : > { %4006 = vmatmul.bf16.vlgmr.msrb.gmra.mxu2 %v3917_v34 }
 0x465   : > { %v4021_v33 = vpop.f32.mrf.mxu3 }
 0x46d   : > { %v4023_v30 = vpop.f32.mrf.mxu3 }
 0x4d4   : > { %v4007_v15 = vpop.f32.mrf.mxu2 }
 0x4d5   : > { %v4008_v39 = vadd.f32 %v5990_v7, %v4007_v15 }
 0x4d7   : > { %v4022_v10 = vadd.f32 %v4021_v33, %v4008_v39 }
 0x4d9   : > { %v4026_v21 = vmax.f32 %v4022_v10, 0.0 }
 0x4db   : > { %v4032_v45 = vrot.slane %v4026_v21, 7  ;;  %v4893_v61 = vrot.slane %v4026_v21, 11 }
 0x4dc   : > { %v4009_v49 = vpop.f32.mrf.mxu2 }
 0x4dd   : > { %v4040_v57 = vsel %vm423_vm0, 0.0, %v4032_v45  ;;  %v4041_v22 = vsel %vm423_vm0, 0.0, %v4893_v61  ;;  %v4010_v19 = vadd.f32 %v5990_v7, %v4009_v49 }
 0x4de   : > { %v4044_v24 = vsel %vm8447_vm12, %v4040_v57, 0.0  ;;  %v8130_v54 = vsel %vm8448_vm9, %v4041_v22, 0.0 }
 0x4df   : > { %v4051_v2 = vrot.slane %v4044_v24, 4  ;;  %4090 = vst [vmem:[#allocation1 + $0x1] ss:$2 sm:$0xff] %v4044_v24  ;;  %v4024_v16 = vadd.f32 %v4023_v30, %v4010_v19  ;;  %v4895_v47 = vrot.slane %v4044_v24, 9  ;;  %v4052_v26 = vrot.slane %v8130_v54, 4  ;;  %v5036_v30 = vld [vmem:[%s8320_s7 + $0x10] sm:$0xff] }
 0x4e0   : > { %4092 = vst [vmem:[#allocation1 + $0x10] ss:$2 sm:$0xff] %v8130_v54  ;;  %v4898_v11 = vrot.slane %v4044_v24, 10  ;;  %v4896_v14 = vrot.slane %v8130_v54, 9  ;;  %v4899_v9 = vrot.slane %v8130_v54, 10 }
 0x4e1   : > { %v4027_v4 = vmax.f32 %v4024_v16, 0.0  ;;  %v4056_v32 = vrot.slane %v4051_v2, 5  ;;  %v4068_v41 = vrot.slane %v4051_v2, 6  ;;  %v4060_v23 = vrot.slane %v4052_v26, 5  ;;  %v5035_v2 = vld [vmem:[%s8320_s7 + $0x8] sm:$0xff]  ;;  %v5034_v16 = vld [vmem:[%s8320_s7] sm:$0xff] }
 0x4e2   : > { %v4072_v44 = vrot.slane %v4052_v26, 6 }
 0x4e3   : > { %v4034_v52 = vrot.slane %v4027_v4, 7  ;;  %v4057_v55 = vsel %vm7922_vm3, %v4895_v47, %v4056_v32  ;;  %v4069_v35 = vsel %vm7958_vm7, %v4898_v11, %v4068_v41  ;;  %v4061_v63 = vsel %vm7922_vm3, %v4896_v14, %v4060_v23  ;;  %v5051_v32 = vld [vmem:[%s8320_s7 + $0x88] sm:$0xff]  ;;  %v5050_v47 = vld [vmem:[%s8320_s7 + $0x80] sm:$0xff]  ;;  %v5044_v14 = vld [vmem:[%s8320_s7 + $0x50] sm:$0xff] }
 0x4e4   : > { %v4073_v27 = vsel %vm7958_vm7, %v4899_v9, %v4072_v44  ;;  %v4894_v5 = vrot.slane %v4027_v4, 11  ;;  %v5049_v4 = vld [vmem:[%s8320_s7 + $0x78] sm:$0xff] }
 0x4e5   : > { %v4042_v62 = vsel %vm423_vm0, 0.0, %v4034_v52  ;;  %4391 = vmatpush.bf16.msra.mxu2 %v5049_v4  ;;  %v5048_v52 = vld [vmem:[%s8320_s7 + $0x70] sm:$0xff] }
 0x4e6   : > { %v8133_v59 = vld.sshfl [vmem:[#allocation1] sm:$0xff pattern:$0x75316420]  ;;  %v4046_v51 = vsel %vm8440_vm4, %v4042_v62, 0.0  ;;  %v4043_v48 = vsel %vm423_vm0, 0.0, %v4894_v5  ;;  %v5047_v62 = vld [vmem:[%s8320_s7 + $0x68] sm:$0xff]  ;;  %vm8452_vm0 = vmmov %vm8445_vm1 }
 0x4e7   : > { %4099 = vst [vmem:[#allocation1] ss:$2 sm:$0xff] %v7928_v20  ;;  %v4053_v50 = vrot.slane %v4046_v51, 4  ;;  %v4897_v12 = vrot.slane %v4046_v51, 9  ;;  %v4900_v43 = vrot.slane %v4046_v51, 10  ;;  %v4047_v36 = vsel %vm8449_vm15, %v4043_v48, 0.0  ;;  %vm8455_vm14 = vmmov %vm8452_vm0 }
 0x4e8   : > { %4101 = vst [vmem:[#allocation1 + $0x1] ss:$2 sm:$0xff] %v4057_v55  ;;  %v4079_v40 = vrot.slane %v4047_v36, 4  ;;  %v4901_v37 = vrot.slane %v4047_v36, 9  ;;  %v4902_v39 = vrot.slane %v4047_v36, 10  ;;  %vm8457_vm5 = vmmov %vm8452_vm0 }
 0x4e9   : > { %4094 = vst [vmem:[#allocation1 + $0x11] ss:$2 sm:$0xff] %v4046_v51  ;;  %v4064_v13 = vrot.slane %v4053_v50, 5  ;;  %v4076_v18 = vrot.slane %v4053_v50, 6  ;;  %4392 = vmatpush.bf16.msra.mxu2 %v5048_v52 }
 0x4ea   : > { %v4082_v31 = vrot.slane %v4079_v40, 5  ;;  %v4086_v15 = vrot.slane %v4079_v40, 6 }
 0x4eb   : > { %v4065_v17 = vsel %vm7922_vm3, %v4897_v12, %v4064_v13  ;;  %v4077_v28 = vsel %vm7958_vm7, %v4900_v43, %v4076_v18 }
 0x4ec   : > { %v4083_v34 = vsel %vm7922_vm3, %v4901_v37, %v4082_v31  ;;  %v4087_v21 = vsel %vm7958_vm7, %v4902_v39, %v4086_v15  ;;  %vm8453_vm3 = vmmov %vm8452_vm0 }
 0x4ed   : > { %4393 = vmatpush.bf16.msra.mxu2 %v5047_v62  ;;  %vm8454_vm7 = vmmov %vm8452_vm0 }
 0x4ef   : > { %v4106_v8 = vld.sshfl [vmem:[#allocation1] sm:$0xff pattern:$0x75316420] }
 0x4f0   : > { %4116 = vst [vmem:[#allocation1 + $0x1] ss:$2 sm:$0xff] %v4069_v35  ;;  %v8144_v42 = vld.sshfl [vmem:[#allocation1 + $0x10] sm:$0xff pattern:$0x75316420] }
 0x4f1   : > { %4114 = vst [vmem:[#allocation1] ss:$2 sm:$0xff] %v7966_v60 }
 0x4f2   : > { %4103 = vst [vmem:[#allocation1 + $0x10] ss:$2 sm:$0xff] %v4061_v63 }
 0x4f3   : > { %4105 = vst [vmem:[#allocation1 + $0x11] ss:$2 sm:$0xff] %v4065_v17 }
 0x4f8   : > { %v4121_v25 = vld.sshfl [vmem:[#allocation1] sm:$0xff pattern:$0x75316420] }
 0x4f9   : > { %4129 = vst [vmem:[#allocation1] ss:$2 sm:$0xff] %v4044_v24  ;;  %v5040_v24 = vld [vmem:[%s8320_s7 + $0x30] sm:$0xff] }
 0x4fa   : > { %v4107_v46 = vld.sshfl [vmem:[#allocation1 + $0x10] sm:$0xff pattern:$0x75316420]  ;;  %4131 = vst [vmem:[#allocation1 + $0x1] ss:$2 sm:$0xff] %v8130_v54 }
 0x4fb   : > { %4120 = vst [vmem:[#allocation1 + $0x11] ss:$2 sm:$0xff] %v4077_v28  ;;  %v5958_v0 = vpack.i.bf16 %v4107_v46, %v4106_v8  ;;  %v5043_v8 = vld [vmem:[%s8320_s7 + $0x48] sm:$0xff] }
 0x4fc   : > { %4118 = vst [vmem:[#allocation1 + $0x10] ss:$2 sm:$0xff] %v4073_v27 }
 0x4fd   : > { %5959 = vrot.lane.b32.xlu2 %v5958_v0, %s8354_s18 }
 0x501   : > { %v4136_v3 = vld.sshfl [vmem:[#allocation1] sm:$0xff pattern:$0x75316420] }
 0x502   : > { %4144 = vst [vmem:[#allocation1] ss:$2 sm:$0xff] %v4057_v55  ;;  %v5046_v55 = vld [vmem:[%s8320_s7 + $0x60] sm:$0xff] }
 0x503   : > { %v4122_v58 = vld.sshfl [vmem:[#allocation1 + $0x10] sm:$0xff pattern:$0x75316420]  ;;  %4146 = vst [vmem:[#allocation1 + $0x1] ss:$2 sm:$0xff] %v4061_v63  ;;  %4394 = vmatpush.bf16.msra.mxu2 %v5046_v55 }
 0x504   : > { %v5963_v38 = vpack.i.bf16 %v4122_v58, %v4121_v25  ;;  %4133 = vst [vmem:[#allocation1 + $0x10] ss:$2 sm:$0xff] %v4046_v51 }
 0x505   : > { %4135 = vst [vmem:[#allocation1 + $0x11] ss:$2 sm:$0xff] %v4047_v36 }
 0x506   : > { %5964 = vrot.lane.b32.xlu0 %v5963_v38, %s8450_s27 }
 0x50a   : > { %v8161_v56 = vld.sshfl [vmem:[#allocation1] sm:$0xff pattern:$0x75316420] }
 0x50b   : > { %4155 = vst [vmem:[#allocation1] ss:$2 sm:$0xff] %v4069_v35 }
 0x50c   : > { %v4137_v53 = vld.sshfl [vmem:[#allocation1 + $0x10] sm:$0xff pattern:$0x75316420]  ;;  %4157 = vst [vmem:[#allocation1 + $0x1] ss:$2 sm:$0xff] %v4073_v27 }
 0x50d   : > { %4148 = vst [vmem:[#allocation1 + $0x10] ss:$2 sm:$0xff] %v4065_v17  ;;  %v5968_v7 = vpack.i.bf16 %v4137_v53, %v4136_v3 }
 0x50e   : > { %4150 = vst [vmem:[#allocation1 + $0x11] ss:$2 sm:$0xff] %v4083_v34 }
 0x50f   : > { %5969 = vrot.lane.b32.xlu1 %v5968_v7, %s8451_s21 }
 0x513   : > { %v4162_v33 = vld.sshfl [vmem:[#allocation1] sm:$0xff pattern:$0x75316420] }
 0x514   : > { %4170 = vst [vmem:[#allocation1] ss:$2 sm:$0xff] %v8130_v54  ;;  %v5037_v54 = vld [vmem:[%s8320_s7 + $0x18] sm:$0xff] }
 0x515   : > { %v8167_v10 = vld.sshfl [vmem:[#allocation1 + $0x10] sm:$0xff pattern:$0x75316420]  ;;  %4172 = vst [vmem:[#allocation1 + $0x1] ss:$2 sm:$0xff] %v4046_v51  ;;  %v5045_v51 = vld [vmem:[%s8320_s7 + $0x58] sm:$0xff] }
 0x516   : > { %4159 = vst [vmem:[#allocation1 + $0x10] ss:$2 sm:$0xff] %v4077_v28  ;;  %4395 = vmatpush.bf16.msra.mxu2 %v5045_v51 }
 0x517   : > { %4161 = vst [vmem:[#allocation1 + $0x11] ss:$2 sm:$0xff] %v4087_v21 }
 0x51a   : > { %4396 = vmatpush.bf16.msra.mxu2 %v5044_v14 }
 0x51c   : > { %v4177_v6 = vld.sshfl [vmem:[#allocation1] sm:$0xff pattern:$0x75316420] }
 0x51d   : > { %4185 = vst [vmem:[#allocation1] ss:$2 sm:$0xff] %v4061_v63 }
 0x51e   : > { %v4163_v45 = vld.sshfl [vmem:[#allocation1 + $0x10] sm:$0xff pattern:$0x75316420]  ;;  %4187 = vst [vmem:[#allocation1 + $0x1] ss:$2 sm:$0xff] %v4065_v17  ;;  %4397 = vmatpush.bf16.msra.mxu2 %v5043_v8 }
 0x51f   : > { %v5973_v61 = vpack.i.bf16 %v4163_v45, %v4162_v33  ;;  %4174 = vst [vmem:[#allocation1 + $0x10] ss:$2 sm:$0xff] %v4047_v36  ;;  %v5058_v45 = vld [vmem:[%s8322_s9 + $0x30] sm:$0xff] }
 0x520   : > { %4176 = vst [vmem:[#allocation1 + $0x11] ss:$2 sm:$0xff] %v8417_v29  ;;  %v5041_v29 = vld [vmem:[%s8320_s7 + $0x38] sm:$0xff] }
 0x521   : > { %5974 = vrot.lane.b32.xlu2 %v5973_v61, %s8354_s18  ;;  %4377 = vmatpush.bf16.msra.mxu3 %v5041_v29  ;;  %v5056_v29 = vld [vmem:[%s8322_s9 + $0x20] sm:$0xff] }
 0x525   : > { %v4192_v49 = vld.sshfl [vmem:[#allocation1] sm:$0xff pattern:$0x75316420]  ;;  %4378 = vmatpush.bf16.msra.mxu3 %v5040_v24 }
 0x526   : > { %4200 = vst [vmem:[#allocation1] ss:$2 sm:$0xff] %v4073_v27 }
 0x527   : > { %v4178_v57 = vld.sshfl [vmem:[#allocation1 + $0x10] sm:$0xff pattern:$0x75316420]  ;;  %4202 = vst [vmem:[#allocation1 + $0x1] ss:$2 sm:$0xff] %v4077_v28 }
 0x528   : > { %v5978_v22 = vpack.i.bf16 %v4178_v57, %v4177_v6  ;;  %4189 = vst [vmem:[#allocation1 + $0x10] ss:$2 sm:$0xff] %v4083_v34 }
 0x529   : > { %4191 = vst [vmem:[#allocation1 + $0x11] ss:$2 sm:$0xff] %v7928_v20  ;;  %v5039_v20 = vld [vmem:[%s8320_s7 + $0x28] sm:$0xff] }
 0x52a   : > { %5979 = vrot.lane.b32.xlu0 %v5978_v22, %s8450_s27  ;;  %4379 = vmatpush.bf16.msra.mxu3 %v5039_v20  ;;  %v5057_v22 = vld [vmem:[%s8322_s9 + $0x28] sm:$0xff] }
 0x530   : > { %v4193_v1 = vld.sshfl [vmem:[#allocation1 + $0x10] sm:$0xff pattern:$0x75316420] }
 0x531   : > { %v5983_v19 = vpack.i.bf16 %v4193_v1, %v4192_v49  ;;  %4204 = vst [vmem:[#allocation1 + $0x10] ss:$2 sm:$0xff] %v4087_v21 }
 0x532   : > { %4206 = vst [vmem:[#allocation1 + $0x11] ss:$2 sm:$0xff] %v7966_v60  ;;  %v5038_v60 = vld [vmem:[%s8320_s7 + $0x20] sm:$0xff] }
 0x533   : > { %5984 = vrot.lane.b32.xlu1 %v5983_v19, %s8451_s21  ;;  %4380 = vmatpush.bf16.msra.mxu3 %v5038_v60 }
 0x537   : > { %4381 = vmatpush.bf16.msra.mxu3 %v5037_v54 }
 0x539   : > { %v4208_v46 = vld.sshfl [vmem:[#allocation1 + $0x10] sm:$0xff pattern:$0x75316420] }
 0x53b   : > { %4382 = vmatpush.bf16.msra.mxu3 %v5036_v30 }
 0x53f   : > { %4383 = vmatpush.bf16.msra.mxu3 %v5035_v2 }
 0x543   : > { %4384 = vmatpush.bf16.msra.mxu3 %v5034_v16 }
 0x547   : > { %4411 = vmatpush.bf16.msrb.mxu3 %v5051_v32 }
 0x54b   : > { %4412 = vmatpush.bf16.msrb.mxu3 %v5050_v47 }
 0x557   : > { %v5960_v26 = vpop.permute.xlu2 %5959 }
 0x558   : > { %v5962_v41 = vunpack.i.h.bf16 %v5960_v26  ;;  %v5961_v23 = vunpack.i.l.bf16 %v5960_v26 }
 0x55a   : > { %v4212_v12 = vsel %vm3313_vm13, %v8144_v42, %v5962_v41  ;;  %v4211_v63 = vsel %vm3313_vm13, %v8133_v59, %v5961_v23  ;;  %v5042_v42 = vld [vmem:[%s8320_s7 + $0x40] sm:$0xff] }
 0x55b   : > { %4398 = vmatpush.bf16.msra.mxu2 %v5042_v42  ;;  %v4207_v59 = vld.sshfl [vmem:[#allocation1] sm:$0xff pattern:$0x75316420]  ;;  %v5053_v42 = vld [vmem:[%s8322_s9 + $0x8] sm:$0xff] }
 0x55c   : > { %v4225_v27 = vpack.c.bf16 %v4208_v46, %v4207_v59  ;;  %v5052_v46 = vld [vmem:[%s8322_s9] sm:$0xff] }
 0x578   : > { %v5965_v50 = vpop.permute.xlu0 %5964 }
 0x579   : > { %v5967_v11 = vunpack.i.h.bf16 %v5965_v50  ;;  %v5966_v13 = vunpack.i.l.bf16 %v5965_v50 }
 0x57b   : > { %v4214_v44 = vsel %vm8452_vm0, %v4212_v12, %v5967_v11  ;;  %v4213_v43 = vsel %vm8453_vm3, %v4211_v63, %v5966_v13  ;;  %v5975_v5 = vpop.permute.xlu2 %5974 }
 0x57c   : > { %v5977_v48 = vunpack.i.h.bf16 %v5975_v5  ;;  %v5976_v3 = vunpack.i.l.bf16 %v5975_v5 }
 0x57e   : > { %v4218_v40 = vsel %vm3313_vm13, %v8167_v10, %v5977_v48  ;;  %v4217_v31 = vsel %vm3313_vm13, %v8161_v56, %v5976_v3  ;;  %v5059_v10 = vld [vmem:[%s8322_s9 + $0x38] sm:$0xff]  ;;  %v5991_v56 = vld [vmem:[%s8321_s8] ss:$0 sm:$0xff] }
 0x57f   : > { %4554 = vmatpush.bf16.msrb.mxu1 %v5059_v10 }
 0x581   : > { %v5970_v35 = vpop.permute.xlu1 %5969 }
 0x582   : > { %v5972_v17 = vunpack.i.h.bf16 %v5970_v35  ;;  %v5971_v18 = vunpack.i.l.bf16 %v5970_v35 }
 0x583   : > { %4555 = vmatpush.bf16.msrb.mxu1 %v5058_v45 }
 0x584   : > { %v4216_v25 = vsel %vm3911_vm2, %v4214_v44, %v5972_v17  ;;  %v4215_v9 = vsel %vm3911_vm2, %v4213_v43, %v5971_v18 }
 0x585   : > { %v4223_v28 = vpack.c.bf16 %v4216_v25, %v4215_v9  ;;  %v5055_v9 = vld [vmem:[%s8322_s9 + $0x18] sm:$0xff] }
 0x587   : > { %4385 = vmatmul.bf16.vlgmr.msra.gmra.mxu3 %v4223_v28  ;;  %4556 = vmatpush.bf16.msrb.mxu1 %v5057_v22  ;;  %v5054_v28 = vld [vmem:[%s8322_s9 + $0x10] sm:$0xff] }
 0x58b   : > { %4557 = vmatpush.bf16.msrb.mxu1 %v5056_v29 }
 0x58f   : > { %4558 = vmatpush.bf16.msrb.mxu1 %v5055_v9 }
 0x593   : > { %4559 = vmatpush.bf16.msrb.mxu1 %v5054_v28 }
 0x597   : > { %4975 = vmatmul.msk.bf16.vlgmr.msrb.gmra.mxu3 %vm3313_vm13, %v4225_v27  ;;  %4560 = vmatpush.bf16.msrb.mxu1 %v5053_v42 }
 0x59b   : > { %4561 = vmatpush.bf16.msrb.mxu1 %v5052_v46 }
 0x59c   : > { %v5980_v0 = vpop.permute.xlu0 %5979 }
 0x59d   : > { %v5982_v36 = vunpack.i.h.bf16 %v5980_v0  ;;  %v5981_v58 = vunpack.i.l.bf16 %v5980_v0 }
 0x59f   : > { %v4220_v34 = vsel %vm8454_vm7, %v4218_v40, %v5982_v36  ;;  %v4219_v7 = vsel %vm8455_vm14, %v4217_v31, %v5981_v58 }
 0x5a5   : > { %v5985_v38 = vpop.permute.xlu1 %5984 }
 0x5a6   : > { %v5987_v37 = vunpack.i.h.bf16 %v5985_v38  ;;  %v5986_v53 = vunpack.i.l.bf16 %v5985_v38 }
 0x5a8   : > { %v4222_v15 = vsel %vm3911_vm2, %v4220_v34, %v5987_v37  ;;  %v4221_v33 = vsel %vm3911_vm2, %v4219_v7, %v5986_v53 }
 0x5a9   : > { %v4224_v39 = vpack.c.bf16 %v4222_v15, %v4221_v33 }
 0x5ab   : > { %4399 = vmatmul.bf16.vlgmr.msra.gmra.mxu2 %v4224_v39 }
 0x60a   : > { %v4386_v21 = vpop.f32.mrf.mxu3 }
 0x60b   : > { %v4387_v61 = vadd.f32 %v5991_v56, %v4386_v21 }
 0x612   : > { %v4388_v6 = vpop.f32.mrf.mxu3 }
 0x613   : > { %v4389_v20 = vadd.f32 %v5991_v56, %v4388_v6 }
 0x61a   : > { %v4414_v49 = vpop.f32.mrf.mxu3 }
 0x622   : > { %v4416_v32 = vpop.f32.mrf.mxu3 }
 0x62e   : > { %v4400_v57 = vpop.f32.mrf.mxu2 }
 0x62f   : > { %v4401_v1 = vadd.f32 %v4400_v57, %v4387_v61 }
 0x631   : > { %v4415_v19 = vadd.f32 %v4414_v49, %v4401_v1 }
 0x633   : > { %v4419_v24 = vmax.f32 %v4415_v19, 0.0 }
 0x635   : > { %v4423_v60 = vrot.slane %v4419_v24, 2  ;;  %v4425_v54 = vrot.slane %v4419_v24, 6  ;;  %v4424_v59 = vrot.slane %v4419_v24, 4  ;;  %v4976_v5 = vrot.slane %v4419_v24, 9 }
 0x636   : > { %v4402_v30 = vpop.f32.mrf.mxu2 }
 0x637   : > { %v4403_v2 = vadd.f32 %v4402_v30, %v4389_v20  ;;  %v4977_v16 = vrot.slane %v4423_v60, 9  ;;  %v4979_v4 = vrot.slane %v4425_v54, 9  ;;  %v4978_v27 = vrot.slane %v4424_v59, 9 }
 0x638   : > { %v4459_v48 = vmax.f32 %v4419_v24, %v4976_v5 }
 0x639   : > { %v4417_v52 = vadd.f32 %v4416_v32, %v4403_v2  ;;  %v4460_v47 = vmax.f32 %v4423_v60, %v4977_v16  ;;  %v4462_v62 = vmax.f32 %v4425_v54, %v4979_v4  ;;  %v4461_v0 = vmax.f32 %v4424_v59, %v4978_v27 }
 0x63b   : > { %v4420_v55 = vmax.f32 %v4417_v52, 0.0  ;;  %v4468_v51 = vmax.f32 %v4460_v47, %v4462_v62  ;;  %v4467_v36 = vmax.f32 %v4459_v48, %v4461_v0 }
 0x63d   : > { %v4472_v26 = vperm.slane %v4468_v51, 0  ;;  %v4427_v50 = vrot.slane %v4420_v55, 4  ;;  %v4980_v41 = vrot.slane %v4420_v55, 9  ;;  %v4426_v23 = vrot.slane %v4420_v55, 2 }
 0x63e   : > { %v4428_v11 = vrot.slane %v4420_v55, 6 }
 0x63f   : > { %4473 = vrot.lane.b32.xlu2 %v4472_v26, %s8456_s28  ;;  %v4982_v13 = vrot.slane %v4427_v50, 9  ;;  %v4981_v14 = vrot.slane %v4426_v23, 9  ;;  %v4463_v8 = vmax.f32 %v4420_v55, %v4980_v41  ;;  %s4577_s28 = scalar_lea.hbm %s8323_s10, %s6154_s17 }
 0x640   : > { %v4983_v35 = vrot.slane %v4428_v11, 9  ;;  %s4581_s18 = sshll.u32 %s4577_s28, 4  ;;  %s4582_s18 = int_to_ptr.hbm [resolvable:$true] %s4581_s18 }
 0x641   : > { %v4465_v12 = vmax.f32 %v4427_v50, %v4982_v13  ;;  %v4464_v63 = vmax.f32 %v4426_v23, %v4981_v14  ;;  %s6008_s25 = sshra.s32 %s4582_s18, 4  ;;  %s6009_s25 = int_to_ptr.hbm [resolvable:$true] %s6008_s25 }
 0x642   : > { %v4466_v17 = vmax.f32 %v4428_v11, %v4983_v35  ;;  %s6010_s26 = scalar_lea.hbm %s6009_s25, 1  ;;  %p6015_p0 = scmp.lt.s32.totalorder %s6009_s25, %s8323_s10 }
 0x643   : > { %v4469_v18 = vmax.f32 %v4463_v8, %v4465_v12  ;;  %p6011_p11 = scmp.ne.s32.totalorder %s6009_s25, %s6010_s26 }
 0x644   : > { %v4470_v44 = vmax.f32 %v4464_v63, %v4466_v17 }
 0x645   : > { %v4477_v43 = vperm.slane %v4469_v18, 0  ;;  %p6012_p12 = pnand %p6011_p11, %p6171_p5 }
 0x646   : > { %v4482_v25 = vperm.slane %v4470_v44, 0 }
 0x647   : > { %4478 = vrot.lane.b32.xlu0 %v4477_v43, %s8450_s27  ;;  %s350_s27 = sand.u32 1, %s6048_s14   ;;  %p6013_p13 = pneg %p6012_p12 }
 0x648   : > { %4483 = vrot.lane.b32.xlu1 %v4482_v25, %s8451_s21  ;;  %s351_s12 = scalar_lea.vmem [#allocation2], %s350_s27  ;;  %s4569_s20 = scalar_lea.sflag [#allocation3], %s350_s27 }
 0x649   : > { %s4579_s0 = sshll.u32 %s351_s12, 4  ;;  %s6014_s21 = scalar_lea.hbm %s8323_s10, 2  ;;  %s4580_s0 = int_to_ptr.vmem [resolvable:$true] %s4579_s0 }
 0x64a   : > { %p6016_p1 = scmp.lt.s32.totalorder %s6014_s21, %s6010_s26 }
 0x64c   : > { %p6017_p2 = por %p6016_p1, %p6015_p0 }
 0x64e   : > { %p6018_p3 = pnand %p6017_p2, %p6013_p13 }
 0x699   : > { %v4474_v3 = vpop.permute.xlu2 %4473 }
 0x69a   : > { %v4486_v58 = vsel %vm3313_vm13, %v4467_v36, %v4474_v3 }
 0x6b9   : > { %v4479_v38 = vpop.permute.xlu0 %4478 }
 0x6ba   : > { %v4487_v40 = vsel %vm8457_vm5, %v4486_v58, %v4479_v38  ;;  %v4484_v31 = vpop.permute.xlu1 %4483 }
 0x6bb   : > { %v4488_v37 = vsel %vm3911_vm2, %v4487_v40, %v4484_v31 }
 0x6bc   : > { %v4489_v53 = vpack.c.bf16 %v4488_v37, %v4488_v37 }
 0x6be   : > { %4562 = vmatmul.bf16.vlgmr.msrb.gmra.mxu1 %v4489_v53 }
 0x73b   : > { %v4563_v34 = vpop.f32.mrf.mxu1 }
 0x73c   : > { %4567 = vst [vmem:[%s351_s12] sm:$0x1] %v4563_v34 }
 0x73d   : > { %6021 = shalt.err (!%p6018_p3)
}
 0x73e   : > { %5064 = dma.vmem_to_hbm [thread:$0]  (%p6171_p5), %s4580_s0, 16, %s4582_s18, %s4569_s20  }
 0x743   : > { %v4565_v7 = vpop.f32.mrf.mxu1 }
 0x744 PF: > { %p5070_p4 = scmp.ge.s32.totalorder %s6056_s16, 2  ;;  %s4593_s27 = sand.u32 1, %s6044_s13  }
 0x745   : > { %s4594_s28 = scalar_lea.sflag [#allocation3], %s4593_s27 }
 0x746   : > { %p5067_p7 = pnand %p5070_p4, %p6175_p6 }
 0x748   : > { %p5068_p8 = pneg %p5067_p7 }
 0x74a   : > { %6039 = dma.done.wait (%p5068_p8), %s4594_s28, 16  }
 0x74b   : > { %6041 = vsyncadd (%p5068_p8), %s4594_s28, 4294967280  ;;  %p20_p9 = scmp.ge.s32.totalorder %s6158_s19, 4   ;;  %s8458_s13 = smov %s6048_s14 }
 0x74c   : > { %s8459_s14 = smov %s6052_s15  ;;  %s8460_s15 = smov %s6169_s22 }
 0x74d   : > { %s8461_s16 = smov %s6158_s19  ;;  %22 = sbr.rel (!%p20_p9) target bundleno = 5 (0x5), region = 149 }
 0x752   :  { %4599 = vsyncpa [#allocation3], 1 }
 0x753   :  { %4601 = vsyncpa [#allocation3 + $0x1], 1 }

</bundles_post_ra>
